<compile_context>
chip_gen: v5e
topology: v5e:2x2
jax: 0.10.0
libtpu: 0.0.40
codegen_flags: <defaults>
</compile_context>

<pallas_src>
import functools

import jax
import jax.numpy as jnp
from jax.experimental import pallas as pl
from jax.experimental.pallas import tpu as pltpu


def _conv3x3_stats_kernel(x_ref, w_ref, o_ref, stats_ref, halo_ref, patch_ref, *,
                          num_h_tiles):
    """3x3 conv (pad=1) on one H-tile + per-tile BatchNorm partial statistics.

    x_ref:     (1, H, W, Cin)        bf16  unpadded NHWC image, resident across its H-tiles
    w_ref:     (9*Cin, Cout)         bf16  im2col weights, tap order (dy, dx, cin)
    o_ref:     (1, TILE_H, W, Cout)  bf16  conv output tile
    stats_ref: (1, 1, 2, Cout)       f32   per-tile [sum, sum_of_squares] over (TILE_H, W)
    halo_ref:  (TILE_H+2, W+2, Cin)  bf16  scratch: zero-padded input window (halo built here,
                                           so no padded activation copy ever hits HBM)
    patch_ref: (TILE_H, W, 9*Cin)    bf16  scratch: im2col patches -> one fat-K MXU matmul
    """
    h = pl.program_id(1)
    nh = num_h_tiles                      # static (closure) -> only valid branches are traced
    th, wd, cout = o_ref.shape[1], o_ref.shape[2], o_ref.shape[3]
    cin = x_ref.shape[3]
    first = h == 0
    last = h == nh - 1
    r0 = h * th

    # ---- build the zero-padded (TILE_H+2, W+2) halo window in VMEM ----
    zcol = jnp.zeros((th + 2, 1, cin), jnp.bfloat16)
    halo_ref[:, 0:1, :] = zcol                         # left pad column
    halo_ref[:, wd + 1:wd + 2, :] = zcol               # right pad column
    zrow = jnp.zeros((1, wd + 2, cin), jnp.bfloat16)

    if nh == 1:
        # Single tile covers the whole image: pad both borders, copy all rows.
        halo_ref[0:1, :, :] = zrow
        halo_ref[th + 1:th + 2, :, :] = zrow
        halo_ref[1:th + 1, 1:wd + 1, :] = x_ref[0, pl.ds(0, th), :, :]
    else:
        # Copy the [r0-1, r0+TILE_H+1) row window of x (clipped at the image borders) from the
        # resident block.  Static-size copies per boundary case.
        @pl.when(first)
        def _():
            halo_ref[0:1, :, :] = zrow                                        # top image border
            halo_ref[1:th + 2, 1:wd + 1, :] = x_ref[0, pl.ds(0, th + 1), :, :]

        @pl.when(last)
        def _():
            halo_ref[th + 1:th + 2, :, :] = zrow                              # bottom image border
            halo_ref[0:th + 1, 1:wd + 1, :] = x_ref[0, pl.ds(r0 - 1, th + 1), :, :]

        @pl.when(jnp.logical_and(jnp.logical_not(first), jnp.logical_not(last)))
        def _():
            halo_ref[0:th + 2, 1:wd + 1, :] = x_ref[0, pl.ds(r0 - 1, th + 2), :, :]

    # ---- im2col pack: 9 shifted taps along the contraction dim -> ONE fat-K MXU matmul ----
    # TODO(synk): for Cin >= 128, pad Cin (and the weight rows) to a lane multiple so every tap
    # store is an unmasked full-lane vst; at tiny Cin that padding would inflate K by 32x.
    # (On v5e, also benchmark the 9-accumulating-matmul variant: single vst slot.)
    for dy in range(3):
        for dx in range(3):
            t = dy * 3 + dx
            patch_ref[:, :, t * cin:(t + 1) * cin] = halo_ref[dy:dy + th, dx:dx + wd, :]

    acc = jax.lax.dot_general(
        patch_ref[...], w_ref[...],
        dimension_numbers=(((2,), (0,)), ((), ())),
        preferred_element_type=jnp.float32)            # (TILE_H, W, Cout) f32

    # bf16 HBM intermediate (halves the dominant write + re-read traffic); stats stay f32.
    o_ref[...] = acc[None].astype(o_ref.dtype)

    ssum = jnp.sum(acc, axis=(0, 1), keepdims=True)         # (1, 1, Cout)
    ssq = jnp.sum(acc * acc, axis=(0, 1), keepdims=True)    # (1, 1, Cout)
    stats_ref[:, :, 0:1, :] = ssum[None]
    stats_ref[:, :, 1:2, :] = ssq[None]


def _bn_apply_nchw_kernel(y_ref, scale_ref, shift_ref, o_ref):
    """y*scale + shift, emitted directly in NCHW layout (no separate XLA transpose pass).

    y_ref:     (1, H, W, Cout)   bf16  conv output block
    scale_ref: (1, Cout)         f32
    shift_ref: (1, Cout)         f32
    o_ref:     (1, Cout, H*W)    f32   lane-dense NCHW(-flattened) output block
    """
    hb, wd, cout = y_ref.shape[1], y_ref.shape[2], y_ref.shape[3]
    y = y_ref[...].astype(jnp.float32).reshape(hb * wd, cout)
    y = y * scale_ref[...] + shift_ref[...]
    o_ref[...] = jnp.transpose(y)[None]          # (1, Cout, H*W): one in-kernel 2-D transpose


def _pick_tile_h(H, W):
    """Smallest multiple-of-8 divisor of H whose MXU M dim (TILE_H*W) reaches ~1024, else H."""
    for t in range(8, H, 8):
        if H % t == 0 and t * W >= 1024:
            return t
    return H


def conv_block_forward(x_nchw, w_oihw, gamma, beta, eps=1e-5, tile_h=None):
    """Conv2d(3x3, stride=1, pad=1) + BatchNorm2d with training-mode (biased) batch statistics.

    Returns NCHW f32 like the PyTorch module.  The conv bias is intentionally omitted: the
    batch-mean subtraction of training-mode BN cancels a per-channel bias exactly.
    """
    N, Cin, H, W = x_nchw.shape
    Cout = w_oihw.shape[0]
    tile_h = _pick_tile_h(H, W) if tile_h is None else tile_h
    assert H % tile_h == 0, "H must be a multiple of tile_h"
    HT = H // tile_h

    # Layout prep: single transpose+cast pass each; no padded copy, no channel padding.
    x_nhwc = jnp.transpose(x_nchw, (0, 2, 3, 1)).astype(jnp.bfloat16)
    # (Cout, Cin, 3, 3) -> (3, 3, Cin, Cout) -> (9*Cin, Cout), tap order (dy, dx, cin).
    w_im2col = jnp.transpose(w_oihw, (2, 3, 1, 0)).reshape(9 * Cin, Cout).astype(jnp.bfloat16)

    # Pass 1: conv + per-tile partial BN statistics.
    # TODO(synk): at large image sizes replace the whole-image-resident input block with a
    # manually DMA'd (tile_h+2, W, Cin) halo window (memory_space=pl.ANY + make_async_copy,
    # double-buffered) so the tiling stays inside v7x's 64 MiB/TC VMEM.
    conv_out, partial_stats = pl.pallas_call(
        functools.partial(_conv3x3_stats_kernel, num_h_tiles=HT),
        out_shape=(
            jax.ShapeDtypeStruct((N, H, W, Cout), jnp.bfloat16),
            jax.ShapeDtypeStruct((N, HT, 2, Cout), jnp.float32),
        ),
        grid_spec=pltpu.PrefetchScalarGridSpec(
            num_scalar_prefetch=0,
            grid=(N, HT),
            in_specs=[
                pl.BlockSpec((1, H, W, Cin), lambda n, h: (n, 0, 0, 0)),
                pl.BlockSpec((9 * Cin, Cout), lambda n, h: (0, 0)),
            ],
            out_specs=(
                pl.BlockSpec((1, tile_h, W, Cout), lambda n, h: (n, h, 0, 0)),
                pl.BlockSpec((1, 1, 2, Cout), lambda n, h: (n, h, 0, 0)),
            ),
            scratch_shapes=[
                pltpu.VMEM((tile_h + 2, W + 2, Cin), jnp.bfloat16),
                pltpu.VMEM((tile_h, W, 9 * Cin), jnp.bfloat16),
            ],
        ),
        compiler_params=pltpu.CompilerParams(
            dimension_semantics=("parallel", "parallel")),
    )(x_nhwc, w_im2col)

    # Tiny per-channel finalize (PyTorch training-mode BN: biased variance, eps=1e-5).
    stats = jnp.sum(partial_stats, axis=(0, 1))                 # (2, Cout) f32
    count = N * H * W
    mean = stats[0] / count
    var = jnp.maximum(stats[1] / count - mean * mean, 0.0)       # clamp: E[x^2]-m^2 can dip < 0
    inv = jax.lax.rsqrt(var + eps)
    gamma_f = gamma.astype(jnp.float32)
    scale = (gamma_f * inv).reshape(1, Cout)
    shift = (beta.astype(jnp.float32) - mean * gamma_f * inv).reshape(1, Cout)

    # Pass 2: y*scale + shift, written straight to NCHW.  No halo constraint -> full-H blocks.
    out_flat = pl.pallas_call(
        _bn_apply_nchw_kernel,
        out_shape=jax.ShapeDtypeStruct((N, Cout, H * W), jnp.float32),
        grid=(N,),
        in_specs=[
            pl.BlockSpec((1, H, W, Cout), lambda n: (n, 0, 0, 0)),
            pl.BlockSpec((1, Cout), lambda n: (0, 0)),
            pl.BlockSpec((1, Cout), lambda n: (0, 0)),
        ],
        out_specs=pl.BlockSpec((1, Cout, H * W), lambda n: (n, 0, 0)),
        compiler_params=pltpu.CompilerParams(dimension_semantics=("parallel",)),
    )(conv_out, scale, shift)

    # Row-major dim split only -> metadata reshape, no extra HBM pass.
    return out_flat.reshape(N, Cout, H, W)


if __name__ == "__main__":
    N, Cin, Cout, H, W = 2, 4, 8, 16, 16

    key = jax.random.PRNGKey(0)
    kx, kw, kb = jax.random.split(key, 3)
    x = jax.random.normal(kx, (N, Cin, H, W), jnp.float32)
    w = jax.random.normal(kw, (Cout, Cin, 3, 3), jnp.float32) * 0.1
    b = jax.random.normal(kb, (Cout,), jnp.float32) * 0.1   # PyTorch conv bias: cancelled by BN
    gamma = jnp.ones((Cout,), jnp.float32)                  # BatchNorm2d default affine init
    beta = jnp.zeros((Cout,), jnp.float32)

    # tile_h=8 exercises the general halo-tiled path (grid (2, 2), both axes parallel);
    # at these toy sizes the auto policy would otherwise take the full image in one tile.
    out = jax.block_until_ready(conv_block_forward(x, w, gamma, beta, tile_h=8))

    # Pure-JAX reference with PyTorch semantics (conv bias included; it cancels under
    # training-mode BN).  Conv inputs and the conv->BN intermediate are rounded to bf16 to
    # mirror the kernel's reduced-precision MXU feed / HBM storage; BN stats stay f32.
    xr = x.astype(jnp.bfloat16).astype(jnp.float32)
    wr = w.astype(jnp.bfloat16).astype(jnp.float32)
    conv_ref = jax.lax.conv_general_dilated(
        xr, wr, window_strides=(1, 1), padding=((1, 1), (1, 1)),
        dimension_numbers=("NCHW", "OIHW", "NCHW"),
        precision=jax.lax.Precision.HIGHEST) + b.reshape(1, Cout, 1, 1)
    mean = jnp.mean(conv_ref, axis=(0, 2, 3), keepdims=True)
    var = jnp.mean((conv_ref - mean) ** 2, axis=(0, 2, 3), keepdims=True)
    conv_q = conv_ref.astype(jnp.bfloat16).astype(jnp.float32)
    ref = (conv_q - mean) * jax.lax.rsqrt(var + 1e-5) * gamma.reshape(1, Cout, 1, 1) \
        + beta.reshape(1, Cout, 1, 1)

    assert out.shape == (N, Cout, H, W)
    err = float(jnp.max(jnp.abs(out - ref)))
    assert jnp.allclose(out, ref, atol=1e-2, rtol=1e-2), err
    print("KERNEL_OK")
</pallas_src>

<mosaic_0001>
module attributes {stable_mosaic.version = 11 : i64} {
  func.func @_conv3x3_stats_kernel(%arg0: i32, %arg1: i32, %arg2: memref<1x16x16x4xbf16, #tpu.memory_space<vmem>>, %arg3: memref<36x8xbf16, #tpu.memory_space<vmem>>, %arg4: memref<1x8x16x8xbf16, #tpu.memory_space<vmem>>, %arg5: memref<1x1x2x8xf32, #tpu.memory_space<vmem>>, %arg6: memref<10x18x4xbf16, #tpu.memory_space<vmem>>, %arg7: memref<8x16x36xbf16, #tpu.memory_space<vmem>>) attributes {dimension_semantics = [#tpu.dimension_semantics<parallel>, #tpu.dimension_semantics<parallel>], iteration_bounds = array<i64: 2, 2>, scalar_prefetch = 0 : i64, scratch_operands = 2 : i64, tpu.core_type = #tpu.core_type<tc>, window_params = [{transform_indices = @transform_0, window_bounds = array<i64: 1, 16, 16, 4>}, {pipeline_mode = #tpu.pipeline_mode<synchronous>, transform_indices = @transform_1, window_bounds = array<i64: 36, 8>}, {transform_indices = @transform_2, window_bounds = array<i64: 1, 8, 16, 8>}, {transform_indices = @transform_3, window_bounds = array<i64: 1, 1, 2, 8>}]} {
    %c0_i32 = arith.constant 0 : i32
    %0 = arith.cmpi eq, %arg1, %c0_i32 : i32
    %c1_i32 = arith.constant 1 : i32
    %1 = arith.cmpi eq, %arg1, %c1_i32 : i32
    %c8_i32 = arith.constant 8 : i32
    %2 = arith.muli %arg1, %c8_i32 : i32
    %cst = arith.constant 0.000000e+00 : bf16
    %3 = vector.broadcast %cst : bf16 to vector<10x1x4xbf16>
    %c0 = arith.constant 0 : index
    %c0_0 = arith.constant 0 : index
    %c0_1 = arith.constant 0 : index
    %4 = vector.load %arg6[%c0, %c0_0, %c0_1] : memref<10x18x4xbf16, #tpu.memory_space<vmem>>, vector<10x1x4xbf16>
    tpu.vector_store %arg6[%c0, %c0_0, %c0_1], %3 {strides = array<i32>} : memref<10x18x4xbf16, #tpu.memory_space<vmem>>, vector<10x1x4xbf16>,
    %c0_2 = arith.constant 0 : index
    %c17 = arith.constant 17 : index
    %c0_3 = arith.constant 0 : index
    %5 = vector.load %arg6[%c0_2, %c17, %c0_3] : memref<10x18x4xbf16, #tpu.memory_space<vmem>>, vector<10x1x4xbf16>
    tpu.vector_store %arg6[%c0_2, %c17, %c0_3], %3 {strides = array<i32>} : memref<10x18x4xbf16, #tpu.memory_space<vmem>>, vector<10x1x4xbf16>,
    %cst_4 = arith.constant 0.000000e+00 : bf16
    %6 = vector.broadcast %cst_4 : bf16 to vector<1x18x4xbf16>
    %7 = arith.extui %0 : i1 to i32
    %c0_i32_5 = arith.constant 0 : i32
    %8 = arith.cmpi ne, %7, %c0_i32_5 : i32
    scf.if %8 {
      %c0_73 = arith.constant 0 : index
      %c0_74 = arith.constant 0 : index
      %c0_75 = arith.constant 0 : index
      %49 = vector.load %arg6[%c0_73, %c0_74, %c0_75] : memref<10x18x4xbf16, #tpu.memory_space<vmem>>, vector<1x18x4xbf16>
      tpu.vector_store %arg6[%c0_73, %c0_74, %c0_75], %6 {strides = array<i32>} : memref<10x18x4xbf16, #tpu.memory_space<vmem>>, vector<1x18x4xbf16>,
      %c0_76 = arith.constant 0 : index
      %c0_77 = arith.constant 0 : index
      %c0_78 = arith.constant 0 : index
      %c0_79 = arith.constant 0 : index
      %50 = vector.load %arg2[%c0_76, %c0_77, %c0_78, %c0_79] : memref<1x16x16x4xbf16, #tpu.memory_space<vmem>>, vector<1x9x16x4xbf16>
      %51 = vector.shape_cast %50 : vector<1x9x16x4xbf16> to vector<9x16x4xbf16>
      %c1_80 = arith.constant 1 : index
      %c1_81 = arith.constant 1 : index
      %c0_82 = arith.constant 0 : index
      %52 = vector.load %arg6[%c1_80, %c1_81, %c0_82] : memref<10x18x4xbf16, #tpu.memory_space<vmem>>, vector<9x16x4xbf16>
      tpu.vector_store %arg6[%c1_80, %c1_81, %c0_82], %51 {strides = array<i32>} : memref<10x18x4xbf16, #tpu.memory_space<vmem>>, vector<9x16x4xbf16>,
    } else {
    }
    %9 = arith.extui %1 : i1 to i32
    %c0_i32_6 = arith.constant 0 : i32
    %10 = arith.cmpi ne, %9, %c0_i32_6 : i32
    scf.if %10 {
      %c9 = arith.constant 9 : index
      %c0_73 = arith.constant 0 : index
      %c0_74 = arith.constant 0 : index
      %49 = vector.load %arg6[%c9, %c0_73, %c0_74] : memref<10x18x4xbf16, #tpu.memory_space<vmem>>, vector<1x18x4xbf16>
      tpu.vector_store %arg6[%c9, %c0_73, %c0_74], %6 {strides = array<i32>} : memref<10x18x4xbf16, #tpu.memory_space<vmem>>, vector<1x18x4xbf16>,
      %c1_i32_75 = arith.constant 1 : i32
      %50 = arith.subi %2, %c1_i32_75 : i32
      %c0_76 = arith.constant 0 : index
      %51 = arith.index_cast %50 : i32 to index
      %c0_77 = arith.constant 0 : index
      %c0_78 = arith.constant 0 : index
      %52 = vector.load %arg2[%c0_76, %51, %c0_77, %c0_78] : memref<1x16x16x4xbf16, #tpu.memory_space<vmem>>, vector<1x9x16x4xbf16>
      %53 = vector.shape_cast %52 : vector<1x9x16x4xbf16> to vector<9x16x4xbf16>
      %c0_79 = arith.constant 0 : index
      %c1_80 = arith.constant 1 : index
      %c0_81 = arith.constant 0 : index
      %54 = vector.load %arg6[%c0_79, %c1_80, %c0_81] : memref<10x18x4xbf16, #tpu.memory_space<vmem>>, vector<9x16x4xbf16>
      tpu.vector_store %arg6[%c0_79, %c1_80, %c0_81], %53 {strides = array<i32>} : memref<10x18x4xbf16, #tpu.memory_space<vmem>>, vector<9x16x4xbf16>,
    } else {
    }
    %true = arith.constant true
    %11 = arith.xori %0, %true : i1
    %true_7 = arith.constant true
    %12 = arith.xori %1, %true_7 : i1
    %13 = arith.andi %11, %12 : i1
    %14 = arith.extui %13 : i1 to i32
    %c0_i32_8 = arith.constant 0 : i32
    %15 = arith.cmpi ne, %14, %c0_i32_8 : i32
    scf.if %15 {
      %c1_i32_73 = arith.constant 1 : i32
      %49 = arith.subi %2, %c1_i32_73 : i32
      %c0_74 = arith.constant 0 : index
      %50 = arith.index_cast %49 : i32 to index
      %c0_75 = arith.constant 0 : index
      %c0_76 = arith.constant 0 : index
      %51 = vector.load %arg2[%c0_74, %50, %c0_75, %c0_76] : memref<1x16x16x4xbf16, #tpu.memory_space<vmem>>, vector<1x10x16x4xbf16>
      %52 = vector.shape_cast %51 : vector<1x10x16x4xbf16> to vector<10x16x4xbf16>
      %c0_77 = arith.constant 0 : index
      %c1_78 = arith.constant 1 : index
      %c0_79 = arith.constant 0 : index
      %53 = vector.load %arg6[%c0_77, %c1_78, %c0_79] : memref<10x18x4xbf16, #tpu.memory_space<vmem>>, vector<10x16x4xbf16>
      tpu.vector_store %arg6[%c0_77, %c1_78, %c0_79], %52 {strides = array<i32>} : memref<10x18x4xbf16, #tpu.memory_space<vmem>>, vector<10x16x4xbf16>,
    } else {
    }
    %c0_9 = arith.constant 0 : index
    %c0_10 = arith.constant 0 : index
    %c0_11 = arith.constant 0 : index
    %16 = vector.load %arg6[%c0_9, %c0_10, %c0_11] : memref<10x18x4xbf16, #tpu.memory_space<vmem>>, vector<8x16x4xbf16>
    %c0_12 = arith.constant 0 : index
    %c0_13 = arith.constant 0 : index
    %c0_14 = arith.constant 0 : index
    %17 = vector.load %arg7[%c0_12, %c0_13, %c0_14] : memref<8x16x36xbf16, #tpu.memory_space<vmem>>, vector<8x16x4xbf16>
    tpu.vector_store %arg7[%c0_12, %c0_13, %c0_14], %16 {strides = array<i32>} : memref<8x16x36xbf16, #tpu.memory_space<vmem>>, vector<8x16x4xbf16>,
    %c0_15 = arith.constant 0 : index
    %c1 = arith.constant 1 : index
    %c0_16 = arith.constant 0 : index
    %18 = vector.load %arg6[%c0_15, %c1, %c0_16] : memref<10x18x4xbf16, #tpu.memory_space<vmem>>, vector<8x16x4xbf16>
    %c0_17 = arith.constant 0 : index
    %c0_18 = arith.constant 0 : index
    %c4 = arith.constant 4 : index
    %19 = vector.load %arg7[%c0_17, %c0_18, %c4] : memref<8x16x36xbf16, #tpu.memory_space<vmem>>, vector<8x16x4xbf16>
    tpu.vector_store %arg7[%c0_17, %c0_18, %c4], %18 {strides = array<i32>} : memref<8x16x36xbf16, #tpu.memory_space<vmem>>, vector<8x16x4xbf16>,
    %c0_19 = arith.constant 0 : index
    %c2 = arith.constant 2 : index
    %c0_20 = arith.constant 0 : index
    %20 = vector.load %arg6[%c0_19, %c2, %c0_20] : memref<10x18x4xbf16, #tpu.memory_space<vmem>>, vector<8x16x4xbf16>
    %c0_21 = arith.constant 0 : index
    %c0_22 = arith.constant 0 : index
    %c8 = arith.constant 8 : index
    %21 = vector.load %arg7[%c0_21, %c0_22, %c8] : memref<8x16x36xbf16, #tpu.memory_space<vmem>>, vector<8x16x4xbf16>
    tpu.vector_store %arg7[%c0_21, %c0_22, %c8], %20 {strides = array<i32>} : memref<8x16x36xbf16, #tpu.memory_space<vmem>>, vector<8x16x4xbf16>,
    %c1_23 = arith.constant 1 : index
    %c0_24 = arith.constant 0 : index
    %c0_25 = arith.constant 0 : index
    %22 = vector.load %arg6[%c1_23, %c0_24, %c0_25] : memref<10x18x4xbf16, #tpu.memory_space<vmem>>, vector<8x16x4xbf16>
    %c0_26 = arith.constant 0 : index
    %c0_27 = arith.constant 0 : index
    %c12 = arith.constant 12 : index
    %23 = vector.load %arg7[%c0_26, %c0_27, %c12] : memref<8x16x36xbf16, #tpu.memory_space<vmem>>, vector<8x16x4xbf16>
    tpu.vector_store %arg7[%c0_26, %c0_27, %c12], %22 {strides = array<i32>} : memref<8x16x36xbf16, #tpu.memory_space<vmem>>, vector<8x16x4xbf16>,
    %c1_28 = arith.constant 1 : index
    %c1_29 = arith.constant 1 : index
    %c0_30 = arith.constant 0 : index
    %24 = vector.load %arg6[%c1_28, %c1_29, %c0_30] : memref<10x18x4xbf16, #tpu.memory_space<vmem>>, vector<8x16x4xbf16>
    %c0_31 = arith.constant 0 : index
    %c0_32 = arith.constant 0 : index
    %c16 = arith.constant 16 : index
    %25 = vector.load %arg7[%c0_31, %c0_32, %c16] : memref<8x16x36xbf16, #tpu.memory_space<vmem>>, vector<8x16x4xbf16>
    tpu.vector_store %arg7[%c0_31, %c0_32, %c16], %24 {strides = array<i32>} : memref<8x16x36xbf16, #tpu.memory_space<vmem>>, vector<8x16x4xbf16>,
    %c1_33 = arith.constant 1 : index
    %c2_34 = arith.constant 2 : index
    %c0_35 = arith.constant 0 : index
    %26 = vector.load %arg6[%c1_33, %c2_34, %c0_35] : memref<10x18x4xbf16, #tpu.memory_space<vmem>>, vector<8x16x4xbf16>
    %c0_36 = arith.constant 0 : index
    %c0_37 = arith.constant 0 : index
    %c20 = arith.constant 20 : index
    %27 = vector.load %arg7[%c0_36, %c0_37, %c20] : memref<8x16x36xbf16, #tpu.memory_space<vmem>>, vector<8x16x4xbf16>
    tpu.vector_store %arg7[%c0_36, %c0_37, %c20], %26 {strides = array<i32>} : memref<8x16x36xbf16, #tpu.memory_space<vmem>>, vector<8x16x4xbf16>,
    %c2_38 = arith.constant 2 : index
    %c0_39 = arith.constant 0 : index
    %c0_40 = arith.constant 0 : index
    %28 = vector.load %arg6[%c2_38, %c0_39, %c0_40] : memref<10x18x4xbf16, #tpu.memory_space<vmem>>, vector<8x16x4xbf16>
    %c0_41 = arith.constant 0 : index
    %c0_42 = arith.constant 0 : index
    %c24 = arith.constant 24 : index
    %29 = vector.load %arg7[%c0_41, %c0_42, %c24] : memref<8x16x36xbf16, #tpu.memory_space<vmem>>, vector<8x16x4xbf16>
    tpu.vector_store %arg7[%c0_41, %c0_42, %c24], %28 {strides = array<i32>} : memref<8x16x36xbf16, #tpu.memory_space<vmem>>, vector<8x16x4xbf16>,
    %c2_43 = arith.constant 2 : index
    %c1_44 = arith.constant 1 : index
    %c0_45 = arith.constant 0 : index
    %30 = vector.load %arg6[%c2_43, %c1_44, %c0_45] : memref<10x18x4xbf16, #tpu.memory_space<vmem>>, vector<8x16x4xbf16>
    %c0_46 = arith.constant 0 : index
    %c0_47 = arith.constant 0 : index
    %c28 = arith.constant 28 : index
    %31 = vector.load %arg7[%c0_46, %c0_47, %c28] : memref<8x16x36xbf16, #tpu.memory_space<vmem>>, vector<8x16x4xbf16>
    tpu.vector_store %arg7[%c0_46, %c0_47, %c28], %30 {strides = array<i32>} : memref<8x16x36xbf16, #tpu.memory_space<vmem>>, vector<8x16x4xbf16>,
    %c2_48 = arith.constant 2 : index
    %c2_49 = arith.constant 2 : index
    %c0_50 = arith.constant 0 : index
    %32 = vector.load %arg6[%c2_48, %c2_49, %c0_50] : memref<10x18x4xbf16, #tpu.memory_space<vmem>>, vector<8x16x4xbf16>
    %c0_51 = arith.constant 0 : index
    %c0_52 = arith.constant 0 : index
    %c32 = arith.constant 32 : index
    %33 = vector.load %arg7[%c0_51, %c0_52, %c32] : memref<8x16x36xbf16, #tpu.memory_space<vmem>>, vector<8x16x4xbf16>
    tpu.vector_store %arg7[%c0_51, %c0_52, %c32], %32 {strides = array<i32>} : memref<8x16x36xbf16, #tpu.memory_space<vmem>>, vector<8x16x4xbf16>,
    %c0_53 = arith.constant 0 : index
    %c0_54 = arith.constant 0 : index
    %c0_55 = arith.constant 0 : index
    %34 = vector.load %arg7[%c0_53, %c0_54, %c0_55] : memref<8x16x36xbf16, #tpu.memory_space<vmem>>, vector<8x16x36xbf16>
    %c0_56 = arith.constant 0 : index
    %c0_57 = arith.constant 0 : index
    %35 = vector.load %arg3[%c0_56, %c0_57] : memref<36x8xbf16, #tpu.memory_space<vmem>>, vector<36x8xbf16>
    %cst_58 = arith.constant dense<0.000000e+00> : vector<8x16x8xf32>
    %36 = tpu.matmul %34, %35, %cst_58 {dimension_numbers = #tpu.dot_dimension_numbers<[2], [0], [0, 1], [1], [0, 0, 0, 1, 1, 1], [], []>} : vector<8x16x36xbf16>, vector<36x8xbf16>, vector<8x16x8xf32> -> vector<8x16x8xf32>
    %37 = vector.shape_cast %36 : vector<8x16x8xf32> to vector<1x8x16x8xf32>
    %38 = arith.truncf %37 : vector<1x8x16x8xf32> to vector<1x8x16x8xbf16>
    %c0_59 = arith.constant 0 : index
    %c0_60 = arith.constant 0 : index
    %c0_61 = arith.constant 0 : index
    %c0_62 = arith.constant 0 : index
    %39 = vector.load %arg4[%c0_59, %c0_60, %c0_61, %c0_62] : memref<1x8x16x8xbf16, #tpu.memory_space<vmem>>, vector<1x8x16x8xbf16>
    tpu.vector_store %arg4[%c0_59, %c0_60, %c0_61, %c0_62], %38 {strides = array<i32>} : memref<1x8x16x8xbf16, #tpu.memory_space<vmem>>, vector<1x8x16x8xbf16>,
    %cst_63 = arith.constant dense<0.000000e+00> : vector<8xf32>
    %40 = vector.multi_reduction <add>, %36, %cst_63 [0, 1] : vector<8x16x8xf32> to vector<8xf32>
    %41 = vector.shape_cast %40 : vector<8xf32> to vector<1x1x8xf32>
    %42 = arith.mulf %36, %36 : vector<8x16x8xf32>
    %cst_64 = arith.constant dense<0.000000e+00> : vector<8xf32>
    %43 = vector.multi_reduction <add>, %42, %cst_64 [0, 1] : vector<8x16x8xf32> to vector<8xf32>
    %44 = vector.shape_cast %43 : vector<8xf32> to vector<1x1x8xf32>
    %45 = vector.shape_cast %41 : vector<1x1x8xf32> to vector<1x1x1x8xf32>
    %c0_65 = arith.constant 0 : index
    %c0_66 = arith.constant 0 : index
    %c0_67 = arith.constant 0 : index
    %c0_68 = arith.constant 0 : index
    %46 = vector.load %arg5[%c0_65, %c0_66, %c0_67, %c0_68] : memref<1x1x2x8xf32, #tpu.memory_space<vmem>>, vector<1x1x1x8xf32>
    tpu.vector_store %arg5[%c0_65, %c0_66, %c0_67, %c0_68], %45 {strides = array<i32>} : memref<1x1x2x8xf32, #tpu.memory_space<vmem>>, vector<1x1x1x8xf32>,
    %47 = vector.shape_cast %44 : vector<1x1x8xf32> to vector<1x1x1x8xf32>
    %c0_69 = arith.constant 0 : index
    %c0_70 = arith.constant 0 : index
    %c1_71 = arith.constant 1 : index
    %c0_72 = arith.constant 0 : index
    %48 = vector.load %arg5[%c0_69, %c0_70, %c1_71, %c0_72] : memref<1x1x2x8xf32, #tpu.memory_space<vmem>>, vector<1x1x1x8xf32>
    tpu.vector_store %arg5[%c0_69, %c0_70, %c1_71, %c0_72], %47 {strides = array<i32>} : memref<1x1x2x8xf32, #tpu.memory_space<vmem>>, vector<1x1x1x8xf32>,
    return
  }
  func.func @transform_0(%arg0: i32, %arg1: i32) -> (i32, i32, i32, i32) {
    %c0_i32 = arith.constant 0 : i32
    %c0_i32_0 = arith.constant 0 : i32
    %c0_i32_1 = arith.constant 0 : i32
    %c0_i32_2 = arith.constant 0 : i32
    return %arg0, %c0_i32, %c0_i32_0, %c0_i32_1 : i32, i32, i32, i32
  }
  func.func @transform_1(%arg0: i32, %arg1: i32) -> (i32, i32) {
    %c0_i32 = arith.constant 0 : i32
    %c0_i32_0 = arith.constant 0 : i32
    %c0_i32_1 = arith.constant 0 : i32
    return %c0_i32, %c0_i32_0 : i32, i32
  }
  func.func @transform_2(%arg0: i32, %arg1: i32) -> (i32, i32, i32, i32) {
    %c0_i32 = arith.constant 0 : i32
    %c0_i32_0 = arith.constant 0 : i32
    %c0_i32_1 = arith.constant 0 : i32
    return %arg0, %arg1, %c0_i32, %c0_i32_0 : i32, i32, i32, i32
  }
  func.func @transform_3(%arg0: i32, %arg1: i32) -> (i32, i32, i32, i32) {
    %c0_i32 = arith.constant 0 : i32
    %c0_i32_0 = arith.constant 0 : i32
    %c0_i32_1 = arith.constant 0 : i32
    return %arg0, %arg1, %c0_i32, %c0_i32_0 : i32, i32, i32, i32
  }
}

</mosaic_0001>

<bundles_post_ra>
// kernel: tpu_custom_call.1
= control target key start
LH: loop header
LB: loop body
LE: loop exit
PB: predicated region body
PF: predicated region fallthrough
CT: control target
= control target key end

     0   :  { %9 = vsyncpa [#allocation5], 0  ;;  %s4589_s0 = inlined_call_operand.vmem [shape: bf16[2,16,16,4], index: 0, kind: input, shape index: {}]   ;;  %s4590_s1 = inlined_call_operand.vmem [shape: bf16[36,8], index: 1, kind: input, shape index: {}]   ;;  %s4591_s2 = inlined_call_operand.vmem [shape: bf16[2,16,16,8], index: 2, kind: output, shape index: {0}]   ;;  %s4592_s3 = inlined_call_operand.hbm [shape: f32[2,2,2,8], index: 3, kind: output, shape index: {1}]  }
   0x1   :  { %11 = vsyncpa [#allocation5 + $0x1], 0  ;;  %s3478_s12 = smov 0   ;;  %s3480_s13 = smov 0  }
   0x2   :  { %s3482_s14 = smov 0   ;;  %s3484_s15 = smov 0  }
   0x3   :  { %s3486_s16 = smov 0   ;;  %s3488_s17 = smov 0  }
   0x4   :  { %s3490_s18 = smov 0   ;;  %s3492_s19 = smov 0  }
   0x5 LB: > { %s3151_s20 = sadd.s32 4294967295, %s3446_s19   ;;  %s3152_s21 = sadd.s32 4294967294, %s3446_s19   ;;  %s3446_s19 = sphi %s3492_s19, %s17_s19   ;;  %s3442_s18 = sphi %s3490_s18, %s4621_s18   ;;  %s3438_s17 = sphi %s3488_s17, %s4620_s17   ;;  %s3434_s16 = sphi %s3486_s16, %s4619_s16   ;;  %s3430_s15 = sphi %s3484_s15, %s4618_s15   ;;  %s3426_s14 = sphi %s3482_s14, %s4617_s14   ;;  %s3422_s13 = sphi %s3480_s13, %s4616_s13   ;;  %s3418_s12 = sphi %s3478_s12, %s4615_s12  }
   0x6   : > { %s26_s22 = sadd.s32 1, %s3438_s17  ;;  %s29_s23 = sadd.s32 1, %s3442_s18 }
   0x7   : > { %p27_p0 = scmp.ge.s32.totalorder %s26_s22, 2  ;;  %p123_p1 = scmp.ne.s32.totalorder %s3426_s14, %s3422_s13 }
   0x8   : > { %p124_p2 = scmp.eq.s32.totalorder %s3151_s20, 3  ;;  %p129_p5 = scmp.ne.s32.totalorder %s3422_s13, %s3418_s12 }
   0x9   : > { %s4623_s22 = smov (%p27_p0, %s26_s22), 0  ;;  %s4625_s23 = smov (!%p27_p0, %s29_s23), %s3442_s18 }
   0xa   : > { %s109_s24 = ssub.s32 %s3438_s17, %s4623_s22  ;;  %p3529_p3 = por %p124_p2, %p123_p1 }
   0xb   : > { %p31_p4 = scmp.ge.s32.totalorder %s4625_s23, 2  ;;  %p130_p6 = scmp.eq.s32.totalorder %s3152_s21, 3 }
   0xc   : > { %p3155_p7 = scmp.ge.s32.totalorder %s3446_s19, 1  ;;  %p159_p9 = scmp.lt.s32.totalorder %s3446_s19, 5 }
   0xd   : > { %s4627_s23 = smov (%p31_p4, %s4625_s23), 0  ;;  %p3538_p8 = por %p130_p6, %p129_p5 }
   0xe   : > { %s108_s27 = ssub.s32 %s3442_s18, %s4627_s23  ;;  %s113_s28 = sadd.s32 1, %s3426_s14 }
   0xf   : > { %s110_s29 = sor.u32 %s109_s24, %s108_s27  ;;  %p160_p10 = pnand %p3155_p7, %p159_p9 }
  0x10   : > { %p111_p11 = scmp.eq.s32.totalorder %s110_s29, 0  ;;  %s190_s4 = sand.u32 (!%p160_p10), 1, %s3422_s13  }
  0x11   : > { %163 = sbr.rel (%p160_p10) target bundleno = 819 (0x333), region = 28  ;;  %p193_p12 = scmp.lt.s32.totalorder (!%p160_p10), %s3434_s16, 1 }
  0x12   : > { %s3547_s30 = scalar_select %p111_p11, %s3426_s14, %s113_s28  }
  0x13   : > { %s3553_s5 = sshll.u32 (!%p160_p10), %s190_s4, 1  ;;  %s3556_s6 = sshll.u32 (!%p160_p10), %s3430_s15, 3 }
  0x14   : > { %p201_p13 = scmp.lt.s32.totalorder (!%p160_p10), %s3556_s6, 15  ;;  %p3164_p0 = scmp.ne.s32.totalorder (!%p160_p10), %s3430_s15, 0 }
  0x16   : > { %vm213_vm0 = vcmask 24576   ;;  %vm214_vm1 = vsmask.f32 256  ;;  %v216_v1 = vld [vmem:[#allocation2] sm:$0x1]  ;;  %s194_s7 = scalar_select %p193_p12, %s3434_s16, 1 }
  0x17   : > { %vm3560_vm2 = vmand %vm213_vm0, %vm214_vm1  ;;  %v219_v2 = vld [vmem:[#allocation2 + $0xc] sm:$0x1]  ;;  %v222_v5 = vld [vmem:[#allocation2 + $0x18] sm:$0x1]  ;;  %s202_s8 = scalar_select %p201_p13, %s3556_s6, 15 }
  0x18   : > { %v217_v3 = vsel %vm3560_vm2, 0, %v216_v1  ;;  %v220_v4 = vsel %vm3560_vm2, 0, %v219_v2  ;;  %v223_v6 = vsel %vm3560_vm2, 0, %v222_v5  ;;  %v225_v7 = vld [vmem:[#allocation2 + $0x24] sm:$0x1]  ;;  %s3249_s9 = sshll.u32 %s194_s7, 7 }
  0x19   : > { %218 = vst [vmem:[#allocation2] sm:$0x1] %v217_v3  ;;  %v226_v8 = vsel %vm3560_vm2, 0, %v225_v7  ;;  %v228_v9 = vld [vmem:[#allocation2 + $0x30] sm:$0x1]  ;;  %s3161_s10 = sshll.u32 %s194_s7, 5  ;;  %s3580_s21 = scalar_lea.vmem %s4589_s0, %s3249_s9 }
  0x1a   : > { %221 = vst [vmem:[#allocation2 + $0xc] sm:$0x1] %v220_v4  ;;  %v229_v10 = vsel %vm3560_vm2, 0, %v228_v9  ;;  %s3160_s24 = sshll.u32 %s202_s8, 1  ;;  %v231_v11 = vld [vmem:[#allocation2 + $0x3c] sm:$0x1] }
  0x1b   : > { %224 = vst [vmem:[#allocation2 + $0x18] sm:$0x1] %v223_v6  ;;  %s205_s27 = sadd.s32 %s3161_s10, %s3160_s24  ;;  %v232_v12 = vsel %vm3560_vm2, 0, %v231_v11  ;;  %v234_v13 = vld [vmem:[#allocation2 + $0x48] sm:$0x1]  ;;  %s3624_s8 = scalar_lea.vmem [#allocation4], %s3553_s5 }
  0x1c   : > { %227 = vst [vmem:[#allocation2 + $0x24] sm:$0x1] %v226_v8  ;;  %s3162_s28 = sshll.u32 %s205_s27, 2  ;;  %v235_v14 = vsel %vm3560_vm2, 0, %v234_v13  ;;  %v237_v15 = vld [vmem:[#allocation2 + $0x54] sm:$0x1] }
  0x1d   : > { %230 = vst [vmem:[#allocation2 + $0x30] sm:$0x1] %v229_v10  ;;  %s3589_s9 = scalar_lea.vmem %s4591_s2, %s3162_s28  ;;  %v238_v16 = vsel %vm3560_vm2, 0, %v237_v15  ;;  %v240_v17 = vld [vmem:[#allocation2 + $0x60] sm:$0x1] }
  0x1e   : > { %233 = vst [vmem:[#allocation2 + $0x3c] sm:$0x1] %v232_v12  ;;  %v241_v18 = vsel %vm3560_vm2, 0, %v240_v17  ;;  %v243_v19 = vld [vmem:[#allocation2 + $0x6c] sm:$0x1] }
  0x1f   : > { %236 = vst [vmem:[#allocation2 + $0x48] sm:$0x1] %v235_v14  ;;  %v244_v20 = vsel %vm3560_vm2, 0, %v243_v19  ;;  %vm246_vm3 = vsmask.f32 7938 }
  0x20   : > { %239 = vst [vmem:[#allocation2 + $0x54] sm:$0x1] %v238_v16  ;;  %vm3599_vm4 = vmand %vm213_vm0, %vm246_vm3  ;;  %v248_v22 = vld [vmem:[#allocation2 + $0x8] sm:$0x1]  ;;  %v251_v23 = vld [vmem:[#allocation2 + $0x14] sm:$0x1] }
  0x21   : > { %242 = vst [vmem:[#allocation2 + $0x60] sm:$0x1] %v241_v18  ;;  %v249_v24 = vsel %vm3599_vm4, 0, %v248_v22  ;;  %v252_v25 = vsel %vm3599_vm4, 0, %v251_v23  ;;  %v254_v26 = vld [vmem:[#allocation2 + $0x20] sm:$0x1] }
  0x22   : > { %245 = vst [vmem:[#allocation2 + $0x6c] sm:$0x1] %v244_v20  ;;  %v257_v27 = vld [vmem:[#allocation2 + $0x2c] sm:$0x1]  ;;  %v255_v28 = vsel %vm3599_vm4, 0, %v254_v26 }
  0x23   : > { %250 = vst [vmem:[#allocation2 + $0x8] sm:$0x1] %v249_v24  ;;  %v258_v29 = vsel %vm3599_vm4, 0, %v257_v27  ;;  %v260_v30 = vld [vmem:[#allocation2 + $0x38] sm:$0x1] }
  0x24   : > { %253 = vst [vmem:[#allocation2 + $0x14] sm:$0x1] %v252_v25  ;;  %v261_v31 = vsel %vm3599_vm4, 0, %v260_v30  ;;  %v263_v32 = vld [vmem:[#allocation2 + $0x44] sm:$0x1] }
  0x25   : > { %256 = vst [vmem:[#allocation2 + $0x20] sm:$0x1] %v255_v28  ;;  %v264_v33 = vsel %vm3599_vm4, 0, %v263_v32  ;;  %v266_v34 = vld [vmem:[#allocation2 + $0x50] sm:$0x1] }
  0x26   : > { %259 = vst [vmem:[#allocation2 + $0x2c] sm:$0x1] %v258_v29  ;;  %v267_v35 = vsel %vm3599_vm4, 0, %v266_v34  ;;  %v269_v36 = vld [vmem:[#allocation2 + $0x5c] sm:$0x1] }
  0x27   : > { %262 = vst [vmem:[#allocation2 + $0x38] sm:$0x1] %v261_v31  ;;  %v270_v37 = vsel %vm3599_vm4, 0, %v269_v36  ;;  %v272_v38 = vld [vmem:[#allocation2 + $0x68] sm:$0x1] }
  0x28   : > { %265 = vst [vmem:[#allocation2 + $0x44] sm:$0x1] %v264_v33  ;;  %v273_v39 = vsel %vm3599_vm4, 0, %v272_v38  ;;  %v275_v40 = vld [vmem:[#allocation2 + $0x74] sm:$0x1]  ;;  %280 = sbr.rel (%p3164_p0) target bundleno = 87 (0x57), region = 32 }
  0x29   : > { %268 = vst [vmem:[#allocation2 + $0x50] sm:$0x1] %v267_v35  ;;  %v276_v41 = vsel %vm3599_vm4, 0, %v275_v40 }
  0x2a   : > { %271 = vst [vmem:[#allocation2 + $0x5c] sm:$0x1] %v270_v37 }
  0x2b   : > { %274 = vst [vmem:[#allocation2 + $0x68] sm:$0x1] %v273_v39 }
  0x2c   : > { %277 = vst [vmem:[#allocation2 + $0x74] sm:$0x1] %v276_v41 }
  0x2d   : > { %vm281_vm5 = vcmask 27648   ;;  %v286_v42 = vld [vmem:[%s3580_s21] sm:$0xf]  ;;  %v3448_v43 = vmov 0   ;;  %v287_v46 = vld [vmem:[%s3580_s21 + $0x4] sm:$0xf] }
  0x2e   : > { %282 = vst.msk [vmem:[#allocation2] sm:$0xf] %vm281_vm5, %v3448_v43  ;;  %v307_v44 = vshrl.u32 %v286_v42, 16  ;;  %v310_v45 = vshll.u32 %v286_v42, 16  ;;  %vm304_vm6 = vsmask.f32 4368  ;;  %vm3636_vm7 = vmand %vm281_vm5, %vm246_vm3 }
  0x2f   : > { %283 = vst.msk [vmem:[#allocation2 + $0x4] sm:$0xf] %vm281_vm5, %v3448_v43  ;;  %v315_v47 = vshrl.u32 %v287_v46, 16  ;;  %v318_v48 = vshll.u32 %v287_v46, 16  ;;  %v489_v50 = vld [vmem:[#allocation2 + $0xc] sm:$0xf]  ;;  %vm3642_vm8 = vmor %vm214_vm1, %vm304_vm6 }
  0x30   : > { %285 = vst.msk [vmem:[#allocation2 + $0x8] sm:$0x1] %vm213_vm0, %v3448_v43  ;;  %v309_v49 = vrot.slane %v307_v44, 7  ;;  %v493_v53 = vld [vmem:[#allocation2 + $0x14] sm:$0x1] }
  0x31   : > { %v317_v52 = vrot.slane %v315_v47, 7  ;;  %v288_v54 = vld [vmem:[%s3580_s21 + $0x8] sm:$0xf]  ;;  %v289_v60 = vld [vmem:[%s3580_s21 + $0xc] sm:$0xf] }
  0x32   : > { %v312_v55 = vor.u32 %v310_v45, %v309_v49  ;;  %v313_v57 = vrot.slane %v309_v49, 4  ;;  %v324_v58 = vshrl.u32 %v288_v54, 16  ;;  %v327_v59 = vshll.u32 %v288_v54, 16  ;;  %v496_v63 = vld [vmem:[#allocation2 + $0x18] sm:$0xf] }
  0x33   : > { %v320_v61 = vor.u32 %v318_v48, %v317_v52  ;;  %v322_v62 = vrot.slane %v317_v52, 4  ;;  %v332_v1 = vshrl.u32 %v289_v60, 16  ;;  %v335_v2 = vshll.u32 %v289_v60, 16  ;;  %v500_v5 = vld [vmem:[#allocation2 + $0x20] sm:$0x1] }
  0x34   : > { %v490_v3 = vsel %vm3636_vm7, %v312_v55, %v489_v50  ;;  %v326_v4 = vrot.slane %v324_v58, 7  ;;  %v290_v6 = vld [vmem:[%s3580_s21 + $0x10] sm:$0xf]  ;;  %v291_v11 = vld [vmem:[%s3580_s21 + $0x14] sm:$0xf] }
  0x35   : > { %491 = vst [vmem:[#allocation2 + $0xc] sm:$0xf] %v490_v3  ;;  %v321_v7 = vsel %vm3642_vm8, %v313_v57, %v320_v61  ;;  %v494_v8 = vsel %vm3560_vm2, %v322_v62, %v493_v53  ;;  %v334_v9 = vrot.slane %v332_v1, 7  ;;  %v341_v10 = vshrl.u32 %v290_v6, 16  ;;  %v503_v21 = vld [vmem:[#allocation2 + $0x24] sm:$0xf] }
  0x36   : > { %492 = vst.msk [vmem:[#allocation2 + $0x10] sm:$0xf] %vm281_vm5, %v321_v7  ;;  %v329_v12 = vor.u32 %v327_v59, %v326_v4  ;;  %v330_v13 = vrot.slane %v326_v4, 4  ;;  %v344_v14 = vshll.u32 %v290_v6, 16  ;;  %v349_v15 = vshrl.u32 %v291_v11, 16 }
  0x37   : > { %495 = vst [vmem:[#allocation2 + $0x14] sm:$0x1] %v494_v8  ;;  %v337_v16 = vor.u32 %v335_v2, %v334_v9  ;;  %v339_v17 = vrot.slane %v334_v9, 4  ;;  %v343_v18 = vrot.slane %v341_v10, 7  ;;  %v352_v19 = vshll.u32 %v291_v11, 16 }
  0x38   : > { %v497_v20 = vsel %vm3636_vm7, %v329_v12, %v496_v63  ;;  %v351_v22 = vrot.slane %v349_v15, 7  ;;  %v292_v23 = vld [vmem:[%s3580_s21 + $0x18] sm:$0xf]  ;;  %v507_v28 = vld [vmem:[#allocation2 + $0x2c] sm:$0x1] }
  0x39   : > { %498 = vst [vmem:[#allocation2 + $0x18] sm:$0xf] %v497_v20  ;;  %v338_v24 = vsel %vm3642_vm8, %v330_v13, %v337_v16  ;;  %v501_v25 = vsel %vm3560_vm2, %v339_v17, %v500_v5  ;;  %v346_v26 = vor.u32 %v344_v14, %v343_v18  ;;  %v347_v27 = vrot.slane %v343_v18, 4  ;;  %v510_v34 = vld [vmem:[#allocation2 + $0x30] sm:$0xf] }
  0x3a   : > { %499 = vst.msk [vmem:[#allocation2 + $0x1c] sm:$0xf] %vm281_vm5, %v338_v24  ;;  %v354_v29 = vor.u32 %v352_v19, %v351_v22  ;;  %v356_v30 = vrot.slane %v351_v22, 4  ;;  %v358_v31 = vshrl.u32 %v292_v23, 16  ;;  %v361_v32 = vshll.u32 %v292_v23, 16 }
  0x3b   : > { %502 = vst [vmem:[#allocation2 + $0x20] sm:$0x1] %v501_v25  ;;  %v504_v33 = vsel %vm3636_vm7, %v346_v26, %v503_v21  ;;  %v293_v35 = vld [vmem:[%s3580_s21 + $0x1c] sm:$0xf]  ;;  %v294_v40 = vld [vmem:[%s3580_s21 + $0x20] sm:$0xf] }
  0x3c   : > { %505 = vst [vmem:[#allocation2 + $0x24] sm:$0xf] %v504_v33  ;;  %v355_v36 = vsel %vm3642_vm8, %v347_v27, %v354_v29  ;;  %v508_v37 = vsel %vm3560_vm2, %v356_v30, %v507_v28  ;;  %v360_v38 = vrot.slane %v358_v31, 7  ;;  %v366_v39 = vshrl.u32 %v293_v35, 16  ;;  %v514_v47 = vld [vmem:[#allocation2 + $0x38] sm:$0x1] }
  0x3d   : > { %506 = vst.msk [vmem:[#allocation2 + $0x28] sm:$0xf] %vm281_vm5, %v355_v36  ;;  %v369_v41 = vshll.u32 %v293_v35, 16  ;;  %v375_v42 = vshrl.u32 %v294_v40, 16  ;;  %v378_v43 = vshll.u32 %v294_v40, 16 }
  0x3e   : > { %509 = vst [vmem:[#allocation2 + $0x2c] sm:$0x1] %v508_v37  ;;  %v363_v44 = vor.u32 %v361_v32, %v360_v38  ;;  %v364_v45 = vrot.slane %v360_v38, 4  ;;  %v368_v46 = vrot.slane %v366_v39, 7  ;;  %v295_v49 = vld [vmem:[%s3580_s21 + $0x24] sm:$0xf] }
  0x3f   : > { %v377_v48 = vrot.slane %v375_v42, 7  ;;  %v517_v54 = vld [vmem:[#allocation2 + $0x3c] sm:$0xf]  ;;  %v383_v55 = vshrl.u32 %v295_v49, 16  ;;  %v296_v57 = vld [vmem:[%s3580_s21 + $0x28] sm:$0xf] }
  0x40   : > { %v511_v50 = vsel %vm3636_vm7, %v363_v44, %v510_v34  ;;  %v371_v52 = vor.u32 %v369_v41, %v368_v46  ;;  %v373_v53 = vrot.slane %v368_v46, 4  ;;  %v386_v60 = vshll.u32 %v295_v49, 16  ;;  %v521_v61 = vld [vmem:[#allocation2 + $0x44] sm:$0x1]  ;;  %v524_v4 = vld [vmem:[#allocation2 + $0x48] sm:$0xf] }
  0x41   : > { %512 = vst [vmem:[#allocation2 + $0x30] sm:$0xf] %v511_v50  ;;  %v380_v58 = vor.u32 %v378_v43, %v377_v48  ;;  %v381_v59 = vrot.slane %v377_v48, 4  ;;  %v392_v62 = vshrl.u32 %v296_v57, 16  ;;  %v385_v2 = vrot.slane %v383_v55, 7 }
  0x42   : > { %v372_v63 = vsel %vm3642_vm8, %v364_v45, %v371_v52  ;;  %v515_v1 = vsel %vm3560_vm2, %v373_v53, %v514_v47  ;;  %v395_v3 = vshll.u32 %v296_v57, 16  ;;  %v297_v5 = vld [vmem:[%s3580_s21 + $0x2c] sm:$0xf]  ;;  %v298_v12 = vld [vmem:[%s3580_s21 + $0x30] sm:$0xf] }
  0x43   : > { %513 = vst.msk [vmem:[#allocation2 + $0x34] sm:$0xf] %vm281_vm5, %v372_v63  ;;  %v518_v6 = vsel %vm3636_vm7, %v380_v58, %v517_v54  ;;  %v394_v7 = vrot.slane %v392_v62, 7  ;;  %v400_v8 = vshrl.u32 %v297_v5, 16  ;;  %v403_v9 = vshll.u32 %v297_v5, 16 }
  0x44   : > { %516 = vst [vmem:[#allocation2 + $0x38] sm:$0x1] %v515_v1  ;;  %v388_v10 = vor.u32 %v386_v60, %v385_v2  ;;  %v390_v11 = vrot.slane %v385_v2, 4  ;;  %v409_v16 = vshrl.u32 %v298_v12, 16  ;;  %v528_v19 = vld [vmem:[#allocation2 + $0x50] sm:$0x1] }
  0x45   : > { %519 = vst [vmem:[#allocation2 + $0x3c] sm:$0xf] %v518_v6  ;;  %v397_v13 = vor.u32 %v395_v3, %v394_v7  ;;  %v398_v14 = vrot.slane %v394_v7, 4  ;;  %v402_v15 = vrot.slane %v400_v8, 7  ;;  %v412_v20 = vshll.u32 %v298_v12, 16 }
  0x46   : > { %v389_v17 = vsel %vm3642_vm8, %v381_v59, %v388_v10  ;;  %v522_v18 = vsel %vm3560_vm2, %v390_v11, %v521_v61  ;;  %v299_v21 = vld [vmem:[%s3580_s21 + $0x34] sm:$0xf]  ;;  %v411_v25 = vrot.slane %v409_v16, 7  ;;  %v300_v29 = vld [vmem:[%s3580_s21 + $0x38] sm:$0xf] }
  0x47   : > { %520 = vst.msk [vmem:[#allocation2 + $0x40] sm:$0xf] %vm281_vm5, %v389_v17  ;;  %v525_v22 = vsel %vm3636_vm7, %v397_v13, %v524_v4  ;;  %v405_v23 = vor.u32 %v403_v9, %v402_v15  ;;  %v407_v24 = vrot.slane %v402_v15, 4  ;;  %v531_v26 = vld [vmem:[#allocation2 + $0x54] sm:$0xf]  ;;  %v417_v27 = vshrl.u32 %v299_v21, 16 }
  0x48   : > { %523 = vst [vmem:[#allocation2 + $0x44] sm:$0x1] %v522_v18  ;;  %v420_v28 = vshll.u32 %v299_v21, 16  ;;  %v414_v32 = vor.u32 %v412_v20, %v411_v25  ;;  %v415_v33 = vrot.slane %v411_v25, 4  ;;  %v426_v35 = vshrl.u32 %v300_v29, 16 }
  0x49   : > { %526 = vst [vmem:[#allocation2 + $0x48] sm:$0xf] %v525_v22  ;;  %v406_v30 = vsel %vm3642_vm8, %v398_v14, %v405_v23  ;;  %v529_v31 = vsel %vm3560_vm2, %v407_v24, %v528_v19  ;;  %v419_v34 = vrot.slane %v417_v27, 7  ;;  %v429_v36 = vshll.u32 %v300_v29, 16  ;;  %v535_v38 = vld [vmem:[#allocation2 + $0x5c] sm:$0x1] }
  0x4a   : > { %527 = vst.msk [vmem:[#allocation2 + $0x4c] sm:$0xf] %vm281_vm5, %v406_v30  ;;  %v532_v37 = vsel %vm3636_vm7, %v414_v32, %v531_v26  ;;  %v301_v39 = vld [vmem:[%s3580_s21 + $0x3c] sm:$0xf]  ;;  %v428_v42 = vrot.slane %v426_v35, 7 }
  0x4b   : > { %530 = vst [vmem:[#allocation2 + $0x50] sm:$0x1] %v529_v31  ;;  %v422_v40 = vor.u32 %v420_v28, %v419_v34  ;;  %v424_v41 = vrot.slane %v419_v34, 4  ;;  %v434_v43 = vshrl.u32 %v301_v39, 16  ;;  %v538_v44 = vld [vmem:[#allocation2 + $0x60] sm:$0xf] }
  0x4c   : > { %533 = vst [vmem:[#allocation2 + $0x54] sm:$0xf] %v532_v37  ;;  %v437_v45 = vshll.u32 %v301_v39, 16  ;;  %v302_v46 = vld [vmem:[%s3580_s21 + $0x40] sm:$0xf]  ;;  %v431_v49 = vor.u32 %v429_v36, %v428_v42  ;;  %v432_v50 = vrot.slane %v428_v42, 4 }
  0x4d   : > { %v423_v47 = vsel %vm3642_vm8, %v415_v33, %v422_v40  ;;  %v536_v48 = vsel %vm3560_vm2, %v424_v41, %v535_v38  ;;  %v303_v52 = vld [vmem:[%s3580_s21 + $0x44] sm:$0xf]  ;;  %v436_v53 = vrot.slane %v434_v43, 7  ;;  %v443_v54 = vshrl.u32 %v302_v46, 16  ;;  %v542_v59 = vld [vmem:[#allocation2 + $0x68] sm:$0x1] }
  0x4e   : > { %534 = vst.msk [vmem:[#allocation2 + $0x58] sm:$0xf] %vm281_vm5, %v423_v47  ;;  %v446_v55 = vshll.u32 %v302_v46, 16  ;;  %v451_v57 = vshrl.u32 %v303_v52, 16  ;;  %v539_v58 = vsel %vm3636_vm7, %v431_v49, %v538_v44  ;;  %v454_v60 = vshll.u32 %v303_v52, 16 }
  0x4f   : > { %537 = vst [vmem:[#allocation2 + $0x5c] sm:$0x1] %v536_v48  ;;  %v439_v61 = vor.u32 %v437_v45, %v436_v53  ;;  %v441_v62 = vrot.slane %v436_v53, 4  ;;  %v445_v63 = vrot.slane %v443_v54, 7  ;;  %v545_v2 = vld [vmem:[#allocation2 + $0x6c] sm:$0xf] }
  0x50   : > { %540 = vst [vmem:[#allocation2 + $0x60] sm:$0xf] %v539_v58  ;;  %v453_v1 = vrot.slane %v451_v57, 7  ;;  %v549_v7 = vld [vmem:[#allocation2 + $0x74] sm:$0x1] }
  0x51   : > { %v440_v3 = vsel %vm3642_vm8, %v432_v50, %v439_v61  ;;  %v543_v4 = vsel %vm3560_vm2, %v441_v62, %v542_v59  ;;  %v448_v5 = vor.u32 %v446_v55, %v445_v63  ;;  %v449_v6 = vrot.slane %v445_v63, 4 }
  0x52   : > { %541 = vst.msk [vmem:[#allocation2 + $0x64] sm:$0xf] %vm281_vm5, %v440_v3  ;;  %v456_v8 = vor.u32 %v454_v60, %v453_v1  ;;  %v458_v9 = vrot.slane %v453_v1, 4 }
  0x53   : > { %544 = vst [vmem:[#allocation2 + $0x68] sm:$0x1] %v543_v4  ;;  %v546_v10 = vsel %vm3636_vm7, %v448_v5, %v545_v2 }
  0x54   : > { %547 = vst [vmem:[#allocation2 + $0x6c] sm:$0xf] %v546_v10  ;;  %v457_v11 = vsel %vm3642_vm8, %v449_v6, %v456_v8  ;;  %v550_v12 = vsel %vm3560_vm2, %v458_v9, %v549_v7 }
  0x55   : > { %548 = vst.msk [vmem:[#allocation2 + $0x70] sm:$0xf] %vm281_vm5, %v457_v11 }
  0x56   : > { %551 = vst [vmem:[#allocation2 + $0x74] sm:$0x1] %v550_v12 }
  0x57 PF: > { %p3165_p1 = scmp.ne.s32.totalorder %s3430_s15, 1 }
  0x58   : > { %s3166_s5 = sadd.s32 (!%p3165_p1), 4294967295, %s3556_s6 }
  0x59   : > { %554 = sbr.rel (%p3165_p1) target bundleno = 136 (0x88), region = 36  ;;  %s3250_s10 = sshll.u32 (!%p3165_p1), %s3166_s5, 3 }
  0x5a   : > { %s3731_s11 = scalar_lea.vmem (!%p3165_p1), %s3580_s21, %s3250_s10 }
  0x5e   : > { %vm556_vm9 = vcmask 27648   ;;  %v3449_v51 = vmov 0   ;;  %vm583_vm10 = vsmask.f32 4368  ;;  %v565_v56 = vld [vmem:[%s3731_s11] sm:$0xf] }
  0x5f   : > { %557 = vst.msk [vmem:[#allocation2 + $0x6c] sm:$0xf] %vm556_vm9, %v3449_v51  ;;  %v566_v13 = vld [vmem:[%s3731_s11 + $0x4] sm:$0xf]  ;;  %v586_v14 = vshrl.u32 %v565_v56, 16  ;;  %v589_v15 = vshll.u32 %v565_v56, 16  ;;  %vm3740_vm11 = vmand %vm556_vm9, %vm246_vm3 }
  0x60   : > { %558 = vst.msk [vmem:[#allocation2 + $0x70] sm:$0xf] %vm556_vm9, %v3449_v51  ;;  %v594_v16 = vshrl.u32 %v566_v13, 16  ;;  %v597_v17 = vshll.u32 %v566_v13, 16  ;;  %v567_v18 = vld [vmem:[%s3731_s11 + $0x8] sm:$0xf]  ;;  %vm3747_vm12 = vmor %vm214_vm1, %vm583_vm10 }
  0x61   : > { %560 = vst.msk [vmem:[#allocation2 + $0x74] sm:$0x1] %vm213_vm0, %v3449_v51  ;;  %v767_v19 = vld [vmem:[#allocation2] sm:$0xf]  ;;  %v603_v20 = vshrl.u32 %v567_v18, 16  ;;  %v606_v21 = vshll.u32 %v567_v18, 16 }
  0x62   : > { %v568_v22 = vld [vmem:[%s3731_s11 + $0xc] sm:$0xf]  ;;  %v588_v23 = vrot.slane %v586_v14, 7  ;;  %v596_v25 = vrot.slane %v594_v16, 7  ;;  %v569_v27 = vld [vmem:[%s3731_s11 + $0x10] sm:$0xf] }
  0x63   : > { %v611_v26 = vshrl.u32 %v568_v22, 16  ;;  %v771_v29 = vld [vmem:[#allocation2 + $0x8] sm:$0x1]  ;;  %v605_v30 = vrot.slane %v603_v20, 7  ;;  %v614_v31 = vshll.u32 %v568_v22, 16  ;;  %v620_v32 = vshrl.u32 %v569_v27, 16 }
  0x64   : > { %v623_v33 = vshll.u32 %v569_v27, 16  ;;  %v591_v34 = vor.u32 %v589_v15, %v588_v23  ;;  %v592_v35 = vrot.slane %v588_v23, 4  ;;  %v599_v36 = vor.u32 %v597_v17, %v596_v25  ;;  %v774_v38 = vld [vmem:[#allocation2 + $0xc] sm:$0xf]  ;;  %v570_v39 = vld [vmem:[%s3731_s11 + $0x14] sm:$0xf] }
  0x65   : > { %v601_v37 = vrot.slane %v596_v25, 4  ;;  %v608_v40 = vor.u32 %v606_v21, %v605_v30  ;;  %v609_v41 = vrot.slane %v605_v30, 4  ;;  %v613_v42 = vrot.slane %v611_v26, 7  ;;  %v571_v44 = vld [vmem:[%s3731_s11 + $0x18] sm:$0xf] }
  0x66   : > { %v622_v43 = vrot.slane %v620_v32, 7  ;;  %v768_v45 = vsel %vm3740_vm11, %v591_v34, %v767_v19  ;;  %v600_v46 = vsel %vm3747_vm12, %v592_v35, %v599_v36  ;;  %v778_v48 = vld [vmem:[#allocation2 + $0x14] sm:$0x1]  ;;  %v781_v49 = vld [vmem:[#allocation2 + $0x18] sm:$0xf]  ;;  %v628_v50 = vshrl.u32 %v570_v39, 16 }
  0x67   : > { %v772_v47 = vsel %vm3560_vm2, %v601_v37, %v771_v29  ;;  %769 = vst [vmem:[#allocation2] sm:$0xf] %v768_v45  ;;  %v775_v52 = vsel %vm3740_vm11, %v608_v40, %v774_v38  ;;  %v616_v53 = vor.u32 %v614_v31, %v613_v42  ;;  %v618_v54 = vrot.slane %v613_v42, 4  ;;  %v785_v57 = vld [vmem:[#allocation2 + $0x20] sm:$0x1] }
  0x68   : > { %v625_v55 = vor.u32 %v623_v33, %v622_v43  ;;  %v572_v58 = vld [vmem:[%s3731_s11 + $0x1c] sm:$0xf]  ;;  %770 = vst.msk [vmem:[#allocation2 + $0x4] sm:$0xf] %vm556_vm9, %v600_v46  ;;  %v626_v59 = vrot.slane %v622_v43, 4  ;;  %v630_v60 = vrot.slane %v628_v50, 7 }
  0x69   : > { %v631_v61 = vshll.u32 %v570_v39, 16  ;;  %v637_v62 = vshrl.u32 %v571_v44, 16  ;;  %773 = vst [vmem:[#allocation2 + $0x8] sm:$0x1] %v772_v47  ;;  %v617_v63 = vsel %vm3747_vm12, %v609_v41, %v616_v53  ;;  %v779_v1 = vsel %vm3560_vm2, %v618_v54, %v778_v48  ;;  %v788_v4 = vld [vmem:[#allocation2 + $0x24] sm:$0xf] }
  0x6a   : > { %v782_v2 = vsel %vm3740_vm11, %v625_v55, %v781_v49  ;;  %v640_v3 = vshll.u32 %v571_v44, 16  ;;  %v573_v5 = vld [vmem:[%s3731_s11 + $0x20] sm:$0xf]  ;;  %776 = vst [vmem:[#allocation2 + $0xc] sm:$0xf] %v775_v52  ;;  %v635_v7 = vrot.slane %v630_v60, 4 }
  0x6b   : > { %v633_v6 = vor.u32 %v631_v61, %v630_v60  ;;  %v639_v8 = vrot.slane %v637_v62, 7  ;;  %v645_v9 = vshrl.u32 %v572_v58, 16  ;;  %777 = vst.msk [vmem:[#allocation2 + $0x10] sm:$0xf] %vm556_vm9, %v617_v63  ;;  %v648_v10 = vshll.u32 %v572_v58, 16 }
  0x6c   : > { %v654_v11 = vshrl.u32 %v573_v5, 16  ;;  %v657_v12 = vshll.u32 %v573_v5, 16  ;;  %780 = vst [vmem:[#allocation2 + $0x14] sm:$0x1] %v779_v1  ;;  %v786_v56 = vsel %vm3560_vm2, %v635_v7, %v785_v57  ;;  %v792_v15 = vld [vmem:[#allocation2 + $0x2c] sm:$0x1] }
  0x6d   : > { %v634_v51 = vsel %vm3747_vm12, %v626_v59, %v633_v6  ;;  %v642_v13 = vor.u32 %v640_v3, %v639_v8  ;;  %v643_v14 = vrot.slane %v639_v8, 4  ;;  %783 = vst [vmem:[#allocation2 + $0x18] sm:$0xf] %v782_v2  ;;  %v647_v16 = vrot.slane %v645_v9, 7  ;;  %v574_v18 = vld [vmem:[%s3731_s11 + $0x24] sm:$0xf] }
  0x6e   : > { %v656_v17 = vrot.slane %v654_v11, 7  ;;  %784 = vst.msk [vmem:[#allocation2 + $0x1c] sm:$0xf] %vm556_vm9, %v634_v51  ;;  %v795_v20 = vld [vmem:[#allocation2 + $0x30] sm:$0xf]  ;;  %v662_v21 = vshrl.u32 %v574_v18, 16 }
  0x6f   : > { %v789_v19 = vsel %vm3740_vm11, %v642_v13, %v788_v4  ;;  %v665_v22 = vshll.u32 %v574_v18, 16  ;;  %787 = vst [vmem:[#allocation2 + $0x20] sm:$0x1] %v786_v56  ;;  %v650_v23 = vor.u32 %v648_v10, %v647_v16  ;;  %v652_v25 = vrot.slane %v647_v16, 4  ;;  %v575_v27 = vld [vmem:[%s3731_s11 + $0x28] sm:$0xf] }
  0x70   : > { %v659_v26 = vor.u32 %v657_v12, %v656_v17  ;;  %790 = vst [vmem:[#allocation2 + $0x24] sm:$0xf] %v789_v19  ;;  %v660_v29 = vrot.slane %v656_v17, 4  ;;  %v664_v30 = vrot.slane %v662_v21, 7  ;;  %v671_v31 = vshrl.u32 %v575_v27, 16 }
  0x71   : > { %v674_v32 = vshll.u32 %v575_v27, 16  ;;  %v651_v33 = vsel %vm3747_vm12, %v643_v14, %v650_v23  ;;  %v793_v34 = vsel %vm3560_vm2, %v652_v25, %v792_v15  ;;  %v799_v36 = vld [vmem:[#allocation2 + $0x38] sm:$0x1]  ;;  %v802_v37 = vld [vmem:[#allocation2 + $0x3c] sm:$0xf] }
  0x72   : > { %v796_v35 = vsel %vm3740_vm11, %v659_v26, %v795_v20  ;;  %v576_v38 = vld [vmem:[%s3731_s11 + $0x2c] sm:$0xf]  ;;  %791 = vst.msk [vmem:[#allocation2 + $0x28] sm:$0xf] %vm556_vm9, %v651_v33  ;;  %v667_v39 = vor.u32 %v665_v22, %v664_v30  ;;  %v669_v40 = vrot.slane %v664_v30, 4  ;;  %v673_v41 = vrot.slane %v671_v31, 7 }
  0x73   : > { %v679_v42 = vshrl.u32 %v576_v38, 16  ;;  %794 = vst [vmem:[#allocation2 + $0x2c] sm:$0x1] %v793_v34  ;;  %v682_v43 = vshll.u32 %v576_v38, 16  ;;  %v577_v44 = vld [vmem:[%s3731_s11 + $0x30] sm:$0xf] }
  0x74   : > { %797 = vst [vmem:[#allocation2 + $0x30] sm:$0xf] %v796_v35  ;;  %v668_v45 = vsel %vm3747_vm12, %v660_v29, %v667_v39  ;;  %v800_v46 = vsel %vm3560_vm2, %v669_v40, %v799_v36  ;;  %v676_v47 = vor.u32 %v674_v32, %v673_v41  ;;  %v677_v48 = vrot.slane %v673_v41, 4  ;;  %v806_v54 = vld [vmem:[#allocation2 + $0x44] sm:$0x1] }
  0x75   : > { %798 = vst.msk [vmem:[#allocation2 + $0x34] sm:$0xf] %vm556_vm9, %v668_v45  ;;  %v681_v49 = vrot.slane %v679_v42, 7  ;;  %v688_v50 = vshrl.u32 %v577_v44, 16  ;;  %v691_v52 = vshll.u32 %v577_v44, 16 }
  0x76   : > { %801 = vst [vmem:[#allocation2 + $0x38] sm:$0x1] %v800_v46  ;;  %v803_v53 = vsel %vm3740_vm11, %v676_v47, %v802_v37  ;;  %v578_v55 = vld [vmem:[%s3731_s11 + $0x34] sm:$0xf]  ;;  %v809_v61 = vld [vmem:[#allocation2 + $0x48] sm:$0xf] }
  0x77   : > { %804 = vst [vmem:[#allocation2 + $0x3c] sm:$0xf] %v803_v53  ;;  %v684_v57 = vor.u32 %v682_v43, %v681_v49  ;;  %v686_v58 = vrot.slane %v681_v49, 4  ;;  %v690_v59 = vrot.slane %v688_v50, 7  ;;  %v696_v60 = vshrl.u32 %v578_v55, 16 }
  0x78   : > { %v699_v62 = vshll.u32 %v578_v55, 16  ;;  %v579_v63 = vld [vmem:[%s3731_s11 + $0x38] sm:$0xf]  ;;  %v813_v5 = vld [vmem:[#allocation2 + $0x50] sm:$0x1] }
  0x79   : > { %v685_v1 = vsel %vm3747_vm12, %v677_v48, %v684_v57  ;;  %v807_v2 = vsel %vm3560_vm2, %v686_v58, %v806_v54  ;;  %v693_v3 = vor.u32 %v691_v52, %v690_v59  ;;  %v694_v4 = vrot.slane %v690_v59, 4  ;;  %v580_v6 = vld [vmem:[%s3731_s11 + $0x3c] sm:$0xf]  ;;  %v581_v51 = vld [vmem:[%s3731_s11 + $0x40] sm:$0xf] }
  0x7a   : > { %805 = vst.msk [vmem:[#allocation2 + $0x40] sm:$0xf] %vm556_vm9, %v685_v1  ;;  %v698_v7 = vrot.slane %v696_v60, 7  ;;  %v705_v8 = vshrl.u32 %v579_v63, 16  ;;  %v708_v9 = vshll.u32 %v579_v63, 16  ;;  %v713_v10 = vshrl.u32 %v580_v6, 16 }
  0x7b   : > { %808 = vst [vmem:[#allocation2 + $0x44] sm:$0x1] %v807_v2  ;;  %v810_v11 = vsel %vm3740_vm11, %v693_v3, %v809_v61  ;;  %v716_v12 = vshll.u32 %v580_v6, 16  ;;  %v816_v16 = vld [vmem:[#allocation2 + $0x54] sm:$0xf]  ;;  %v722_v17 = vshrl.u32 %v581_v51, 16 }
  0x7c   : > { %811 = vst [vmem:[#allocation2 + $0x48] sm:$0xf] %v810_v11  ;;  %v701_v56 = vor.u32 %v699_v62, %v698_v7  ;;  %v703_v13 = vrot.slane %v698_v7, 4  ;;  %v707_v14 = vrot.slane %v705_v8, 7  ;;  %v715_v15 = vrot.slane %v713_v10, 7 }
  0x7d   : > { %v725_v18 = vshll.u32 %v581_v51, 16  ;;  %v582_v19 = vld [vmem:[%s3731_s11 + $0x44] sm:$0xf]  ;;  %v820_v25 = vld [vmem:[#allocation2 + $0x5c] sm:$0x1]  ;;  %v724_v29 = vrot.slane %v722_v17, 7 }
  0x7e   : > { %v702_v20 = vsel %vm3747_vm12, %v694_v4, %v701_v56  ;;  %v814_v21 = vsel %vm3560_vm2, %v703_v13, %v813_v5  ;;  %v710_v22 = vor.u32 %v708_v9, %v707_v14  ;;  %v711_v23 = vrot.slane %v707_v14, 4  ;;  %v823_v32 = vld [vmem:[#allocation2 + $0x60] sm:$0xf]  ;;  %v827_v40 = vld [vmem:[#allocation2 + $0x68] sm:$0x1] }
  0x7f   : > { %812 = vst.msk [vmem:[#allocation2 + $0x4c] sm:$0xf] %vm556_vm9, %v702_v20  ;;  %v718_v26 = vor.u32 %v716_v12, %v715_v15  ;;  %v720_v27 = vrot.slane %v715_v15, 4  ;;  %v730_v30 = vshrl.u32 %v582_v19, 16  ;;  %v733_v33 = vshll.u32 %v582_v19, 16 }
  0x80   : > { %815 = vst [vmem:[#allocation2 + $0x50] sm:$0x1] %v814_v21  ;;  %v817_v31 = vsel %vm3740_vm11, %v710_v22, %v816_v16  ;;  %v727_v36 = vor.u32 %v725_v18, %v724_v29  ;;  %v728_v37 = vrot.slane %v724_v29, 4 }
  0x81   : > { %818 = vst [vmem:[#allocation2 + $0x54] sm:$0xf] %v817_v31  ;;  %v719_v34 = vsel %vm3747_vm12, %v711_v23, %v718_v26  ;;  %v821_v35 = vsel %vm3560_vm2, %v720_v27, %v820_v25  ;;  %v732_v38 = vrot.slane %v730_v30, 7 }
  0x82   : > { %819 = vst.msk [vmem:[#allocation2 + $0x58] sm:$0xf] %vm556_vm9, %v719_v34  ;;  %v824_v39 = vsel %vm3740_vm11, %v727_v36, %v823_v32 }
  0x83   : > { %822 = vst [vmem:[#allocation2 + $0x5c] sm:$0x1] %v821_v35  ;;  %v735_v41 = vor.u32 %v733_v33, %v732_v38  ;;  %v737_v42 = vrot.slane %v732_v38, 4 }
  0x84   : > { %825 = vst [vmem:[#allocation2 + $0x60] sm:$0xf] %v824_v39 }
  0x85   : > { %v736_v43 = vsel %vm3747_vm12, %v728_v37, %v735_v41  ;;  %v828_v44 = vsel %vm3560_vm2, %v737_v42, %v827_v40 }
  0x86   : > { %826 = vst.msk [vmem:[#allocation2 + $0x64] sm:$0xf] %vm556_vm9, %v736_v43 }
  0x87   : > { %829 = vst [vmem:[#allocation2 + $0x68] sm:$0x1] %v828_v44 }
  0x88 PF: > { %p832_p2 = pnand %p3165_p1, %p3164_p0 }
  0x89   : > { %s3169_s20 = sadd.s32 (!%p832_p2), 4294967295, %s3556_s6 }
  0x8a   : > { %835 = sbr.rel (%p832_p2) target bundleno = 188 (0xbc), region = 40  ;;  %s3251_s24 = sshll.u32 (!%p832_p2), %s3169_s20, 3 }
  0x8b   : > { %s3833_s27 = scalar_lea.vmem (!%p832_p2), %s3580_s21, %s3251_s24 }
  0x8f   : > { %vm1062_vm13 = vcmask 27648   ;;  %vm860_vm14 = vsmask.f32 4368  ;;  %v840_v24 = vld [vmem:[%s3833_s27] sm:$0xf] }
  0x90   : > { %v841_v28 = vld [vmem:[%s3833_s27 + $0x4] sm:$0xf]  ;;  %v842_v45 = vld [vmem:[%s3833_s27 + $0x8] sm:$0xf]  ;;  %v863_v46 = vshrl.u32 %v840_v24, 16  ;;  %v866_v47 = vshll.u32 %v840_v24, 16  ;;  %vm3842_vm15 = vmand %vm1062_vm13, %vm246_vm3 }
  0x91   : > { %v871_v48 = vshrl.u32 %v841_v28, 16  ;;  %v874_v49 = vshll.u32 %v841_v28, 16  ;;  %v843_v50 = vld [vmem:[%s3833_s27 + $0xc] sm:$0xf]  ;;  %v1064_v52 = vld [vmem:[#allocation2] sm:$0xf]  ;;  %vm3849_vm0 = vmor %vm214_vm1, %vm860_vm14 }
  0x92   : > { %v880_v53 = vshrl.u32 %v842_v45, 16  ;;  %v883_v54 = vshll.u32 %v842_v45, 16  ;;  %v888_v55 = vshrl.u32 %v843_v50, 16  ;;  %v891_v57 = vshll.u32 %v843_v50, 16  ;;  %v844_v58 = vld [vmem:[%s3833_s27 + $0x10] sm:$0xf] }
  0x93   : > { %v865_v59 = vrot.slane %v863_v46, 7  ;;  %v873_v61 = vrot.slane %v871_v48, 7  ;;  %v897_v62 = vshrl.u32 %v844_v58, 16  ;;  %v900_v63 = vshll.u32 %v844_v58, 16  ;;  %v845_v1 = vld [vmem:[%s3833_s27 + $0x14] sm:$0xf] }
  0x94   : > { %v1069_v3 = vld [vmem:[#allocation2 + $0x8] sm:$0x1]  ;;  %v882_v4 = vrot.slane %v880_v53, 7  ;;  %v890_v5 = vrot.slane %v888_v55, 7  ;;  %v905_v6 = vshrl.u32 %v845_v1, 16  ;;  %v908_v7 = vshll.u32 %v845_v1, 16 }
  0x95   : > { %v868_v8 = vor.u32 %v866_v47, %v865_v59  ;;  %v869_v9 = vrot.slane %v865_v59, 4  ;;  %v876_v10 = vor.u32 %v874_v49, %v873_v61  ;;  %v878_v11 = vrot.slane %v873_v61, 4  ;;  %v1072_v12 = vld [vmem:[#allocation2 + $0xc] sm:$0xf]  ;;  %v1076_v51 = vld [vmem:[#allocation2 + $0x14] sm:$0x1] }
  0x96   : > { %v885_v56 = vor.u32 %v883_v54, %v882_v4  ;;  %v886_v13 = vrot.slane %v882_v4, 4  ;;  %v893_v14 = vor.u32 %v891_v57, %v890_v5  ;;  %v895_v15 = vrot.slane %v890_v5, 4  ;;  %v1079_v16 = vld [vmem:[#allocation2 + $0x18] sm:$0xf]  ;;  %v1083_v22 = vld [vmem:[#allocation2 + $0x20] sm:$0x1] }
  0x97   : > { %v846_v17 = vld [vmem:[%s3833_s27 + $0x18] sm:$0xf]  ;;  %v1065_v18 = vsel %vm3842_vm15, %v868_v8, %v1064_v52  ;;  %v877_v19 = vsel %vm3849_vm0, %v869_v9, %v876_v10  ;;  %v1070_v20 = vsel %vm3560_vm2, %v878_v11, %v1069_v3  ;;  %v899_v21 = vrot.slane %v897_v62, 7  ;;  %v847_v23 = vld [vmem:[%s3833_s27 + $0x1c] sm:$0xf] }
  0x98   : > { %v848_v25 = vld [vmem:[%s3833_s27 + $0x20] sm:$0xf]  ;;  %1066 = vst [vmem:[#allocation2] sm:$0xf] %v1065_v18  ;;  %v1073_v26 = vsel %vm3842_vm15, %v885_v56, %v1072_v12  ;;  %v894_v27 = vsel %vm3849_vm0, %v886_v13, %v893_v14  ;;  %v1077_v29 = vsel %vm3560_vm2, %v895_v15, %v1076_v51  ;;  %v907_v30 = vrot.slane %v905_v6, 7 }
  0x99   : > { %v849_v31 = vld [vmem:[%s3833_s27 + $0x24] sm:$0xf]  ;;  %1068 = vst.msk [vmem:[#allocation2 + $0x4] sm:$0xf] %vm1062_vm13, %v877_v19  ;;  %v902_v32 = vor.u32 %v900_v63, %v899_v21  ;;  %v903_v33 = vrot.slane %v899_v21, 4  ;;  %v914_v34 = vshrl.u32 %v846_v17, 16 }
  0x9a   : > { %v917_v35 = vshll.u32 %v846_v17, 16  ;;  %1071 = vst [vmem:[#allocation2 + $0x8] sm:$0x1] %v1070_v20  ;;  %v910_v36 = vor.u32 %v908_v7, %v907_v30  ;;  %v912_v37 = vrot.slane %v907_v30, 4  ;;  %v1086_v38 = vld [vmem:[#allocation2 + $0x24] sm:$0xf] }
  0x9b   : > { %v922_v39 = vshrl.u32 %v847_v23, 16  ;;  %v925_v40 = vshll.u32 %v847_v23, 16  ;;  %1074 = vst [vmem:[#allocation2 + $0xc] sm:$0xf] %v1073_v26  ;;  %v1080_v41 = vsel %vm3842_vm15, %v902_v32, %v1079_v16  ;;  %v916_v42 = vrot.slane %v914_v34, 7 }
  0x9c   : > { %v1090_v43 = vld [vmem:[#allocation2 + $0x2c] sm:$0x1]  ;;  %v931_v44 = vshrl.u32 %v848_v25, 16  ;;  %v934_v24 = vshll.u32 %v848_v25, 16  ;;  %1075 = vst.msk [vmem:[#allocation2 + $0x10] sm:$0xf] %vm1062_vm13, %v894_v27  ;;  %v911_v28 = vsel %vm3849_vm0, %v903_v33, %v910_v36  ;;  %v1084_v45 = vsel %vm3560_vm2, %v912_v37, %v1083_v22 }
  0x9d   : > { %v924_v46 = vrot.slane %v922_v39, 7  ;;  %v1093_v47 = vld [vmem:[#allocation2 + $0x30] sm:$0xf]  ;;  %v939_v48 = vshrl.u32 %v849_v31, 16  ;;  %1078 = vst [vmem:[#allocation2 + $0x14] sm:$0x1] %v1077_v29  ;;  %v919_v49 = vor.u32 %v917_v35, %v916_v42 }
  0x9e   : > { %v920_v50 = vrot.slane %v916_v42, 4  ;;  %v933_v52 = vrot.slane %v931_v44, 7  ;;  %v942_v53 = vshll.u32 %v849_v31, 16  ;;  %1081 = vst [vmem:[#allocation2 + $0x18] sm:$0xf] %v1080_v41 }
  0x9f   : > { %v927_v54 = vor.u32 %v925_v40, %v924_v46  ;;  %v929_v55 = vrot.slane %v924_v46, 4  ;;  %v941_v57 = vrot.slane %v939_v48, 7  ;;  %v850_v58 = vld [vmem:[%s3833_s27 + $0x28] sm:$0xf]  ;;  %1082 = vst.msk [vmem:[#allocation2 + $0x1c] sm:$0xf] %vm1062_vm13, %v911_v28  ;;  %v1087_v59 = vsel %vm3842_vm15, %v919_v49, %v1086_v38 }
  0xa0   : > { %v936_v61 = vor.u32 %v934_v24, %v933_v52  ;;  %v937_v62 = vrot.slane %v933_v52, 4  ;;  %v1097_v63 = vld [vmem:[#allocation2 + $0x38] sm:$0x1]  ;;  %v948_v1 = vshrl.u32 %v850_v58, 16  ;;  %1085 = vst [vmem:[#allocation2 + $0x20] sm:$0x1] %v1084_v45 }
  0xa1   : > { %v928_v3 = vsel %vm3849_vm0, %v920_v50, %v927_v54  ;;  %v1091_v4 = vsel %vm3560_vm2, %v929_v55, %v1090_v43  ;;  %v944_v5 = vor.u32 %v942_v53, %v941_v57  ;;  %v946_v6 = vrot.slane %v941_v57, 4  ;;  %v851_v7 = vld [vmem:[%s3833_s27 + $0x2c] sm:$0xf]  ;;  %1088 = vst [vmem:[#allocation2 + $0x24] sm:$0xf] %v1087_v59 }
  0xa2   : > { %v1094_v8 = vsel %vm3842_vm15, %v936_v61, %v1093_v47  ;;  %v950_v9 = vrot.slane %v948_v1, 7  ;;  %v951_v10 = vshll.u32 %v850_v58, 16  ;;  %v956_v11 = vshrl.u32 %v851_v7, 16  ;;  %1089 = vst.msk [vmem:[#allocation2 + $0x28] sm:$0xf] %vm1062_vm13, %v928_v3 }
  0xa3   : > { %v945_v12 = vsel %vm3849_vm0, %v937_v62, %v944_v5  ;;  %v1100_v51 = vld [vmem:[#allocation2 + $0x3c] sm:$0xf]  ;;  %v959_v56 = vshll.u32 %v851_v7, 16  ;;  %1092 = vst [vmem:[#allocation2 + $0x2c] sm:$0x1] %v1091_v4  ;;  %v1098_v13 = vsel %vm3560_vm2, %v946_v6, %v1097_v63 }
  0xa4   : > { %v953_v14 = vor.u32 %v951_v10, %v950_v9  ;;  %v954_v15 = vrot.slane %v950_v9, 4  ;;  %v958_v16 = vrot.slane %v956_v11, 7  ;;  %v852_v17 = vld [vmem:[%s3833_s27 + $0x30] sm:$0xf]  ;;  %1095 = vst [vmem:[#allocation2 + $0x30] sm:$0xf] %v1094_v8 }
  0xa5   : > { %v1104_v18 = vld [vmem:[#allocation2 + $0x44] sm:$0x1]  ;;  %v965_v19 = vshrl.u32 %v852_v17, 16  ;;  %v968_v20 = vshll.u32 %v852_v17, 16  ;;  %1096 = vst.msk [vmem:[#allocation2 + $0x34] sm:$0xf] %vm1062_vm13, %v945_v12 }
  0xa6   : > { %v1101_v21 = vsel %vm3842_vm15, %v953_v14, %v1100_v51  ;;  %v961_v22 = vor.u32 %v959_v56, %v958_v16  ;;  %v963_v23 = vrot.slane %v958_v16, 4  ;;  %v853_v25 = vld [vmem:[%s3833_s27 + $0x34] sm:$0xf]  ;;  %1099 = vst [vmem:[#allocation2 + $0x38] sm:$0x1] %v1098_v13 }
  0xa7   : > { %v967_v26 = vrot.slane %v965_v19, 7  ;;  %v973_v27 = vshrl.u32 %v853_v25, 16  ;;  %v976_v29 = vshll.u32 %v853_v25, 16  ;;  %1102 = vst [vmem:[#allocation2 + $0x3c] sm:$0xf] %v1101_v21 }
  0xa8   : > { %v962_v30 = vsel %vm3849_vm0, %v954_v15, %v961_v22  ;;  %v1105_v31 = vsel %vm3560_vm2, %v963_v23, %v1104_v18  ;;  %v1107_v32 = vld [vmem:[#allocation2 + $0x48] sm:$0xf]  ;;  %v854_v33 = vld [vmem:[%s3833_s27 + $0x38] sm:$0xf]  ;;  %v1111_v38 = vld [vmem:[#allocation2 + $0x50] sm:$0x1] }
  0xa9   : > { %1103 = vst.msk [vmem:[#allocation2 + $0x40] sm:$0xf] %vm1062_vm13, %v962_v30  ;;  %v970_v34 = vor.u32 %v968_v20, %v967_v26  ;;  %v971_v35 = vrot.slane %v967_v26, 4  ;;  %v975_v36 = vrot.slane %v973_v27, 7  ;;  %v982_v37 = vshrl.u32 %v854_v33, 16 }
  0xaa   : > { %1106 = vst [vmem:[#allocation2 + $0x44] sm:$0x1] %v1105_v31  ;;  %v985_v39 = vshll.u32 %v854_v33, 16  ;;  %v1114_v44 = vld [vmem:[#allocation2 + $0x54] sm:$0xf] }
  0xab   : > { %v1108_v40 = vsel %vm3842_vm15, %v970_v34, %v1107_v32  ;;  %v978_v41 = vor.u32 %v976_v29, %v975_v36  ;;  %v980_v42 = vrot.slane %v975_v36, 4  ;;  %v984_v43 = vrot.slane %v982_v37, 7  ;;  %v855_v24 = vld [vmem:[%s3833_s27 + $0x3c] sm:$0xf]  ;;  %v856_v46 = vld [vmem:[%s3833_s27 + $0x40] sm:$0xf] }
  0xac   : > { %1109 = vst [vmem:[#allocation2 + $0x48] sm:$0xf] %v1108_v40  ;;  %v990_v28 = vshrl.u32 %v855_v24, 16  ;;  %v993_v45 = vshll.u32 %v855_v24, 16  ;;  %v857_v52 = vld [vmem:[%s3833_s27 + $0x44] sm:$0xf] }
  0xad   : > { %v979_v47 = vsel %vm3849_vm0, %v971_v35, %v978_v41  ;;  %v1112_v48 = vsel %vm3560_vm2, %v980_v42, %v1111_v38  ;;  %v987_v49 = vor.u32 %v985_v39, %v984_v43  ;;  %v988_v50 = vrot.slane %v984_v43, 4  ;;  %v1118_v59 = vld [vmem:[#allocation2 + $0x5c] sm:$0x1]  ;;  %v1121_v4 = vld [vmem:[#allocation2 + $0x60] sm:$0xf] }
  0xae   : > { %1110 = vst.msk [vmem:[#allocation2 + $0x4c] sm:$0xf] %vm1062_vm13, %v979_v47  ;;  %v992_v53 = vrot.slane %v990_v28, 7  ;;  %v999_v54 = vshrl.u32 %v856_v46, 16  ;;  %v1002_v55 = vshll.u32 %v856_v46, 16  ;;  %v1007_v57 = vshrl.u32 %v857_v52, 16 }
  0xaf   : > { %1113 = vst [vmem:[#allocation2 + $0x50] sm:$0x1] %v1112_v48  ;;  %v1115_v58 = vsel %vm3842_vm15, %v987_v49, %v1114_v44  ;;  %v1010_v61 = vshll.u32 %v857_v52, 16  ;;  %v858_v5 = vld [vmem:[%s3833_s27 + $0x48] sm:$0xf] }
  0xb0   : > { %1116 = vst [vmem:[#allocation2 + $0x54] sm:$0xf] %v1115_v58  ;;  %v995_v62 = vor.u32 %v993_v45, %v992_v53  ;;  %v997_v63 = vrot.slane %v992_v53, 4  ;;  %v1001_v1 = vrot.slane %v999_v54, 7  ;;  %v1009_v3 = vrot.slane %v1007_v57, 7 }
  0xb1   : > { %v859_v6 = vld [vmem:[%s3833_s27 + $0x4c] sm:$0xf]  ;;  %v1125_v11 = vld [vmem:[#allocation2 + $0x68] sm:$0x1]  ;;  %v1016_v56 = vshrl.u32 %v858_v5, 16  ;;  %v1019_v13 = vshll.u32 %v858_v5, 16 }
  0xb2   : > { %v996_v7 = vsel %vm3849_vm0, %v988_v50, %v995_v62  ;;  %v1119_v8 = vsel %vm3560_vm2, %v997_v63, %v1118_v59  ;;  %v1004_v9 = vor.u32 %v1002_v55, %v1001_v1  ;;  %v1005_v10 = vrot.slane %v1001_v1, 4  ;;  %v1128_v20 = vld [vmem:[#allocation2 + $0x6c] sm:$0xf]  ;;  %v1132_v25 = vld [vmem:[#allocation2 + $0x74] sm:$0x1] }
  0xb3   : > { %1117 = vst.msk [vmem:[#allocation2 + $0x58] sm:$0xf] %vm1062_vm13, %v996_v7  ;;  %v1012_v12 = vor.u32 %v1010_v61, %v1009_v3  ;;  %v1014_v51 = vrot.slane %v1009_v3, 4  ;;  %v1024_v15 = vshrl.u32 %v859_v6, 16  ;;  %v1027_v16 = vshll.u32 %v859_v6, 16 }
  0xb4   : > { %1120 = vst [vmem:[#allocation2 + $0x5c] sm:$0x1] %v1119_v8  ;;  %v1122_v14 = vsel %vm3842_vm15, %v1004_v9, %v1121_v4  ;;  %v1018_v19 = vrot.slane %v1016_v56, 7 }
  0xb5   : > { %1123 = vst [vmem:[#allocation2 + $0x60] sm:$0xf] %v1122_v14  ;;  %v1013_v17 = vsel %vm3849_vm0, %v1005_v10, %v1012_v12  ;;  %v1126_v18 = vsel %vm3560_vm2, %v1014_v51, %v1125_v11  ;;  %v1026_v21 = vrot.slane %v1024_v15, 7 }
  0xb6   : > { %1124 = vst.msk [vmem:[#allocation2 + $0x64] sm:$0xf] %vm1062_vm13, %v1013_v17  ;;  %v1021_v22 = vor.u32 %v1019_v13, %v1018_v19  ;;  %v1022_v23 = vrot.slane %v1018_v19, 4 }
  0xb7   : > { %1127 = vst [vmem:[#allocation2 + $0x68] sm:$0x1] %v1126_v18  ;;  %v1029_v26 = vor.u32 %v1027_v16, %v1026_v21  ;;  %v1031_v27 = vrot.slane %v1026_v21, 4 }
  0xb8   : > { %v1129_v29 = vsel %vm3842_vm15, %v1021_v22, %v1128_v20 }
  0xb9   : > { %1130 = vst [vmem:[#allocation2 + $0x6c] sm:$0xf] %v1129_v29  ;;  %v1030_v30 = vsel %vm3849_vm0, %v1022_v23, %v1029_v26  ;;  %v1133_v31 = vsel %vm3560_vm2, %v1031_v27, %v1132_v25 }
  0xba   : > { %1131 = vst.msk [vmem:[#allocation2 + $0x70] sm:$0xf] %vm1062_vm13, %v1030_v30 }
  0xbb   : > { %1134 = vst [vmem:[#allocation2 + $0x74] sm:$0x1] %v1133_v31 }
  0xbc PF: > { %v1171_v32 = vld [vmem:[#allocation2 + $0xc] sm:$0xf]  ;;  %v1172_v33 = vld [vmem:[#allocation2 + $0x10] sm:$0xf]  ;;  %vm1192_vm1 = vsmask.f32 3328 }
  0xbd   : > { %vm1193_vm3 = vsmask.f32 7440  ;;  %v1220_v34 = vshrl.u32 %v1171_v32, 16  ;;  %v1223_v35 = vshll.u32 %v1171_v32, 16  ;;  %v1229_v36 = vshll.u32 %v1172_v33, 16  ;;  %s3450_s6 = smov 4  }
  0xbe   : > { %v1233_v60 = vshrl.u32 %v1172_v33, 16  ;;  %v1168_v37 = vld [vmem:[#allocation2] sm:$0xf]  ;;  %v1169_v38 = vld [vmem:[#allocation2 + $0x4] sm:$0xf]  ;;  %vm3939_vm2 = vmor %vm1192_vm1, %vm1193_vm3  ;;  %vm1500_vm4 = vcmask 1042432  }
  0xbf   : > { %v1222_v39 = vrot.slane %v1220_v34, 4  ;;  %v1225_v2 = vrot.slane %v1223_v35, 5  ;;  %v1196_v40 = vshrl.u32 %v1168_v37, 16  ;;  %v1173_v41 = vld [vmem:[#allocation2 + $0x14] sm:$0x1]  ;;  %v1199_v42 = vshll.u32 %v1168_v37, 16 }
  0xc0   : > { %v1235_v0 = vrot.slane %v1233_v60, 4  ;;  %v1205_v43 = vshll.u32 %v1169_v38, 16  ;;  %v1209_v44 = vshrl.u32 %v1169_v38, 16  ;;  %v1231_v28 = vrot.slane %v1229_v36, 5  ;;  %v1170_v46 = vld [vmem:[#allocation2 + $0x8] sm:$0x1] }
  0xc1   : > { %v1226_v24 = vor.u32 %v1225_v2, %v1222_v39  ;;  %v1198_v45 = vrot.slane %v1196_v40, 4  ;;  %v1178_v47 = vld [vmem:[#allocation2 + $0x28] sm:$0xf]  ;;  %v1201_v49 = vrot.slane %v1199_v42, 5  ;;  %v1239_v52 = vshll.u32 %v1173_v41, 16  ;;  %s3451_s21 = smov 8  }
  0xc2   : > { %v1211_v50 = vrot.slane %v1209_v44, 4  ;;  %v1207_v54 = vrot.slane %v1205_v43, 5  ;;  %v1236_v55 = vor.u32 %v1235_v0, %v1231_v28  ;;  %v1277_v57 = vshll.u32 %v1178_v47, 16  ;;  %v1177_v58 = vld [vmem:[#allocation2 + $0x24] sm:$0xf]  ;;  %s3452_s28 = smov 12  }
  0xc3   : > { %v1227_v53 = vrot.slane %v1226_v24, 4  ;;  %v1202_v59 = vor.u32 %v1201_v49, %v1198_v45  ;;  %v1215_v61 = vshll.u32 %v1170_v46, 16  ;;  %v1281_v62 = vshrl.u32 %v1178_v47, 16  ;;  %v1174_v63 = vld [vmem:[#allocation2 + $0x18] sm:$0xf]  ;;  %s3453_s29 = smov 20  }
  0xc4   : > { %v1212_v3 = vor.u32 %v1211_v50, %v1207_v54  ;;  %v1179_v4 = vld [vmem:[#allocation2 + $0x2c] sm:$0x1]  ;;  %v3946_v6 = vrot.slane %v1277_v57, 5  ;;  %v1268_v8 = vshrl.u32 %v1177_v58, 16  ;;  %v1175_v9 = vld [vmem:[#allocation2 + $0x1c] sm:$0xf] }
  0xc5   : > { %v1232_v1 = vsel %vm3939_vm2, %v1227_v53, %v1231_v28  ;;  %v1203_v5 = vrot.slane %v1202_v59, 4  ;;  %v1283_v7 = vrot.slane %v1281_v62, 4  ;;  %v1237_v10 = vrot.slane %v1236_v55, 4  ;;  %v1183_v16 = vld [vmem:[#allocation2 + $0x3c] sm:$0xf]  ;;  %s3454_s7 = smov 16  }
  0xc6   : > { %1391 = vrot.lane.b32.xlu1 %v1232_v1, %s3450_s6  ;;  %v1241_v11 = vrot.slane %v1239_v52, 5  ;;  %v1271_v12 = vshll.u32 %v1177_v58, 16  ;;  %v1244_v51 = vshrl.u32 %v1174_v63, 16  ;;  %v1217_v13 = vrot.slane %v1215_v61, 5  ;;  %v1181_v26 = vld [vmem:[#allocation2 + $0x34] sm:$0xf] }
  0xc7   : > { %v1208_v56 = vsel %vm3939_vm2, %v1203_v5, %v1207_v54  ;;  %v1287_v14 = vshll.u32 %v1179_v4, 16  ;;  %v1247_v15 = vshll.u32 %v1174_v63, 16  ;;  %v1213_v17 = vrot.slane %v1212_v3, 4  ;;  %v1176_v34 = vld [vmem:[#allocation2 + $0x20] sm:$0x1]  ;;  %s3455_s5 = smov 24  }
  0xc8   : > { %1387 = vrot.lane.b32.xlu0 %v1208_v56, %s3450_s6  ;;  %v1246_v18 = vrot.slane %v1244_v51, 4  ;;  %v1253_v19 = vshll.u32 %v1175_v9, 16  ;;  %v1257_v20 = vshrl.u32 %v1175_v9, 16  ;;  %v1284_v21 = vor.u32 %v1283_v7, %v3946_v6  ;;  %v1184_v40 = vld [vmem:[#allocation2 + $0x40] sm:$0xf]  ;;  %s3456_s10 = smov 32  }
  0xc9   : > { %v1270_v22 = vrot.slane %v1268_v8, 4  ;;  %v1273_v23 = vrot.slane %v1271_v12, 5  ;;  %v1249_v25 = vrot.slane %v1247_v15, 5  ;;  %v1242_v27 = vsel %vm3939_vm2, %v1237_v10, %v1241_v11  ;;  %v1187_v45 = vld [vmem:[#allocation2 + $0x4c] sm:$0xf]  ;;  %s3457_s11 = smov 28  }
  0xca   : > { %v1259_v29 = vrot.slane %v1257_v20, 4  ;;  %v1316_v30 = vshrl.u32 %v1183_v16, 16  ;;  %v1319_v31 = vshll.u32 %v1183_v16, 16  ;;  %v1255_v33 = vrot.slane %v1253_v19, 5  ;;  %v1182_v46 = vld [vmem:[#allocation2 + $0x38] sm:$0x1] }
  0xcb   : > { %v1250_v32 = vor.u32 %v1249_v25, %v1246_v18  ;;  %v1218_v35 = vsel %vm3939_vm2, %v1213_v17, %v1217_v13  ;;  %v1289_v36 = vrot.slane %v1287_v14, 5  ;;  %v1301_v60 = vshll.u32 %v1181_v26, 16  ;;  %v1180_v47 = vld [vmem:[#allocation2 + $0x30] sm:$0xf]  ;;  %v1186_v54 = vld [vmem:[#allocation2 + $0x48] sm:$0xf] }
  0xcc   : > { %v1285_v37 = vrot.slane %v1284_v21, 4  ;;  %v1274_v38 = vor.u32 %v1273_v23, %v1270_v22  ;;  %v1305_v2 = vshrl.u32 %v1181_v26, 16  ;;  %v1318_v41 = vrot.slane %v1316_v30, 4  ;;  %v1188_v15 = vld [vmem:[#allocation2 + $0x50] sm:$0x1]  ;;  %s3372_s20 = scalar_lea.hbm %s4592_s3, 8 }
  0xcd   : > { %v1251_v39 = vrot.slane %v1250_v32, 4  ;;  %v1321_v0 = vrot.slane %v1319_v31, 5  ;;  %v1260_v42 = vor.u32 %v1259_v29, %v1255_v33  ;;  %v1263_v43 = vshll.u32 %v1176_v34, 16  ;;  %v1190_v19 = vld [vmem:[#allocation2 + $0x58] sm:$0xf] }
  0xce   : > { %1393 = vrot.lane.b32.xlu1 %v1242_v27, %s3450_s6  ;;  %v1303_v24 = vrot.slane %v1301_v60, 5  ;;  %v1307_v28 = vrot.slane %v1305_v2, 4  ;;  %v1275_v49 = vrot.slane %v1274_v38, 4  ;;  %v1325_v50 = vshll.u32 %v1184_v40, 16  ;;  %v1185_v25 = vld [vmem:[#allocation2 + $0x44] sm:$0x1] }
  0xcf   : > { %v1256_v44 = vsel %vm3939_vm2, %v1251_v39, %v1255_v33  ;;  %v1261_v52 = vrot.slane %v1260_v42, 4  ;;  %v1265_v53 = vrot.slane %v1263_v43, 5  ;;  %v1290_v55 = vsel %vm3939_vm2, %v1285_v37, %v1289_v36  ;;  %v1189_v26 = vld [vmem:[#allocation2 + $0x54] sm:$0xf] }
  0xd0   : > { %1389 = vrot.lane.b32.xlu0 %v1218_v35, %s3450_s6  ;;  %1395 = vrot.lane.b32.xlu2 %v1256_v44, %s3450_s6  ;;  %v1322_v57 = vor.u32 %v1321_v0, %v1318_v41  ;;  %v1349_v58 = vshll.u32 %v1187_v45, 16  ;;  %v1353_v59 = vshrl.u32 %v1187_v45, 16  ;;  %v1308_v61 = vor.u32 %v1307_v28, %v1303_v24  ;;  %v1453_v28 = vld [vmem:[#allocation2 + $0x4] sm:$0xf] }
  0xd1   : > { %v1311_v62 = vshll.u32 %v1182_v46, 16  ;;  %v1292_v63 = vshrl.u32 %v1180_v47, 16  ;;  %v1329_v1 = vshrl.u32 %v1184_v40, 16  ;;  %v1340_v3 = vshrl.u32 %v1186_v54, 16  ;;  %v1191_v40 = vld [vmem:[#allocation2 + $0x5c] sm:$0x1] }
  0xd2   : > { %v1343_v4 = vshll.u32 %v1186_v54, 16  ;;  %v1295_v5 = vshll.u32 %v1180_v47, 16  ;;  %v1280_v7 = vsel %vm3939_vm2, %v1275_v49, %v3946_v6  ;;  %v1327_v8 = vrot.slane %v1325_v50, 5 }
  0xd3   : > { %v1266_v9 = vsel %vm3939_vm2, %v1261_v52, %v1265_v53  ;;  %v1294_v10 = vrot.slane %v1292_v63, 4  ;;  %v1323_v11 = vrot.slane %v1322_v57, 4  ;;  %v1351_v12 = vrot.slane %v1349_v58, 5  ;;  %v1457_v63 = vld [vmem:[#allocation2 + $0x14] sm:$0x1] }
  0xd4   : > { %v1355_v51 = vrot.slane %v1353_v59, 4  ;;  %v1297_v56 = vrot.slane %v1295_v5, 5  ;;  %v1309_v13 = vrot.slane %v1308_v61, 4  ;;  %v1313_v14 = vrot.slane %v1311_v62, 5 }
  0xd5   : > { %v1342_v16 = vrot.slane %v1340_v3, 4  ;;  %v1345_v17 = vrot.slane %v1343_v4, 5  ;;  %v1331_v6 = vrot.slane %v1329_v1, 4  ;;  %v1328_v20 = vsel %vm3939_vm2, %v1323_v11, %v1327_v8 }
  0xd6   : > { %1401 = vrot.lane.b32.xlu1 %v1290_v55, %s3450_s6  ;;  %v1298_v18 = vor.u32 %v1297_v56, %v1294_v10  ;;  %v1356_v21 = vor.u32 %v1355_v51, %v1351_v12  ;;  %v1359_v22 = vshll.u32 %v1188_v15, 16  ;;  %v1314_v27 = vsel %vm3939_vm2, %v1309_v13, %v1313_v14  ;;  %v1456_v55 = vld [vmem:[#allocation2 + $0x10] sm:$0xf]  ;;  %v1459_v51 = vld [vmem:[#allocation2 + $0x1c] sm:$0xf] }
  0xd7   : > { %v1346_v29 = vor.u32 %v1345_v17, %v1342_v16  ;;  %v1373_v30 = vshll.u32 %v1190_v19, 16  ;;  %v1377_v31 = vshrl.u32 %v1190_v19, 16  ;;  %v1332_v32 = vor.u32 %v1331_v6, %v1327_v8  ;;  %v1454_v8 = vld [vmem:[#allocation2 + $0x8] sm:$0x1]  ;;  %v1461_v56 = vld [vmem:[#allocation2 + $0x24] sm:$0xe] }
  0xd8   : > { %1399 = vrot.lane.b32.xlu0 %v1280_v7, %s3450_s6  ;;  %1397 = vrot.lane.b32.xlu2 %v1266_v9, %s3450_s6  ;;  %v1299_v23 = vrot.slane %v1298_v18, 4  ;;  %v1335_v34 = vshll.u32 %v1185_v25, 16  ;;  %v1364_v35 = vshrl.u32 %v1189_v26, 16  ;;  %v1367_v36 = vshll.u32 %v1189_v26, 16  ;;  %v1455_v7 = vld [vmem:[#allocation2 + $0xc] sm:$0xe] }
  0xd9   : > { %v1357_v60 = vrot.slane %v1356_v21, 4  ;;  %v1361_v37 = vrot.slane %v1359_v22, 5  ;;  %v1347_v38 = vrot.slane %v1346_v29, 4  ;;  %v1375_v39 = vrot.slane %v1373_v30, 5  ;;  %v1462_v13 = vld [vmem:[#allocation2 + $0x28] sm:$0xf] }
  0xda   : > { %v1304_v33 = vsel %vm3939_vm2, %v1299_v23, %v1303_v24  ;;  %v1379_v2 = vrot.slane %v1377_v31, 4  ;;  %v1333_v41 = vrot.slane %v1332_v32, 4  ;;  %v1337_v0 = vrot.slane %v1335_v34, 5  ;;  %v1452_v24 = vld [vmem:[#allocation2] sm:$0xe] }
  0xdb   : > { %v1366_v42 = vrot.slane %v1364_v35, 4  ;;  %v1369_v43 = vrot.slane %v1367_v36, 5  ;;  %v1362_v44 = vsel %vm3939_vm2, %v1357_v60, %v1361_v37  ;;  %vm1501_vm5 = vcmask 1046532   ;;  %v1460_v6 = vld [vmem:[#allocation2 + $0x20] sm:$0x1] }
  0xdc   : > { %v1383_v45 = vshll.u32 %v1191_v40, 16  ;;  %v1352_v46 = vsel %vm3939_vm2, %v1347_v38, %v1351_v12  ;;  %v1380_v47 = vor.u32 %v1379_v2, %v1375_v39  ;;  %v1338_v49 = vsel %vm3939_vm2, %v1333_v41, %v1337_v0  ;;  %vm3987_vm6 = vmor %vm1500_vm4, %vm1501_vm5  ;;  %v1458_v19 = vld [vmem:[#allocation2 + $0x18] sm:$0xe]  ;;  %v1463_v34 = vld [vmem:[#allocation2 + $0x2c] sm:$0x1] }
  0xdd   : > { %v1370_v50 = vor.u32 %v1369_v43, %v1366_v42  ;;  %v3172_v52 = vrot.slane %v1452_v24, 9  ;;  %v1505_v53 = vrot.slane %v1453_v28, 5  ;;  %v1512_v62 = vrot.slane %v1456_v55, 5  ;;  %v1468_v38 = vld [vmem:[#allocation2 + $0x40] sm:$0xf] }
  0xde   : > { %1407 = vrot.lane.b32.xlu1 %v1328_v20, %s3450_s6  ;;  %v1381_v57 = vrot.slane %v1380_v47, 4  ;;  %v1385_v58 = vrot.slane %v1383_v45, 5  ;;  %v1515_v5 = vrot.slane %v1457_v63, 5  ;;  %v3173_v9 = vrot.slane %v1455_v7, 9  ;;  %v1465_v20 = vld [vmem:[#allocation2 + $0x34] sm:$0xf] }
  0xdf   : > { %v1371_v59 = vrot.slane %v1370_v50, 4  ;;  %v1506_v61 = vsel %vm3987_vm6, %v3172_v52, %v1505_v53  ;;  %v1514_v4 = vrot.slane %v1512_v62, 4  ;;  %v1507_v10 = vrot.slane %v1505_v53, 4  ;;  %v1471_v2 = vld [vmem:[#allocation2 + $0x4c] sm:$0xf] }
  0xe0   : > { %1405 = vrot.lane.b32.xlu0 %v1314_v27, %s3450_s6  ;;  %1403 = vrot.lane.b32.xlu2 %v1304_v33, %s3450_s6  ;;  %v1386_v1 = vsel %vm3939_vm2, %v1381_v57, %v1385_v58  ;;  %v1508_v11 = vrot.slane %v1454_v8, 5  ;;  %v1513_v14 = vsel %vm3987_vm6, %v3173_v9, %v1512_v62  ;;  %v1519_v15 = vrot.slane %v1459_v51, 5  ;;  %v1466_v27 = vld [vmem:[#allocation2 + $0x38] sm:$0x1]  ;;  %v1464_v33 = vld [vmem:[#allocation2 + $0x30] sm:$0xe] }
  0xe1   : > { %v1376_v3 = vsel %vm3939_vm2, %v1371_v59, %v1375_v39  ;;  %v1516_v12 = vsel %vm3987_vm6, %v1514_v4, %v1515_v5  ;;  %v3175_v17 = vrot.slane %v1461_v56, 9  ;;  %v1526_v18 = vrot.slane %v1462_v13, 5  ;;  %v1470_v39 = vld [vmem:[#allocation2 + $0x48] sm:$0xe]  ;;  %v1467_v24 = vld [vmem:[#allocation2 + $0x3c] sm:$0xe] }
  0xe2   : > { %v1509_v16 = vsel %vm3987_vm6, %v1507_v10, %v1508_v11  ;;  %v1521_v21 = vrot.slane %v1519_v15, 4  ;;  %v1522_v22 = vrot.slane %v1460_v6, 5  ;;  %v3174_v23 = vrot.slane %v1458_v19, 9  ;;  %v1474_v28 = vld [vmem:[#allocation2 + $0x58] sm:$0xf] }
  0xe3   : > { %v1527_v25 = vsel %vm3987_vm6, %v3175_v17, %v1526_v18  ;;  %v1533_v26 = vrot.slane %v1465_v20, 5  ;;  %v1536_v32 = vrot.slane %v1466_v27, 5  ;;  %v3176_v35 = vrot.slane %v1464_v33, 9  ;;  %v1475_v52 = vld [vmem:[#allocation2 + $0x5c] sm:$0x1] }
  0xe4   : > { %v1523_v29 = vsel %vm3987_vm6, %v1521_v21, %v1522_v22  ;;  %v1520_v30 = vsel %vm3987_vm6, %v3174_v23, %v1519_v15  ;;  %v1528_v36 = vrot.slane %v1526_v18, 4  ;;  %v1529_v60 = vrot.slane %v1463_v34, 5  ;;  %v1473_v59 = vld [vmem:[#allocation2 + $0x54] sm:$0xe]  ;;  %v1139_v7 = vld [vmem:[#allocation2 + $0x18] sm:$0xf] }
  0xe5   : > { %v1535_v31 = vrot.slane %v1533_v26, 4  ;;  %v1534_v40 = vsel %vm3987_vm6, %v3176_v35, %v1533_v26  ;;  %v1540_v41 = vrot.slane %v1468_v38, 5  ;;  %v3178_v42 = vrot.slane %v1470_v39, 9  ;;  %v1137_v8 = vld [vmem:[#allocation2 + $0xc] sm:$0xf] }
  0xe6   : > { %1413 = vrot.lane.b32.xlu1 %v1362_v44, %s3450_s6  ;;  %v1530_v0 = vsel %vm3987_vm6, %v1528_v36, %v1529_v60  ;;  %v1547_v43 = vrot.slane %v1471_v2, 5  ;;  %v1469_v44 = vld [vmem:[#allocation2 + $0x44] sm:$0x1]  ;;  %v3177_v47 = vrot.slane %v1467_v24, 9  ;;  %v1554_v50 = vrot.slane %v1474_v28, 5 }
  0xe7   : > { %v1537_v37 = vsel %vm3987_vm6, %v1535_v31, %v1536_v32  ;;  %v1542_v45 = vrot.slane %v1540_v41, 4  ;;  %v1557_v58 = vrot.slane %v1475_v52, 5  ;;  %v3179_v62 = vrot.slane %v1473_v59, 9  ;;  %v1135_v9 = vld [vmem:[#allocation2] sm:$0xf] }
  0xe8   : > { %1411 = vrot.lane.b32.xlu0 %v1352_v46, %s3450_s6  ;;  %1409 = vrot.lane.b32.xlu2 %v1338_v49, %s3450_s6  ;;  %v1543_v46 = vrot.slane %v1469_v44, 5  ;;  %v1548_v49 = vsel %vm3987_vm6, %v3178_v42, %v1547_v43  ;;  %v1541_v55 = vsel %vm3987_vm6, %v3177_v47, %v1540_v41  ;;  %v1556_v57 = vrot.slane %v1554_v50, 4  ;;  %v1627_v10 = vld [vmem:[#allocation2 + $0x18] sm:$0xf]  ;;  %v1626_v11 = vld [vmem:[#allocation2 + $0x10] sm:$0xf] }
  0xe9   : > { %v1549_v63 = vrot.slane %v1547_v43, 4  ;;  %v1555_v4 = vsel %vm3987_vm6, %v3179_v62, %v1554_v50  ;;  %vm1151_vm7 = vcmask 27648   ;;  %v1140_v51 = vld [vmem:[#allocation2 + $0x1c] sm:$0xf]  ;;  %v1138_v56 = vld [vmem:[#allocation2 + $0x10] sm:$0xf] }
  0xea   : > { %v1544_v53 = vsel %vm3987_vm6, %v1542_v45, %v1543_v46  ;;  %1156 = vst.msk [vmem:[#allocation3 + $0x10] sm:$0xf] %vm1151_vm7, %v1139_v7  ;;  %v1136_v13 = vld [vmem:[#allocation2 + $0x4] sm:$0xf]  ;;  %v1143_v17 = vld [vmem:[#allocation2 + $0x30] sm:$0xf] }
  0xeb   : > { %1154 = vst.msk [vmem:[#allocation3 + $0x8] sm:$0xf] %vm1151_vm7, %v1137_v8  ;;  %v1629_v15 = vld [vmem:[#allocation2 + $0x24] sm:$0xf]  ;;  %v1142_v18 = vld [vmem:[#allocation2 + $0x28] sm:$0xf] }
  0xec   : > { %1152 = vst.msk [vmem:[#allocation3] sm:$0xf] %vm1151_vm7, %v1135_v9  ;;  %v1141_v6 = vld [vmem:[#allocation2 + $0x24] sm:$0xf]  ;;  %v1633_v19 = vld [vmem:[#allocation2 + $0x3c] sm:$0xf] }
  0xed   : > { %1157 = vst.msk [vmem:[#allocation3 + $0x14] sm:$0xf] %vm1151_vm7, %v1140_v51  ;;  %vm1435_vm8 = vcmask 60448   ;;  %v1632_v21 = vld [vmem:[#allocation2 + $0x34] sm:$0xf]  ;;  %vm1607_vm9 = vcmask 93248  }
  0xee   : > { %1559 = vrot.lane.b32.xlu1 %v1506_v61, %s3451_s21  ;;  %v1472_v61 = vld [vmem:[#allocation2 + $0x50] sm:$0x1]  ;;  %1155 = vst.msk [vmem:[#allocation3 + $0xc] sm:$0xf] %vm1151_vm7, %v1138_v56  ;;  %v1145_v26 = vld [vmem:[#allocation2 + $0x3c] sm:$0xf] }
  0xef   : > { %1153 = vst.msk [vmem:[#allocation3 + $0x4] sm:$0xf] %vm1151_vm7, %v1136_v13  ;;  %v1631_v22 = vld [vmem:[#allocation2 + $0x30] sm:$0xf]  ;;  %v1144_v27 = vld [vmem:[#allocation2 + $0x34] sm:$0xf] }
  0xf0   : > { %1417 = vrot.lane.b32.xlu0 %v1386_v1, %s3450_s6  ;;  %1415 = vrot.lane.b32.xlu2 %v1376_v3, %s3450_s6  ;;  %v1550_v1 = vrot.slane %v1472_v61, 5  ;;  %v1558_v3 = vsel %vm3987_vm6, %v1556_v57, %v1557_v58  ;;  %1160 = vst.msk [vmem:[#allocation3 + $0x20] sm:$0xf] %vm1151_vm7, %v1143_v17  ;;  %v1723_v23 = vld [vmem:[#allocation2 + $0x10] sm:$0xf]  ;;  %vm1705_vm10 = vcmask 126048  }
  0xf1   : > { %1159 = vst.msk [vmem:[#allocation3 + $0x1c] sm:$0xf] %vm1151_vm7, %v1142_v18  ;;  %v1722_v31 = vld [vmem:[#allocation2 + $0xc] sm:$0xf]  ;;  %v1756_v32 = vshll.u32 %v1723_v23, 16  ;;  %v1760_v33 = vshrl.u32 %v1723_v23, 16 }
  0xf2   : > { %v1551_v5 = vsel %vm3987_vm6, %v1549_v63, %v1550_v1  ;;  %1158 = vst.msk [vmem:[#allocation3 + $0x18] sm:$0xf] %vm1151_vm7, %v1141_v6  ;;  %v1635_v34 = vld [vmem:[#allocation2 + $0x48] sm:$0xf]  ;;  %v1634_v35 = vld [vmem:[#allocation2 + $0x40] sm:$0xf] }
  0xf3   : > { %1162 = vst.msk [vmem:[#allocation3 + $0x28] sm:$0xf] %vm1151_vm7, %v1145_v26  ;;  %v1747_v36 = vshrl.u32 %v1722_v31, 16  ;;  %v1750_v60 = vshll.u32 %v1722_v31, 16  ;;  %v1758_v38 = vrot.slane %v1756_v32, 5  ;;  %v1762_v39 = vrot.slane %v1760_v33, 4 }
  0xf4   : > { %1161 = vst.msk [vmem:[#allocation3 + $0x24] sm:$0xf] %vm1151_vm7, %v1144_v27  ;;  %v1149_v2 = vld [vmem:[#allocation2 + $0x54] sm:$0xf]  ;;  %v1639_v41 = vld [vmem:[#allocation2 + $0x60] sm:$0xf] }
  0xf5   : > { %v1752_v42 = vrot.slane %v1750_v60, 5  ;;  %1166 = vst.msk [vmem:[#allocation3 + $0x38] sm:$0xf] %vm1151_vm7, %v1149_v2  ;;  %v1724_v44 = vld [vmem:[#allocation2 + $0x14] sm:$0x1]  ;;  %vm1986_vm11 = vcmask 158848  }
  0xf6   : > { %1565 = vrot.lane.b32.xlu1 %v1516_v12, %s3451_s21  ;;  %v1625_v12 = vld [vmem:[#allocation2 + $0xc] sm:$0xf]  ;;  %v1147_v28 = vld [vmem:[#allocation2 + $0x48] sm:$0xf]  ;;  %v2004_v46 = vld [vmem:[#allocation2 + $0x10] sm:$0xf] }
  0xf7   : > { %v2003_v45 = vld [vmem:[#allocation2 + $0xc] sm:$0xe]  ;;  %v1638_v47 = vld [vmem:[#allocation2 + $0x58] sm:$0xf]  ;;  %v1766_v50 = vshll.u32 %v1724_v44, 16  ;;  %v2053_v57 = vrot.slane %v2004_v46, 5 }
  0xf8   : > { %1563 = vrot.lane.b32.xlu0 %v1513_v14, %s3451_s21  ;;  %1561 = vrot.lane.b32.xlu2 %v1509_v16, %s3451_s21  ;;  %v1630_v14 = vld [vmem:[#allocation2 + $0x28] sm:$0xf]  ;;  %v1628_v16 = vld [vmem:[#allocation2 + $0x1c] sm:$0xf]  ;;  %v1637_v52 = vld [vmem:[#allocation2 + $0x54] sm:$0xf] }
  0xf9   : > { %1164 = vst.msk [vmem:[#allocation3 + $0x30] sm:$0xf] %vm1151_vm7, %v1147_v28  ;;  %v1768_v61 = vrot.slane %v1766_v50, 5  ;;  %v2271_v63 = vld [vmem:[#allocation2 + $0x1c] sm:$0xf]  ;;  %vm2821_vm12 = vcmask 1041408  }
  0xfa   : > { %v1150_v1 = vld [vmem:[#allocation2 + $0x58] sm:$0xf]  ;;  %v2304_v8 = vshll.u32 %v2271_v63, 16  ;;  %v2308_v9 = vshrl.u32 %v2271_v63, 16  ;;  %v2005_v56 = vld [vmem:[#allocation2 + $0x14] sm:$0x1] }
  0xfb   : > { %1167 = vst.msk [vmem:[#allocation3 + $0x3c] sm:$0xf] %vm1151_vm7, %v1150_v1  ;;  %v2270_v7 = vld [vmem:[#allocation2 + $0x18] sm:$0xf]  ;;  %v4098_v6 = vld [vmem:[#allocation2 + $0x1c] sm:$0xf] }
  0xfc   : > { %v2298_v51 = vshll.u32 %v2270_v7, 16  ;;  %v4096_v17 = vrot.slane %v2304_v8, 5  ;;  %v2310_v18 = vrot.slane %v2308_v9, 4  ;;  %v2601_v32 = vrot.slane %v4098_v6, 5  ;;  %v2553_v1 = vld [vmem:[#allocation2 + $0x20] sm:$0x1] }
  0xfd   : > { %v2604_v8 = vrot.slane %v2553_v1, 5  ;;  %v2011_v6 = vld [vmem:[#allocation2 + $0x2c] sm:$0x1]  ;;  %vm2155_vm13 = vcmask 191648   ;;  %vm2253_vm14 = vcmask 224448   ;;  %vm2534_vm15 = vcmask 257248  }
  0xfe   : > { %1571 = vrot.lane.b32.xlu1 %v1527_v25, %s3451_s21  ;;  %v1146_v25 = vld [vmem:[#allocation2 + $0x40] sm:$0xf]  ;;  %v2311_v33 = vor.u32 %v2310_v18, %v4096_v17  ;;  %vm2703_vm0 = vcmask 290048   ;;  %vm2796_vm1 = vcmask 293888   ;;  %vm2890_vm3 = vcmask 60416  }
  0xff   : > { %1163 = vst.msk [vmem:[#allocation3 + $0x2c] sm:$0xf] %vm1151_vm7, %v1146_v25  ;;  %v2174_v25 = vld [vmem:[#allocation2 + $0x1c] sm:$0xf]  ;;  %vm2998_vm4 = vcmask 57344  }
 0x100   : > { %1569 = vrot.lane.b32.xlu0 %v1523_v29, %s3451_s21  ;;  %1567 = vrot.lane.b32.xlu2 %v1520_v30, %s3451_s21  ;;  %v1636_v29 = vld [vmem:[#allocation2 + $0x4c] sm:$0xf] }
 0x106   : > { %1577 = vrot.lane.b32.xlu1 %v1537_v37, %s3451_s21 }
 0x108   : > { %1575 = vrot.lane.b32.xlu0 %v1534_v40, %s3451_s21  ;;  %1573 = vrot.lane.b32.xlu2 %v1530_v0, %s3451_s21  ;;  %v1148_v40 = vld [vmem:[#allocation2 + $0x4c] sm:$0xf]  ;;  %v1749_v0 = vrot.slane %v1747_v36, 4 }
 0x109   : > { %1165 = vst.msk [vmem:[#allocation3 + $0x34] sm:$0xf] %vm1151_vm7, %v1148_v40 }
 0x10e   : > { %1583 = vrot.lane.b32.xlu1 %v1548_v49, %s3451_s21  ;;  %v1763_v49 = vor.u32 %v1762_v39, %v1758_v38 }
 0x110   : > { %1581 = vrot.lane.b32.xlu0 %v1544_v53, %s3451_s21  ;;  %1579 = vrot.lane.b32.xlu2 %v1541_v55, %s3451_s21  ;;  %v1753_v53 = vor.u32 %v1752_v42, %v1749_v0  ;;  %v3180_v55 = vrot.slane %v2003_v45, 9  ;;  %v1764_v59 = vrot.slane %v1763_v49, 4  ;;  %v1734_v0 = vld [vmem:[#allocation2 + $0x3c] sm:$0xf] }
 0x112   : > { %v1754_v62 = vrot.slane %v1753_v53, 4  ;;  %v1846_v53 = vshll.u32 %v1734_v0, 16 }
 0x114   : > { %v1848_v63 = vrot.slane %v1846_v53, 5  ;;  %v2017_v53 = vld [vmem:[#allocation2 + $0x44] sm:$0x1] }
 0x116   : > { %1589 = vrot.lane.b32.xlu1 %v1558_v3, %s3451_s21 }
 0x118   : > { %1587 = vrot.lane.b32.xlu0 %v1555_v4, %s3451_s21  ;;  %1585 = vrot.lane.b32.xlu2 %v1551_v5, %s3451_s21  ;;  %v2054_v4 = vsel %vm3987_vm6, %v3180_v55, %v2053_v57 }
 0x11e   : > { %1661 = vrot.lane.b32.xlu1 %v1627_v10, %s3452_s28  ;;  %v1769_v10 = vsel %vm3939_vm2, %v1764_v59, %v1768_v61 }
 0x120   : > { %1659 = vrot.lane.b32.xlu0 %v1626_v11, %s3452_s28  ;;  %1657 = vrot.lane.b32.xlu2 %v1625_v12, %s3452_s28  ;;  %v1759_v11 = vsel %vm3939_vm2, %v1754_v62, %v1758_v38  ;;  %v2295_v12 = vshrl.u32 %v2270_v7, 16  ;;  %v2603_v7 = vrot.slane %v2601_v32, 4 }
 0x126   : > { %1667 = vrot.lane.b32.xlu1 %v1630_v14, %s3452_s28  ;;  %v2272_v14 = vld [vmem:[#allocation2 + $0x20] sm:$0x1] }
 0x128   : > { %1665 = vrot.lane.b32.xlu0 %v1629_v15, %s3452_s28  ;;  %1663 = vrot.lane.b32.xlu2 %v1628_v16, %s3452_s28  ;;  %v1729_v15 = vld [vmem:[#allocation2 + $0x28] sm:$0xf]  ;;  %v2551_v16 = vld [vmem:[#allocation2 + $0x18] sm:$0xe] }
 0x129   : > { %v1804_v27 = vshll.u32 %v1729_v15, 16  ;;  %v3188_v31 = vrot.slane %v2551_v16, 9  ;;  %v2605_v16 = vsel %vm3987_vm6, %v2603_v7, %v2604_v8  ;;  %v2278_v8 = vld [vmem:[#allocation2 + $0x38] sm:$0x1] }
 0x12a   : > { %v1396_v20 = vpop.permute.xlu2 %1395 }
 0x12b   : > { %1440 = vst.msk [vmem:[#allocation3 + $0x10] sm:$0xf] %vm1435_vm8, %v1396_v20  ;;  %v2056_v20 = vrot.slane %v2005_v56, 5  ;;  %v1806_v39 = vrot.slane %v1804_v27, 5  ;;  %v2602_v42 = vsel %vm3987_vm6, %v3188_v31, %v2601_v32 }
 0x12e   : > { %1673 = vrot.lane.b32.xlu1 %v1633_v19, %s3452_s28  ;;  %v2055_v19 = vrot.slane %v2053_v57, 4 }
 0x130   : > { %1671 = vrot.lane.b32.xlu0 %v1632_v21, %s3452_s28  ;;  %1669 = vrot.lane.b32.xlu2 %v1631_v22, %s3452_s28  ;;  %v2297_v21 = vrot.slane %v2295_v12, 4  ;;  %v2300_v22 = vrot.slane %v2298_v51, 5  ;;  %v2057_v36 = vsel %vm3987_vm6, %v2055_v19, %v2056_v20  ;;  %v2010_v51 = vld [vmem:[#allocation2 + $0x28] sm:$0xf]  ;;  %v2009_v19 = vld [vmem:[#allocation2 + $0x24] sm:$0xe] }
 0x132   : > { %v1398_v30 = vpop.permute.xlu2 %1397  ;;  %v2301_v38 = vor.u32 %v2300_v22, %v2297_v21  ;;  %v2276_v21 = vld [vmem:[#allocation2 + $0x30] sm:$0xf] }
 0x133   : > { %1441 = vst.msk [vmem:[#allocation3 + $0x14] sm:$0xf] %vm1435_vm8, %v1398_v30  ;;  %v1728_v30 = vld [vmem:[#allocation2 + $0x24] sm:$0xf]  ;;  %v2343_v31 = vshrl.u32 %v2276_v21, 16  ;;  %v2346_v32 = vshll.u32 %v2276_v21, 16 }
 0x134   : > { %v1795_v60 = vshrl.u32 %v1728_v30, 16  ;;  %v2302_v45 = vrot.slane %v2301_v38, 4 }
 0x135   : > { %v2348_v38 = vrot.slane %v2346_v32, 5 }
 0x136   : > { %1679 = vrot.lane.b32.xlu1 %v1636_v29, %s3452_s28  ;;  %v1808_v29 = vshrl.u32 %v1729_v15, 16  ;;  %v2067_v15 = vrot.slane %v2010_v51, 5 }
 0x138   : > { %v1392_v37 = vpop.permute.xlu1 %1391  ;;  %1677 = vrot.lane.b32.xlu0 %v1635_v34, %s3452_s28  ;;  %1675 = vrot.lane.b32.xlu2 %v1634_v35, %s3452_s28  ;;  %v2314_v34 = vshll.u32 %v2272_v14, 16  ;;  %v2173_v35 = vld [vmem:[#allocation2 + $0x18] sm:$0xf]  ;;  %v1810_v2 = vrot.slane %v1808_v29, 4  ;;  %v2069_v22 = vrot.slane %v2067_v15, 4 }
 0x139   : > { %1438 = vst.msk [vmem:[#allocation3 + $0x8] sm:$0xf] %vm1435_vm8, %v1392_v37  ;;  %v1798_v37 = vshll.u32 %v1728_v30, 16 }
 0x13a   : > { %v1388_v43 = vpop.permute.xlu0 %1387  ;;  %v1404_v24 = vpop.permute.xlu2 %1403  ;;  %v2316_v44 = vrot.slane %v2314_v34, 5 }
 0x13b   : > { %1436 = vst.msk [vmem:[#allocation3] sm:$0xf] %vm1435_vm8, %v1388_v43  ;;  %v2312_v43 = vrot.slane %v2311_v33, 4  ;;  %v1800_v28 = vrot.slane %v1798_v37, 5  ;;  %v1736_v33 = vld [vmem:[#allocation2 + $0x44] sm:$0x1] }
 0x13c   : > { %1444 = vst.msk [vmem:[#allocation3 + $0x20] sm:$0xf] %vm1435_vm8, %v1404_v24  ;;  %v1797_v24 = vrot.slane %v1795_v60, 4  ;;  %v1862_v60 = vshll.u32 %v1736_v33, 16  ;;  %v2345_v37 = vrot.slane %v2343_v31, 4 }
 0x13d   : > { %v2317_v55 = vsel %vm3939_vm2, %v2312_v43, %v2316_v44  ;;  %v2564_v33 = vld [vmem:[#allocation2 + $0x4c] sm:$0xf] }
 0x13e   : > { %1685 = vrot.lane.b32.xlu1 %v1639_v41, %s3452_s28  ;;  %v1730_v41 = vld [vmem:[#allocation2 + $0x2c] sm:$0x1]  ;;  %v1801_v57 = vor.u32 %v1800_v28, %v1797_v24  ;;  %v2349_v43 = vor.u32 %v2348_v38, %v2345_v37  ;;  %v2016_v24 = vld [vmem:[#allocation2 + $0x40] sm:$0xf] }
 0x13f   : > { %v1814_v49 = vshll.u32 %v1730_v41, 16  ;;  %v1864_v41 = vrot.slane %v1862_v60, 5  ;;  %v1726_v60 = vld [vmem:[#allocation2 + $0x1c] sm:$0xf] }
 0x140   : > { %v1394_v58 = vpop.permute.xlu1 %1393  ;;  %1683 = vrot.lane.b32.xlu0 %v1638_v47, %s3452_s28  ;;  %1681 = vrot.lane.b32.xlu2 %v1637_v52, %s3452_s28  ;;  %v1811_v47 = vor.u32 %v1810_v2, %v1806_v39  ;;  %v1843_v52 = vshrl.u32 %v1734_v0, 16  ;;  %v2277_v2 = vld [vmem:[#allocation2 + $0x34] sm:$0xf] }
 0x141   : > { %1439 = vst.msk [vmem:[#allocation3 + $0xc] sm:$0xf] %vm1435_vm8, %v1394_v58  ;;  %v2307_v58 = vsel %vm3939_vm2, %v2302_v45, %v4096_v17  ;;  %v1816_v61 = vrot.slane %v1814_v49, 5  ;;  %v2352_v44 = vshll.u32 %v2277_v2, 16  ;;  %v2177_v45 = vld [vmem:[#allocation2 + $0x30] sm:$0xf] }
 0x142   : > { %v1390_v3 = vpop.permute.xlu0 %1389  ;;  %v1410_v5 = vpop.permute.xlu2 %1409  ;;  %v1812_v59 = vrot.slane %v1811_v47, 4  ;;  %v1845_v62 = vrot.slane %v1843_v52, 4  ;;  %v2081_v47 = vrot.slane %v2016_v24, 5  ;;  %v1780_v24 = vshll.u32 %v1726_v60, 16 }
 0x143   : > { %1437 = vst.msk [vmem:[#allocation3 + $0x4] sm:$0xf] %vm1435_vm8, %v1390_v3  ;;  %v2354_v52 = vrot.slane %v2352_v44, 5 }
 0x144   : > { %1447 = vst.msk [vmem:[#allocation3 + $0x2c] sm:$0xf] %vm1435_vm8, %v1410_v5  ;;  %v1802_v5 = vrot.slane %v1801_v57, 4 }
 0x146   : > { %2107 = vrot.lane.b32.xlu1 %v2054_v4, %s3453_s29  ;;  %v1735_v4 = vld [vmem:[#allocation2 + $0x40] sm:$0xf] }
 0x147   : > { %v1852_v12 = vshll.u32 %v1735_v4, 16  ;;  %v1856_v14 = vshrl.u32 %v1735_v4, 16 }
 0x148   : > { %v1402_v13 = vpop.permute.xlu1 %1401  ;;  %1940 = vrot.lane.b32.xlu0 %v1769_v10, %s3454_s7  ;;  %1938 = vrot.lane.b32.xlu2 %v1759_v11, %s3454_s7  ;;  %v1817_v10 = vsel %vm3939_vm2, %v1812_v59, %v1816_v61  ;;  %v1849_v11 = vor.u32 %v1848_v63, %v1845_v62  ;;  %v2083_v59 = vrot.slane %v2081_v47, 4  ;;  %v2084_v61 = vrot.slane %v2017_v53, 5 }
 0x149   : > { %1443 = vst.msk [vmem:[#allocation3 + $0x1c] sm:$0xf] %vm1435_vm8, %v1402_v13  ;;  %v1807_v13 = vsel %vm3939_vm2, %v1802_v5, %v1806_v39  ;;  %v1854_v18 = vrot.slane %v1852_v12, 5  ;;  %v2362_v12 = vshll.u32 %v2278_v8, 16 }
 0x14a   : > { %v1400_v23 = vpop.permute.xlu0 %1399  ;;  %v1416_v26 = vpop.permute.xlu2 %1415  ;;  %v1850_v17 = vrot.slane %v1849_v11, 4 }
 0x14b   : > { %1442 = vst.msk [vmem:[#allocation3 + $0x18] sm:$0xf] %vm1435_vm8, %v1400_v23  ;;  %v2070_v23 = vrot.slane %v2011_v6, 5  ;;  %v2182_v6 = vld [vmem:[#allocation2 + $0x4c] sm:$0xf] }
 0x14c   : > { %1450 = vst.msk [vmem:[#allocation3 + $0x38] sm:$0xf] %vm1435_vm8, %v1416_v26  ;;  %v1858_v26 = vrot.slane %v1856_v14, 4  ;;  %v1855_v29 = vsel %vm3939_vm2, %v1850_v17, %v1854_v18  ;;  %v2283_v14 = vld [vmem:[#allocation2 + $0x4c] sm:$0xf]  ;;  %v2364_v17 = vrot.slane %v2362_v12, 5 }
 0x14d   : > { %v2071_v34 = vsel %vm3987_vm6, %v2069_v22, %v2070_v23  ;;  %v2181_v22 = vld [vmem:[#allocation2 + $0x48] sm:$0xf]  ;;  %v2006_v12 = vld [vmem:[#allocation2 + $0x18] sm:$0xe] }
 0x14e   : > { %2207 = vrot.lane.b32.xlu1 %v2174_v25, %s3455_s5  ;;  %v3182_v25 = vrot.slane %v2009_v19, 9 }
 0x150   : > { %v1408_v40 = vpop.permute.xlu1 %1407  ;;  %2205 = vrot.lane.b32.xlu0 %v2173_v35, %s3455_s5  ;;  %2109 = vrot.lane.b32.xlu2 %v2057_v36, %s3453_s29  ;;  %v2068_v35 = vsel %vm3987_vm6, %v3182_v25, %v2067_v15  ;;  %v1859_v36 = vor.u32 %v1858_v26, %v1854_v18  ;;  %v2558_v15 = vld [vmem:[#allocation2 + $0x34] sm:$0xf]  ;;  %v2404_v25 = vshrl.u32 %v2283_v14, 16  ;;  %v2559_v26 = vld [vmem:[#allocation2 + $0x38] sm:$0x1] }
 0x151   : > { %1446 = vst.msk [vmem:[#allocation3 + $0x28] sm:$0xf] %vm1435_vm8, %v1408_v40  ;;  %v2615_v23 = vrot.slane %v2558_v15, 5 }
 0x152   : > { %v1406_v46 = vpop.permute.xlu0 %1405  ;;  %v1562_v50 = vpop.permute.xlu2 %1561  ;;  %v1860_v40 = vrot.slane %v1859_v36, 4  ;;  %v2406_v37 = vrot.slane %v2404_v25, 4 }
 0x153   : > { %1445 = vst.msk [vmem:[#allocation3 + $0x24] sm:$0xf] %vm1435_vm8, %v1406_v46  ;;  %v2356_v46 = vshrl.u32 %v2277_v2, 16  ;;  %v2629_v2 = vrot.slane %v2564_v33, 5 }
 0x154   : > { %1609 = vst.msk [vmem:[#allocation3 + $0x4] sm:$0xf] %vm1607_vm9, %v1562_v50  ;;  %v1865_v49 = vsel %vm3939_vm2, %v1860_v40, %v1864_v41  ;;  %v2350_v50 = vrot.slane %v2349_v43, 4  ;;  %v2284_v41 = vld [vmem:[#allocation2 + $0x50] sm:$0x1] }
 0x155   : > { %v2358_v63 = vrot.slane %v2356_v46, 4 }
 0x156   : > { %2655 = vrot.lane.b32.xlu1 %v2602_v42, %s3456_s10  ;;  %v2178_v42 = vld [vmem:[#allocation2 + $0x34] sm:$0xf] }
 0x157   : > { %v2359_v11 = vor.u32 %v2358_v63, %v2354_v52 }
 0x158   : > { %v1414_v3 = vpop.permute.xlu1 %1413  ;;  %2488 = vrot.lane.b32.xlu0 %v2317_v55, %s3457_s11  ;;  %2486 = vrot.lane.b32.xlu2 %v2307_v58, %s3457_s11  ;;  %v2015_v55 = vld [vmem:[#allocation2 + $0x3c] sm:$0xe]  ;;  %v2282_v58 = vld [vmem:[#allocation2 + $0x48] sm:$0xf] }
 0x159   : > { %1449 = vst.msk [vmem:[#allocation3 + $0x34] sm:$0xf] %vm1435_vm8, %v1414_v3  ;;  %v3184_v62 = vrot.slane %v2015_v55, 9  ;;  %v2355_v3 = vsel %vm3939_vm2, %v2350_v50, %v2354_v52  ;;  %v2391_v5 = vshrl.u32 %v2282_v58, 16  ;;  %v2394_v7 = vshll.u32 %v2282_v58, 16 }
 0x15a   : > { %v1412_v9 = vpop.permute.xlu0 %1411  ;;  %v1568_v56 = vpop.permute.xlu2 %1567  ;;  %v2631_v52 = vrot.slane %v2629_v2, 4 }
 0x15b   : > { %1448 = vst.msk [vmem:[#allocation3 + $0x30] sm:$0xf] %vm1435_vm8, %v1412_v9  ;;  %v2085_v9 = vsel %vm3987_vm6, %v2083_v59, %v2084_v61  ;;  %v2393_v51 = vrot.slane %v2391_v5, 4  ;;  %v1782_v59 = vrot.slane %v1780_v24, 5 }
 0x15c   : > { %1612 = vst.msk [vmem:[#allocation3 + $0x10] sm:$0xf] %vm1607_vm9, %v1568_v56  ;;  %v2396_v56 = vrot.slane %v2394_v7, 5 }
 0x15e   : > { %1948 = vrot.lane.b32.xlu1 %v1817_v10, %s3454_s7  ;;  %v2082_v10 = vsel %vm3987_vm6, %v3184_v62, %v2081_v47  ;;  %v2397_v19 = vor.u32 %v2396_v56, %v2393_v51  ;;  %v2410_v47 = vshll.u32 %v2284_v41, 16  ;;  %v1727_v62 = vld [vmem:[#allocation2 + $0x20] sm:$0x1]  ;;  %v2007_v51 = vld [vmem:[#allocation2 + $0x1c] sm:$0xf] }
 0x15f   : > { %v2274_v41 = vld [vmem:[#allocation2 + $0x28] sm:$0xf] }
 0x160   : > { %v1560_v20 = vpop.permute.xlu1 %1559  ;;  %1946 = vrot.lane.b32.xlu0 %v1807_v13, %s3454_s7  ;;  %2657 = vrot.lane.b32.xlu2 %v2605_v16, %s3456_s10  ;;  %v2360_v16 = vrot.slane %v2359_v11, 4  ;;  %v1740_v11 = vld [vmem:[#allocation2 + $0x54] sm:$0xf] }
 0x161   : > { %1608 = vst.msk [vmem:[#allocation3] sm:$0xf] %vm1607_vm9, %v1560_v20  ;;  %v2400_v20 = vshll.u32 %v2283_v14, 16  ;;  %v1790_v14 = vshll.u32 %v1727_v62, 16 }
 0x162   : > { %v1418_v27 = vpop.permute.xlu0 %1417  ;;  %v1574_v30 = vpop.permute.xlu2 %1573 }
 0x163   : > { %1451 = vst.msk [vmem:[#allocation3 + $0x3c] sm:$0xf] %vm1435_vm8, %v1418_v27  ;;  %v2365_v27 = vsel %vm3939_vm2, %v2360_v16, %v2364_v17  ;;  %v2402_v31 = vrot.slane %v2400_v20, 5  ;;  %v1891_v16 = vshrl.u32 %v1740_v11, 16  ;;  %v1894_v17 = vshll.u32 %v1740_v11, 16 }
 0x164   : > { %1615 = vst.msk [vmem:[#allocation3 + $0x1c] sm:$0xf] %vm1607_vm9, %v1574_v30  ;;  %v2398_v30 = vrot.slane %v2397_v19, 4  ;;  %v2060_v19 = vrot.slane %v2007_v51, 5  ;;  %v2175_v51 = vld [vmem:[#allocation2 + $0x24] sm:$0xf] }
 0x165   : > { %v2407_v46 = vor.u32 %v2406_v37, %v2402_v31 }
 0x166   : > { %1954 = vrot.lane.b32.xlu1 %v1855_v29, %s3454_s7  ;;  %v2557_v29 = vld [vmem:[#allocation2 + $0x30] sm:$0xe] }
 0x167   : > { %v3190_v36 = vrot.slane %v2557_v29, 9  ;;  %v2408_v63 = vrot.slane %v2407_v46, 4  ;;  %v1896_v29 = vrot.slane %v1894_v17, 5  ;;  %v2328_v46 = vshll.u32 %v2274_v41, 16 }
 0x168   : > { %v1566_v39 = vpop.permute.xlu1 %1565  ;;  %2117 = vrot.lane.b32.xlu0 %v2071_v34, %s3453_s29  ;;  %2115 = vrot.lane.b32.xlu2 %v2068_v35, %s3453_s29  ;;  %v2617_v34 = vrot.slane %v2615_v23, 4  ;;  %v2618_v35 = vrot.slane %v2559_v26, 5  ;;  %v1792_v26 = vrot.slane %v1790_v14, 5 }
 0x169   : > { %1611 = vst.msk [vmem:[#allocation3 + $0xc] sm:$0xf] %vm1607_vm9, %v1566_v39  ;;  %v2403_v39 = vsel %vm3939_vm2, %v2398_v30, %v2402_v31  ;;  %v2616_v44 = vsel %vm3987_vm6, %v3190_v36, %v2615_v23  ;;  %v1742_v23 = vld [vmem:[#allocation2 + $0x5c] sm:$0x1] }
 0x16a   : > { %v1564_v0 = vpop.permute.xlu0 %1563  ;;  %v1580_v28 = vpop.permute.xlu2 %1579  ;;  %v2619_v43 = vsel %vm3987_vm6, %v2617_v34, %v2618_v35  ;;  %v1910_v34 = vshll.u32 %v1742_v23, 16 }
 0x16b   : > { %1610 = vst.msk [vmem:[#allocation3 + $0x8] sm:$0xf] %vm1607_vm9, %v1564_v0  ;;  %v1725_v0 = vld [vmem:[#allocation2 + $0x18] sm:$0xf] }
 0x16c   : > { %1618 = vst.msk [vmem:[#allocation3 + $0x28] sm:$0xf] %vm1607_vm9, %v1580_v28  ;;  %v1784_v28 = vshrl.u32 %v1726_v60, 16  ;;  %v1774_v50 = vshll.u32 %v1725_v0, 16 }
 0x16e   : > { %2215 = vrot.lane.b32.xlu1 %v2178_v42, %s3455_s5  ;;  %v2565_v42 = vld [vmem:[#allocation2 + $0x50] sm:$0x1]  ;;  %v1786_v61 = vrot.slane %v1784_v28, 4 }
 0x16f   : > { %v2632_v53 = vrot.slane %v2565_v42, 5  ;;  %v2062_v42 = vrot.slane %v2060_v19, 4 }
 0x170   : > { %v1572_v57 = vpop.permute.xlu1 %1571  ;;  %2213 = vrot.lane.b32.xlu0 %v2177_v45, %s3455_s5  ;;  %1956 = vrot.lane.b32.xlu2 %v1865_v49, %s3454_s7  ;;  %v2563_v45 = vld [vmem:[#allocation2 + $0x48] sm:$0xe]  ;;  %v1771_v49 = vshrl.u32 %v1725_v0, 16 }
 0x171   : > { %1614 = vst.msk [vmem:[#allocation3 + $0x18] sm:$0xf] %vm1607_vm9, %v1572_v57  ;;  %v1741_v57 = vld [vmem:[#allocation2 + $0x58] sm:$0xf]  ;;  %v3192_v58 = vrot.slane %v2563_v45, 9  ;;  %v2633_v7 = vsel %vm3987_vm6, %v2631_v52, %v2632_v53 }
 0x172   : > { %v1570_v1 = vpop.permute.xlu0 %1569  ;;  %v1586_v4 = vpop.permute.xlu2 %1585 }
 0x173   : > { %1613 = vst.msk [vmem:[#allocation3 + $0x14] sm:$0xf] %vm1607_vm9, %v1570_v1  ;;  %v2412_v1 = vrot.slane %v2410_v47, 5  ;;  %v2630_v56 = vsel %vm3987_vm6, %v3192_v58, %v2629_v2  ;;  %v2008_v2 = vld [vmem:[#allocation2 + $0x20] sm:$0x1]  ;;  %v2332_v47 = vshrl.u32 %v2274_v41, 16 }
 0x174   : > { %1621 = vst.msk [vmem:[#allocation3 + $0x34] sm:$0xf] %vm1607_vm9, %v1586_v4  ;;  %v1776_v4 = vrot.slane %v1774_v50, 5  ;;  %v2022_v50 = vld [vmem:[#allocation2 + $0x58] sm:$0xf] }
 0x175   : > { %v2413_v15 = vsel %vm3939_vm2, %v2408_v63, %v2412_v1  ;;  %v2334_v62 = vrot.slane %v2332_v47, 4  ;;  %v2275_v1 = vld [vmem:[#allocation2 + $0x2c] sm:$0x1]  ;;  %v2290_v41 = vld [vmem:[#allocation2 + $0x68] sm:$0x1] }
 0x176   : > { %2494 = vrot.lane.b32.xlu1 %v2355_v3, %s3457_s11  ;;  %v1773_v3 = vrot.slane %v1771_v49, 4  ;;  %v2021_v49 = vld [vmem:[#allocation2 + $0x54] sm:$0xe] }
 0x177   : > { %v3186_v58 = vrot.slane %v2021_v49, 9 }
 0x178   : > { %v1578_v13 = vpop.permute.xlu1 %1577  ;;  %2125 = vrot.lane.b32.xlu0 %v2085_v9, %s3453_s29  ;;  %2123 = vrot.lane.b32.xlu2 %v2082_v10, %s3453_s29  ;;  %v1900_v9 = vshll.u32 %v1741_v57, 16  ;;  %v1904_v10 = vshrl.u32 %v1741_v57, 16 }
 0x179   : > { %1617 = vst.msk [vmem:[#allocation3 + $0x24] sm:$0xf] %vm1607_vm9, %v1578_v13  ;;  %v1787_v13 = vor.u32 %v1786_v61, %v1782_v59  ;;  %v4220_v61 = vrot.slane %v2328_v46, 5  ;;  %v2458_v46 = vshll.u32 %v2290_v41, 16 }
 0x17a   : > { %v1576_v18 = vpop.permute.xlu0 %1575  ;;  %v1658_v21 = vpop.permute.xlu2 %1657  ;;  %v1902_v20 = vrot.slane %v1900_v9, 5  ;;  %v2338_v9 = vshll.u32 %v2275_v1, 16  ;;  %v1732_v1 = vld [vmem:[#allocation2 + $0x34] sm:$0xf] }
 0x17b   : > { %1616 = vst.msk [vmem:[#allocation3 + $0x20] sm:$0xf] %vm1607_vm9, %v1576_v18  ;;  %v1777_v18 = vor.u32 %v1776_v4, %v1773_v3  ;;  %v1788_v25 = vrot.slane %v1787_v13, 4 }
 0x17c   : > { %1706 = vst.msk [vmem:[#allocation3] sm:$0xf] %vm1705_vm10, %v1658_v21  ;;  %v1906_v21 = vrot.slane %v1904_v10, 4  ;;  %v2340_v14 = vrot.slane %v2338_v9, 5 }
 0x17d   : > { %v1778_v30 = vrot.slane %v1777_v18, 4  ;;  %v1793_v36 = vsel %vm3939_vm2, %v1788_v25, %v1792_v26  ;;  %v2289_v18 = vld [vmem:[#allocation2 + $0x64] sm:$0xf] }
 0x17e   : > { %2223 = vrot.lane.b32.xlu1 %v2182_v6, %s3455_s5  ;;  %v3181_v6 = vrot.slane %v2006_v12, 9  ;;  %v1907_v33 = vor.u32 %v1906_v21, %v1902_v20  ;;  %v2176_v12 = vld [vmem:[#allocation2 + $0x28] sm:$0xf] }
 0x17f   : > { %v1783_v37 = vsel %vm3939_vm2, %v1778_v30, %v1782_v59  ;;  %v2095_v59 = vrot.slane %v2022_v50, 5  ;;  %v4237_v21 = vld [vmem:[#allocation2 + $0x28] sm:$0xf]  ;;  %v2452_v30 = vshrl.u32 %v2289_v18, 16 }
 0x180   : > { %v1584_v32 = vpop.permute.xlu1 %1583  ;;  %2221 = vrot.lane.b32.xlu0 %v2181_v22, %s3455_s5  ;;  %2496 = vrot.lane.b32.xlu2 %v2365_v27, %s3457_s11  ;;  %v1893_v27 = vrot.slane %v1891_v16, 4 }
 0x181   : > { %1620 = vst.msk [vmem:[#allocation3 + $0x30] sm:$0xf] %vm1607_vm9, %v1584_v32  ;;  %v2061_v32 = vsel %vm3987_vm6, %v3181_v6, %v2060_v19  ;;  %v2554_v19 = vld [vmem:[#allocation2 + $0x24] sm:$0xe] }
 0x182   : > { %v1582_v38 = vpop.permute.xlu0 %1581  ;;  %v1664_v40 = vpop.permute.xlu2 %1663  ;;  %v1897_v60 = vor.u32 %v1896_v29, %v1893_v27  ;;  %v2448_v29 = vshll.u32 %v2289_v18, 16 }
 0x183   : > { %1619 = vst.msk [vmem:[#allocation3 + $0x2c] sm:$0xf] %vm1607_vm9, %v1582_v38  ;;  %v1908_v38 = vrot.slane %v1907_v33, 4 }
 0x184   : > { %1709 = vst.msk [vmem:[#allocation3 + $0xc] sm:$0xf] %vm1705_vm10, %v1664_v40  ;;  %v1898_v0 = vrot.slane %v1897_v60, 4 }
 0x186   : > { %2502 = vrot.lane.b32.xlu1 %v2403_v39, %s3457_s11  ;;  %v1912_v39 = vrot.slane %v1910_v34, 5  ;;  %v3189_v34 = vrot.slane %v2554_v19, 9 }
 0x188   : > { %v1590_v55 = vpop.permute.xlu1 %1589  ;;  %2665 = vrot.lane.b32.xlu0 %v2619_v43, %s3456_s10  ;;  %2663 = vrot.lane.b32.xlu2 %v2616_v44, %s3456_s10  ;;  %v2063_v43 = vrot.slane %v2008_v2, 5  ;;  %v2273_v44 = vld [vmem:[#allocation2 + $0x24] sm:$0xf]  ;;  %v1913_v28 = vsel %vm3939_vm2, %v1908_v38, %v1912_v39  ;;  %v4254_v39 = vrot.slane %v2448_v29, 5  ;;  %v2454_v2 = vrot.slane %v2452_v30, 4 }
 0x189   : > { %1623 = vst.msk [vmem:[#allocation3 + $0x3c] sm:$0xf] %vm1607_vm9, %v1590_v55  ;;  %v2319_v52 = vshrl.u32 %v2273_v44, 16  ;;  %v2322_v53 = vshll.u32 %v2273_v44, 16  ;;  %v1903_v55 = vsel %vm3939_vm2, %v1898_v0, %v1902_v20  ;;  %v1731_v0 = vld [vmem:[#allocation2 + $0x30] sm:$0xf] }
 0x18a   : > { %v1588_v5 = vpop.permute.xlu0 %1587  ;;  %v1670_v8 = vpop.permute.xlu2 %1669  ;;  %v2064_v57 = vsel %vm3987_vm6, %v2062_v42, %v2063_v43  ;;  %v3260_v42 = vld [vmem:[%s4590_s1] sm:$0xff]  ;;  %v1819_v49 = vshrl.u32 %v1731_v0, 16  ;;  %v1822_v50 = vshll.u32 %v1731_v0, 16 }
 0x18b   : > { %1622 = vst.msk [vmem:[#allocation3 + $0x38] sm:$0xf] %vm1607_vm9, %v1588_v5  ;;  %v2321_v3 = vrot.slane %v2319_v52, 4  ;;  %v2324_v4 = vrot.slane %v2322_v53, 5  ;;  %v2186_v52 = vld [vmem:[#allocation2 + $0x64] sm:$0xf] }
 0x18c   : > { %1712 = vst.msk [vmem:[#allocation3 + $0x18] sm:$0xf] %vm1705_vm10, %v1670_v8  ;;  %v2335_v8 = vor.u32 %v2334_v62, %v4220_v61  ;;  %v2556_v62 = vld [vmem:[#allocation2 + $0x2c] sm:$0x1] }
 0x18d   : > { %v2325_v11 = vor.u32 %v2324_v4, %v2321_v3  ;;  %v2570_v3 = vld [vmem:[#allocation2 + $0x64] sm:$0xf] }
 0x18e   : > { %2673 = vrot.lane.b32.xlu1 %v2633_v7, %s3456_s10  ;;  %v2096_v7 = vsel %vm3987_vm6, %v3186_v58, %v2095_v59  ;;  %v2336_v13 = vrot.slane %v2335_v8, 4  ;;  %v2460_v58 = vrot.slane %v2458_v46, 5 }
 0x18f   : > { %v2326_v6 = vrot.slane %v2325_v11, 4  ;;  %v1828_v11 = vshll.u32 %v1732_v1, 16 }
 0x190   : > { %v1662_v22 = vpop.permute.xlu1 %1661  ;;  %2671 = vrot.lane.b32.xlu0 %v2630_v56, %s3456_s10  ;;  %2504 = vrot.lane.b32.xlu2 %v2413_v15, %s3457_s11  ;;  %v2740_v56 = vld [vmem:[%s4590_s1 + $0x10] sm:$0x3]  ;;  %v2023_v15 = vld [vmem:[#allocation2 + $0x5c] sm:$0x1]  ;;  %v2341_v26 = vsel %vm3939_vm2, %v2336_v13, %v2340_v14  ;;  %v1832_v14 = vshrl.u32 %v1732_v1, 16 }
 0x191   : > { %1708 = vst.msk [vmem:[#allocation3 + $0x8] sm:$0xf] %vm1705_vm10, %v1662_v22  ;;  %v2790_v16 = vunpack.c.l.b16 %v2740_v56  ;;  %v2097_v22 = vrot.slane %v2095_v59, 4  ;;  %v2098_v23 = vrot.slane %v2023_v15, 5  ;;  %v2331_v33 = vsel %vm3939_vm2, %v2326_v6, %v4220_v61  ;;  %v2571_v56 = vld [vmem:[#allocation2 + $0x68] sm:$0x1] }
 0x192   : > { %v1660_v31 = vpop.permute.xlu0 %1659  ;;  %v1676_v35 = vpop.permute.xlu2 %1675  ;;  %v1821_v59 = vrot.slane %v1819_v49, 4  ;;  %v1824_v61 = vrot.slane %v1822_v50, 5  ;;  %v1830_v18 = vrot.slane %v1828_v11, 5  ;;  %v2279_v11 = vld [vmem:[#allocation2 + $0x3c] sm:$0xf] }
 0x193   : > { %1707 = vst.msk [vmem:[#allocation3 + $0x4] sm:$0xf] %vm1705_vm10, %v1660_v31  ;;  %v2793_v20 = vpack.c.b16 %v2790_v16, %v2790_v16  ;;  %v2288_v31 = vld [vmem:[#allocation2 + $0x60] sm:$0xf]  ;;  %v2099_v60 = vsel %vm3987_vm6, %v2097_v22, %v2098_v23  ;;  %v1738_v23 = vld [vmem:[#allocation2 + $0x4c] sm:$0xf] }
 0x194   : > { %1715 = vst.msk [vmem:[#allocation3 + $0x24] sm:$0xf] %vm1705_vm10, %v1676_v35  ;;  %v3261_v35 = vld [vmem:[%s4590_s1 + $0x8] sm:$0xff]  ;;  %v2442_v38 = vshll.u32 %v2288_v31, 16  ;;  %v2569_v16 = vld [vmem:[#allocation2 + $0x60] sm:$0xe] }
 0x195   : > { %v3194_v22 = vrot.slane %v2569_v16, 9 }
 0x196   : > { %2111 = vrot.lane.b32.xlu1 %v2061_v32, %s3453_s29  ;;  %v2823_v32 = vsel %vm2821_vm12, %v2793_v20, 0  ;;  %v2646_v20 = vrot.slane %v2571_v56, 5 }
 0x197   : > { %2830 = vmatpush.bf16.msra.mxu0 %v2823_v32  ;;  %3262 = vmatpush.bf16.msra.mxu1 %v2823_v32 }
 0x198   : > { %v1668_v40 = vpop.permute.xlu1 %1667  ;;  %1944 = vrot.lane.b32.xlu0 %v1793_v36, %s3454_s7  ;;  %1942 = vrot.lane.b32.xlu2 %v1783_v37, %s3454_s7  ;;  %v2608_v36 = vrot.slane %v4237_v21, 5  ;;  %v2439_v37 = vshrl.u32 %v2288_v31, 16  ;;  %v2013_v21 = vld [vmem:[#allocation2 + $0x34] sm:$0xf]  ;;  %v1733_v31 = vld [vmem:[#allocation2 + $0x38] sm:$0x1] }
 0x199   : > { %1711 = vst.msk [vmem:[#allocation3 + $0x14] sm:$0xf] %vm1705_vm10, %v1668_v40  ;;  %3263 = vmatpush.bf16.msra.mxu2 %v2823_v32  ;;  %3264 = vmatpush.bf16.msra.mxu3 %v2823_v32  ;;  %v2074_v29 = vrot.slane %v2013_v21, 5  ;;  %v1737_v32 = vld [vmem:[#allocation2 + $0x48] sm:$0xf] }
 0x19a   : > { %v1666_v24 = vpop.permute.xlu0 %1665  ;;  %v1682_v45 = vpop.permute.xlu2 %1681  ;;  %v2609_v43 = vsel %vm3987_vm6, %v3189_v34, %v2608_v36  ;;  %v2441_v44 = vrot.slane %v2439_v37, 4  ;;  %v2014_v34 = vld [vmem:[#allocation2 + $0x38] sm:$0x1]  ;;  %v2012_v37 = vld [vmem:[#allocation2 + $0x30] sm:$0xe] }
 0x19b   : > { %1710 = vst.msk [vmem:[#allocation3 + $0x10] sm:$0xf] %vm1705_vm10, %v1666_v24  ;;  %2831 = vmatpush.bf16.msra.mxu0 %v3261_v35  ;;  %3265 = vmatpush.bf16.msra.mxu1 %v3261_v35  ;;  %v2444_v24 = vrot.slane %v2442_v38, 5  ;;  %v2076_v41 = vrot.slane %v2074_v29, 4  ;;  %v2077_v0 = vrot.slane %v2014_v34, 5 }
 0x19c   : > { %1718 = vst.msk [vmem:[#allocation3 + $0x30] sm:$0xf] %vm1705_vm10, %v1682_v45  ;;  %v2455_v45 = vor.u32 %v2454_v2, %v4254_v39  ;;  %v1867_v2 = vshrl.u32 %v1737_v32, 16 }
 0x19d   : > { %3266 = vmatpush.bf16.msra.mxu2 %v3261_v35  ;;  %3267 = vmatpush.bf16.msra.mxu3 %v3261_v35  ;;  %v2445_v53 = vor.u32 %v2444_v24, %v2441_v44  ;;  %v1876_v35 = vshll.u32 %v1738_v23, 16  ;;  %v2078_v50 = vsel %vm3987_vm6, %v2076_v41, %v2077_v0  ;;  %v2183_v0 = vld [vmem:[#allocation2 + $0x54] sm:$0xf] }
 0x19e   : > { %1964 = vrot.lane.b32.xlu1 %v1913_v28, %s3454_s7  ;;  %v1869_v46 = vrot.slane %v1867_v2, 4  ;;  %v2286_v2 = vld [vmem:[#allocation2 + $0x58] sm:$0xf] }
 0x19f   : > { %2832 = vmatpush.bf16.msra.mxu0 %v3260_v42  ;;  %3268 = vmatpush.bf16.msra.mxu1 %v3260_v42  ;;  %v2446_v4 = vrot.slane %v2445_v53, 4  ;;  %v1878_v44 = vrot.slane %v1876_v35, 5  ;;  %v2180_v35 = vld [vmem:[#allocation2 + $0x40] sm:$0xf] }
 0x1a0   : > { %v1674_v63 = vpop.permute.xlu1 %1673  ;;  %1962 = vrot.lane.b32.xlu0 %v1903_v55, %s3454_s7  ;;  %2113 = vrot.lane.b32.xlu2 %v2064_v57, %s3453_s29  ;;  %v2185_v55 = vld [vmem:[#allocation2 + $0x60] sm:$0xf]  ;;  %v2456_v57 = vrot.slane %v2455_v45, 4 }
 0x1a1   : > { %1714 = vst.msk [vmem:[#allocation3 + $0x20] sm:$0xf] %vm1705_vm10, %v1674_v63  ;;  %3269 = vmatpush.bf16.msra.mxu2 %v3260_v42  ;;  %3270 = vmatpush.bf16.msra.mxu3 %v3260_v42  ;;  %v2451_v13 = vsel %vm3939_vm2, %v2446_v4, %v4254_v39  ;;  %v1838_v39 = vshll.u32 %v1733_v31, 16  ;;  %v2280_v4 = vld [vmem:[#allocation2 + $0x40] sm:$0xf] }
 0x1a2   : > { %v1672_v5 = vpop.permute.xlu0 %1671  ;;  %v1939_v10 = vpop.permute.xlu2 %1938  ;;  %v2461_v9 = vsel %vm3939_vm2, %v2456_v57, %v2460_v58  ;;  %v2376_v56 = vshll.u32 %v2280_v4, 16 }
 0x1a3   : > { %1713 = vst.msk [vmem:[#allocation3 + $0x1c] sm:$0xf] %vm1705_vm10, %v1672_v5  ;;  %v2610_v5 = vrot.slane %v2608_v36, 4  ;;  %v1880_v36 = vshrl.u32 %v1738_v23, 16  ;;  %v1840_v45 = vrot.slane %v1838_v39, 5 }
 0x1a4   : > { %1987 = vst.msk [vmem:[#allocation3] sm:$0xf] %vm1986_vm11, %v1939_v10  ;;  %v1825_v10 = vor.u32 %v1824_v61, %v1821_v59 }
 0x1a5   : > { %v1882_v24 = vrot.slane %v1880_v36, 4 }
 0x1a6   : > { %2131 = vrot.lane.b32.xlu1 %v2096_v7, %s3453_s29  ;;  %v2611_v7 = vrot.slane %v2556_v62, 5 }
 0x1a7   : > { %v1883_v57 = vor.u32 %v1882_v24, %v1878_v44  ;;  %v2562_v24 = vld [vmem:[#allocation2 + $0x44] sm:$0x1] }
 0x1a8   : > { %v1680_v17 = vpop.permute.xlu1 %1679  ;;  %2211 = vrot.lane.b32.xlu0 %v2176_v12, %s3455_s5  ;;  %2209 = vrot.lane.b32.xlu2 %v2175_v51, %s3455_s5  ;;  %v2643_v51 = vrot.slane %v2570_v3, 5  ;;  %v2612_v15 = vsel %vm3987_vm6, %v2610_v5, %v2611_v7 }
 0x1a9   : > { %1717 = vst.msk [vmem:[#allocation3 + $0x2c] sm:$0xf] %vm1705_vm10, %v1680_v17  ;;  %v1826_v17 = vrot.slane %v1825_v10, 4  ;;  %v1884_v1 = vrot.slane %v1883_v57, 4 }
 0x1aa   : > { %v1678_v25 = vpop.permute.xlu0 %1677  ;;  %v4241_v27 = vpop.permute.xlu2 %2109  ;;  %v2645_v19 = vrot.slane %v2643_v51, 4 }
 0x1ab   : > { %1716 = vst.msk [vmem:[#allocation3 + $0x28] sm:$0xf] %vm1705_vm10, %v1678_v25  ;;  %v1834_v25 = vrot.slane %v1832_v14, 4 }
 0x1ad   : > { %v1835_v38 = vor.u32 %v1834_v25, %v1830_v18  ;;  %v2281_v25 = vld [vmem:[#allocation2 + $0x44] sm:$0x1] }
 0x1ae   : > { %2492 = vrot.lane.b32.xlu1 %v2341_v26, %s3457_s11 }
 0x1b0   : > { %v1686_v40 = vpop.permute.xlu1 %1685  ;;  %2490 = vrot.lane.b32.xlu0 %v2331_v33, %s3457_s11  ;;  %2133 = vrot.lane.b32.xlu2 %v2099_v60, %s3453_s29  ;;  %v2647_v33 = vsel %vm3987_vm6, %v2645_v19, %v2646_v20  ;;  %v2644_v60 = vsel %vm3987_vm6, %v3194_v22, %v2643_v51  ;;  %v2020_v51 = vld [vmem:[#allocation2 + $0x50] sm:$0x1]  ;;  %v2378_v22 = vrot.slane %v2376_v56, 5 }
 0x1b1   : > { %1720 = vst.msk [vmem:[#allocation3 + $0x38] sm:$0xf] %vm1705_vm10, %v1686_v40  ;;  %v1870_v40 = vshll.u32 %v1737_v32, 16  ;;  %v2091_v19 = vrot.slane %v2020_v51, 5 }
 0x1b2   : > { %v1684_v28 = vpop.permute.xlu0 %1683  ;;  %v4265_v47 = vpop.permute.xlu2 %2486 }
 0x1b3   : > { %1719 = vst.msk [vmem:[#allocation3 + $0x34] sm:$0xf] %vm1705_vm10, %v1684_v28  ;;  %v1836_v28 = vrot.slane %v1835_v38, 4 }
 0x1b5   : > { %v1841_v59 = vsel %vm3939_vm2, %v1836_v28, %v1840_v45  ;;  %v2424_v45 = vshll.u32 %v2286_v2, 16 }
 0x1b6   : > { %2659 = vrot.lane.b32.xlu1 %v2609_v43, %s3456_s10  ;;  %v3183_v43 = vrot.slane %v2012_v37, 9  ;;  %v2561_v37 = vld [vmem:[#allocation2 + $0x40] sm:$0xf] }
 0x1b8   : > { %v2108_v63 = vpop.permute.xlu1 %2107  ;;  %2231 = vrot.lane.b32.xlu0 %v2186_v52, %s3455_s5  ;;  %2229 = vrot.lane.b32.xlu2 %v2185_v55, %s3455_s5  ;;  %v1739_v52 = vld [vmem:[#allocation2 + $0x50] sm:$0x1]  ;;  %v2075_v55 = vsel %vm3987_vm6, %v3183_v43, %v2074_v29 }
 0x1b9   : > { %2156 = vst.msk [vmem:[#allocation3] sm:$0xf] %vm2155_vm13, %v2108_v63  ;;  %v1886_v58 = vshll.u32 %v1739_v52, 16  ;;  %v2019_v63 = vld [vmem:[#allocation2 + $0x4c] sm:$0xf] }
 0x1ba   : > { %v1941_v8 = vpop.permute.xlu0 %1940  ;;  %v2658_v12 = vpop.permute.xlu2 %2657 }
 0x1bb   : > { %1988 = vst.msk [vmem:[#allocation3 + $0x4] sm:$0xf] %vm1986_vm11, %v1941_v8  ;;  %v1888_v3 = vrot.slane %v1886_v58, 5  ;;  %v2179_v8 = vld [vmem:[#allocation2 + $0x3c] sm:$0xf] }
 0x1bc   : > { %2157 = vst.msk [vmem:[#allocation3 + $0x4] sm:$0xf] %vm2155_vm13, %v4241_v27  ;;  %v1831_v27 = vsel %vm3939_vm2, %v1826_v17, %v1830_v18  ;;  %v2367_v17 = vshrl.u32 %v2279_v11, 16  ;;  %v2370_v18 = vshll.u32 %v2279_v11, 16  ;;  %v1743_v58 = vld [vmem:[#allocation2 + $0x60] sm:$0xf] }
 0x1bd   : > { %v1889_v14 = vsel %vm3939_vm2, %v1884_v1, %v1888_v3  ;;  %v2567_v11 = vld [vmem:[#allocation2 + $0x58] sm:$0xf] }
 0x1be   : > { %2512 = vrot.lane.b32.xlu1 %v2461_v9, %s3457_s11  ;;  %v2088_v9 = vrot.slane %v2019_v63, 5 }
 0x1c0   : > { %v2208_v6 = vpop.permute.xlu1 %2207  ;;  %2510 = vrot.lane.b32.xlu0 %v2451_v13, %s3457_s11  ;;  %2661 = vrot.lane.b32.xlu2 %v2612_v15, %s3456_s10  ;;  %v2380_v13 = vshrl.u32 %v2280_v4, 16  ;;  %v2018_v15 = vld [vmem:[#allocation2 + $0x48] sm:$0xe] }
 0x1c1   : > { %2255 = vst.msk [vmem:[#allocation3 + $0x4] sm:$0xf] %vm2253_vm14, %v2208_v6  ;;  %v2090_v6 = vrot.slane %v2088_v9, 4  ;;  %v3185_v21 = vrot.slane %v2018_v15, 9 }
 0x1c2   : > { %v2206_v26 = vpop.permute.xlu0 %2205  ;;  %v2116_v30 = vpop.permute.xlu2 %2115  ;;  %v2382_v23 = vrot.slane %v2380_v13, 4  ;;  %v2184_v13 = vld [vmem:[#allocation2 + $0x58] sm:$0xf] }
 0x1c3   : > { %2254 = vst.msk [vmem:[#allocation3] sm:$0xf] %vm2253_vm14, %v2206_v26  ;;  %v2369_v26 = vrot.slane %v2367_v17, 4  ;;  %v2089_v34 = vsel %vm3987_vm6, %v3185_v21, %v2088_v9  ;;  %v1918_v9 = vshll.u32 %v1743_v58, 16 }
 0x1c4   : > { %2535 = vst.msk [vmem:[#allocation3] sm:$0xf] %vm2534_vm15, %v4265_v47  ;;  %v1872_v47 = vrot.slane %v1870_v40, 5  ;;  %v2383_v32 = vor.u32 %v2382_v23, %v2378_v22 }
 0x1c6   : > { %1950 = vrot.lane.b32.xlu1 %v1831_v27, %s3454_s7  ;;  %v1873_v61 = vor.u32 %v1872_v47, %v1869_v46  ;;  %v2372_v27 = vrot.slane %v2370_v18, 5  ;;  %v2384_v38 = vrot.slane %v2383_v32, 4  ;;  %v2560_v46 = vld [vmem:[#allocation2 + $0x3c] sm:$0xe]  ;;  %v2428_v47 = vshrl.u32 %v2286_v2, 16 }
 0x1c7   : > { %v1920_v18 = vrot.slane %v1918_v9, 5 }
 0x1c8   : > { %v2656_v42 = vpop.permute.xlu1 %2655  ;;  %2681 = vrot.lane.b32.xlu0 %v2647_v33, %s3456_s10  ;;  %2679 = vrot.lane.b32.xlu2 %v2644_v60, %s3456_s10  ;;  %v1874_v5 = vrot.slane %v1873_v61, 4  ;;  %v2386_v33 = vshll.u32 %v2281_v25, 16  ;;  %v2373_v36 = vor.u32 %v2372_v27, %v2369_v26  ;;  %v2426_v61 = vrot.slane %v2424_v45, 5  ;;  %v1640_v45 = vld [vmem:[#allocation2 + $0x64] sm:$0xf] }
 0x1c9   : > { %2704 = vst.msk [vmem:[#allocation3] sm:$0xf] %vm2703_vm0, %v2656_v42  ;;  %v2622_v42 = vrot.slane %v2561_v37, 5  ;;  %v2291_v37 = vld [vmem:[#allocation2 + $0x6c] sm:$0xf] }
 0x1ca   : > { %v2489_v49 = vpop.permute.xlu0 %2488  ;;  %v1957_v53 = vpop.permute.xlu2 %1956  ;;  %v1879_v16 = vsel %vm3939_vm2, %v1874_v5, %v1878_v44  ;;  %v2388_v39 = vrot.slane %v2386_v33, 5  ;;  %v2374_v40 = vrot.slane %v2373_v36, 4  ;;  %v2285_v44 = vld [vmem:[#allocation2 + $0x54] sm:$0xf]  ;;  %v2287_v5 = vld [vmem:[#allocation2 + $0x5c] sm:$0x1] }
 0x1cb   : > { %2536 = vst.msk [vmem:[#allocation3 + $0x4] sm:$0xf] %vm2534_vm15, %v2489_v49  ;;  %v2418_v52 = vshll.u32 %v2285_v44, 16  ;;  %v2434_v56 = vshll.u32 %v2287_v5, 16 }
 0x1cc   : > { %2705 = vst.msk [vmem:[#allocation3 + $0x4] sm:$0xf] %vm2703_vm0, %v2658_v12  ;;  %v2389_v28 = vsel %vm3939_vm2, %v2384_v38, %v2388_v39  ;;  %v2379_v49 = vsel %vm3939_vm2, %v2374_v40, %v2378_v22 }
 0x1cd   : > { %1996 = vst.msk [vmem:[#allocation3 + $0x24] sm:$0xf] %vm1986_vm11, %v1957_v53  ;;  %v2624_v53 = vrot.slane %v2622_v42, 4  ;;  %v2420_v1 = vrot.slane %v2418_v52, 5  ;;  %v2436_v21 = vrot.slane %v2434_v56, 5 }
 0x1ce   : > { %2121 = vrot.lane.b32.xlu1 %v2078_v50, %s3453_s29  ;;  %v2415_v50 = vshrl.u32 %v2285_v44, 16  ;;  %v2466_v44 = vshll.u32 %v2291_v37, 16 }
 0x1d0   : > { %v1949_v62 = vpop.permute.xlu1 %1948  ;;  %2119 = vrot.lane.b32.xlu0 %v2075_v55, %s3453_s29  ;;  %1952 = vrot.lane.b32.xlu2 %v1841_v59, %s3454_s7  ;;  %v2625_v55 = vrot.slane %v2562_v24, 5  ;;  %v3191_v59 = vrot.slane %v2560_v46, 9  ;;  %v2417_v63 = vrot.slane %v2415_v50, 4  ;;  %v1745_v24 = vld [vmem:[#allocation2 + $0x68] sm:$0x1] }
 0x1d1   : > { %1992 = vst.msk [vmem:[#allocation3 + $0x14] sm:$0xf] %vm1986_vm11, %v1949_v62  ;;  %v2430_v62 = vrot.slane %v2428_v47, 4 }
 0x1d2   : > { %v1947_v7 = vpop.permute.xlu0 %1946  ;;  %v2124_v10 = vpop.permute.xlu2 %2123  ;;  %v2626_v4 = vsel %vm3987_vm6, %v2624_v53, %v2625_v55  ;;  %v2024_v53 = vld [vmem:[#allocation2 + $0x60] sm:$0xe] }
 0x1d3   : > { %1991 = vst.msk [vmem:[#allocation3 + $0x10] sm:$0xf] %vm1986_vm11, %v1947_v7  ;;  %v3252_v12 = vld [vmem:[#allocation3] sm:$0xff]  ;;  %v2431_v51 = vor.u32 %v2430_v62, %v2426_v61 }
 0x1d4   : > { %2160 = vst.msk [vmem:[#allocation3 + $0x10] sm:$0xf] %vm2155_vm13, %v2116_v30  ;;  %3236 = vmatmul.msk.bf16.vlgmr.msra.gmra.mxu0 %vm2796_vm1, %v3252_v12  ;;  %v2092_v30 = vsel %vm3987_vm6, %v2090_v6, %v2091_v19  ;;  %v2623_v12 = vsel %vm3987_vm6, %v3191_v59, %v2622_v42  ;;  %v1744_v19 = vld [vmem:[#allocation2 + $0x64] sm:$0xf]  ;;  %v2292_v59 = vld [vmem:[#allocation2 + $0x70] sm:$0xf] }
 0x1d5   : > { %v1924_v27 = vshll.u32 %v1744_v19, 16 }
 0x1d6   : > { %2217 = vrot.lane.b32.xlu1 %v2179_v8, %s3455_s5  ;;  %v1915_v8 = vshrl.u32 %v1743_v58, 16 }
 0x1d8   : > { %v1955_v20 = vpop.permute.xlu1 %1954  ;;  %1960 = vrot.lane.b32.xlu0 %v1889_v14, %s3454_s7  ;;  %1958 = vrot.lane.b32.xlu2 %v1879_v16, %s3454_s7  ;;  %v2421_v14 = vor.u32 %v2420_v1, %v2417_v63  ;;  %v2636_v16 = vrot.slane %v2567_v11, 5  ;;  %v1917_v17 = vrot.slane %v1915_v8, 4 }
 0x1d9   : > { %1995 = vst.msk [vmem:[#allocation3 + $0x20] sm:$0xf] %vm1986_vm11, %v1955_v20  ;;  %v2432_v20 = vrot.slane %v2431_v51, 4 }
 0x1da   : > { %2164 = vst.msk [vmem:[#allocation3 + $0x20] sm:$0xf] %vm2155_vm13, %v2124_v10  ;;  %v2118_v29 = vpop.permute.xlu0 %2117  ;;  %v2497_v31 = vpop.permute.xlu2 %2496  ;;  %v2566_v10 = vld [vmem:[#allocation2 + $0x54] sm:$0xe]  ;;  %v2422_v22 = vrot.slane %v2421_v14, 4  ;;  %v1921_v26 = vor.u32 %v1920_v18, %v1917_v17  ;;  %v2638_v38 = vrot.slane %v2636_v16, 4 }
 0x1db   : > { %2161 = vst.msk [vmem:[#allocation3 + $0x14] sm:$0xf] %vm2155_vm13, %v2118_v29  ;;  %v3193_v15 = vrot.slane %v2566_v10, 9  ;;  %v2476_v10 = vshrl.u32 %v2292_v59, 16 }
 0x1dc   : > { %v2427_v32 = vsel %vm3939_vm2, %v2422_v22, %v2426_v61  ;;  %v1922_v33 = vrot.slane %v1921_v26, 4  ;;  %v3187_v61 = vrot.slane %v2024_v53, 9  ;;  %v2187_v22 = vld [vmem:[#allocation2 + $0x6c] sm:$0xf] }
 0x1dd   : > { %v2637_v25 = vsel %vm3987_vm6, %v3193_v15, %v2636_v16  ;;  %v2478_v14 = vrot.slane %v2476_v10, 4 }
 0x1de   : > { %2129 = vrot.lane.b32.xlu1 %v2092_v30, %s3453_s29  ;;  %v2437_v30 = vsel %vm3939_vm2, %v2432_v20, %v2436_v21  ;;  %v2574_v20 = vld [vmem:[#allocation2 + $0x74] sm:$0x1]  ;;  %v2188_v21 = vld [vmem:[#allocation2 + $0x70] sm:$0xf] }
 0x1e0   : > { %v2216_v60 = vpop.permute.xlu1 %2215  ;;  %2127 = vrot.lane.b32.xlu0 %v2089_v34, %s3453_s29  ;;  %2219 = vrot.lane.b32.xlu2 %v2180_v35, %s3455_s5  ;;  %v1926_v34 = vrot.slane %v1924_v27, 5  ;;  %v2568_v35 = vld [vmem:[#allocation2 + $0x5c] sm:$0x1]  ;;  %v2653_v27 = vrot.slane %v2574_v20, 5 }
 0x1e1   : > { %2259 = vst.msk [vmem:[#allocation3 + $0x14] sm:$0xf] %vm2253_vm14, %v2216_v60  ;;  %v2025_v60 = vld [vmem:[#allocation2 + $0x64] sm:$0xf]  ;;  %v2639_v39 = vrot.slane %v2568_v35, 5 }
 0x1e2   : > { %2540 = vst.msk [vmem:[#allocation3 + $0x14] sm:$0xf] %vm2534_vm15, %v2497_v31  ;;  %v2214_v41 = vpop.permute.xlu0 %2213  ;;  %v2664_v43 = vpop.permute.xlu2 %2663  ;;  %v1928_v31 = vshrl.u32 %v1744_v19, 16  ;;  %v2293_v19 = vld [vmem:[#allocation2 + $0x74] sm:$0x1] }
 0x1e3   : > { %2258 = vst.msk [vmem:[#allocation3 + $0x10] sm:$0xf] %vm2253_vm14, %v2214_v41  ;;  %v1927_v41 = vsel %vm3939_vm2, %v1922_v33, %v1926_v34  ;;  %v2640_v46 = vsel %vm3987_vm6, %v2638_v38, %v2639_v39 }
 0x1e4   : > { %v1930_v2 = vrot.slane %v1928_v31, 4 }
 0x1e6   : > { %2225 = vrot.lane.b32.xlu1 %v2183_v0, %s3455_s5  ;;  %v2102_v0 = vrot.slane %v2025_v60, 5  ;;  %v1931_v47 = vor.u32 %v1930_v2, %v1926_v34 }
 0x1e8   : > { %v2495_v57 = vpop.permute.xlu1 %2494  ;;  %2500 = vrot.lane.b32.xlu0 %v2389_v28, %s3457_s11  ;;  %2498 = vrot.lane.b32.xlu2 %v2379_v49, %s3457_s11  ;;  %v2026_v28 = vld [vmem:[#allocation2 + $0x68] sm:$0x1]  ;;  %v1934_v49 = vshll.u32 %v1745_v24, 16  ;;  %v2104_v50 = vrot.slane %v2102_v0, 4  ;;  %v1932_v62 = vrot.slane %v1931_v47, 4  ;;  %v2103_v9 = vsel %vm3987_vm6, %v3187_v61, %v2102_v0 }
 0x1e9   : > { %2539 = vst.msk [vmem:[#allocation3 + $0x10] sm:$0xf] %vm2534_vm15, %v2495_v57  ;;  %v2105_v52 = vrot.slane %v2026_v28, 5  ;;  %v2468_v57 = vrot.slane %v2466_v44, 5 }
 0x1ea   : > { %2708 = vst.msk [vmem:[#allocation3 + $0x10] sm:$0xf] %vm2703_vm0, %v2664_v43  ;;  %v2126_v3 = vpop.permute.xlu0 %2125  ;;  %v2505_v7 = vpop.permute.xlu2 %2504  ;;  %v2463_v43 = vshrl.u32 %v2291_v37, 16  ;;  %v1936_v63 = vrot.slane %v1934_v49, 5 }
 0x1eb   : > { %2165 = vst.msk [vmem:[#allocation3 + $0x24] sm:$0xf] %vm2155_vm13, %v2126_v3 }
 0x1ec   : > { %v2465_v55 = vrot.slane %v2463_v43, 4  ;;  %v1937_v11 = vsel %vm3939_vm2, %v1932_v62, %v1936_v63 }
 0x1ee   : > { %2669 = vrot.lane.b32.xlu1 %v2626_v4, %s3456_s10  ;;  %v2106_v4 = vsel %vm3987_vm6, %v2104_v50, %v2105_v52  ;;  %v2469_v5 = vor.u32 %v2468_v57, %v2465_v55 }
 0x1f0   : > { %v2224_v6 = vpop.permute.xlu1 %2223  ;;  %2667 = vrot.lane.b32.xlu0 %v2623_v12, %s3456_s10  ;;  %2227 = vrot.lane.b32.xlu2 %v2184_v13, %s3455_s5  ;;  %v2470_v12 = vrot.slane %v2469_v5, 4  ;;  %v2573_v13 = vld [vmem:[#allocation2 + $0x70] sm:$0xf] }
 0x1f1   : > { %2263 = vst.msk [vmem:[#allocation3 + $0x24] sm:$0xf] %vm2253_vm14, %v2224_v6  ;;  %v2650_v18 = vrot.slane %v2573_v13, 5 }
 0x1f2   : > { %2544 = vst.msk [vmem:[#allocation3 + $0x24] sm:$0xf] %vm2534_vm15, %v2505_v7  ;;  %v2222_v23 = vpop.permute.xlu0 %2221  ;;  %v1943_v29 = vpop.permute.xlu2 %1942  ;;  %v2472_v7 = vshll.u32 %v2292_v59, 16 }
 0x1f3   : > { %2262 = vst.msk [vmem:[#allocation3 + $0x20] sm:$0xf] %vm2253_vm14, %v2222_v23  ;;  %v2652_v26 = vrot.slane %v2650_v18, 4 }
 0x1f4   : > { %1989 = vst.msk [vmem:[#allocation3 + $0x8] sm:$0xf] %vm1986_vm11, %v1943_v29  ;;  %v2474_v51 = vrot.slane %v2472_v7, 5  ;;  %v2572_v29 = vld [vmem:[#allocation2 + $0x6c] sm:$0xe] }
 0x1f5   : > { %v3195_v31 = vrot.slane %v2572_v29, 9  ;;  %v2654_v35 = vsel %vm3987_vm6, %v2652_v26, %v2653_v27 }
 0x1f6   : > { %2675 = vrot.lane.b32.xlu1 %v2637_v25, %s3456_s10  ;;  %v2475_v17 = vsel %vm3939_vm2, %v2470_v12, %v2474_v51  ;;  %v2479_v23 = vor.u32 %v2478_v14, %v2474_v51  ;;  %v2482_v25 = vshll.u32 %v2293_v19, 16 }
 0x1f7   : > { %v2651_v60 = vsel %vm3987_vm6, %v3195_v31, %v2650_v18 }
 0x1f8   : > { %v2503_v36 = vpop.permute.xlu1 %2502  ;;  %2508 = vrot.lane.b32.xlu0 %v2437_v30, %s3457_s11  ;;  %2506 = vrot.lane.b32.xlu2 %v2427_v32, %s3457_s11  ;;  %v2480_v32 = vrot.slane %v2479_v23, 4  ;;  %v2484_v33 = vrot.slane %v2482_v25, 5 }
 0x1f9   : > { %2543 = vst.msk [vmem:[#allocation3 + $0x20] sm:$0xf] %vm2534_vm15, %v2503_v36 }
 0x1fa   : > { %v2666_v40 = vpop.permute.xlu0 %2665  ;;  %v2114_v42 = vpop.permute.xlu2 %2113  ;;  %v2485_v37 = vsel %vm3939_vm2, %v2480_v32, %v2484_v33  ;;  %vm2907_vm2 = vcmask 64512  }
 0x1fb   : > { %2709 = vst.msk [vmem:[#allocation3 + $0x14] sm:$0xf] %vm2703_vm0, %v2666_v40 }
 0x1fe   : > { %1966 = vrot.lane.b32.xlu1 %v1927_v41, %s3454_s7 }
 0x200   : > { %v2674_v58 = vpop.permute.xlu1 %2673  ;;  %1687 = vrot.lane.b32.xlu0 %v1640_v45, %s3452_s28  ;;  %2677 = vrot.lane.b32.xlu2 %v2640_v46, %s3456_s10  ;;  %s3245_s28 = sshll.u32 %s3434_s16, 1 }
 0x201   : > { %2713 = vst.msk [vmem:[#allocation3 + $0x24] sm:$0xf] %vm2703_vm0, %v2674_v58 }
 0x202   : > { %v2672_v1 = vpop.permute.xlu0 %2671  ;;  %v3254_v3 = vld [vmem:[#allocation3 + $0x10] sm:$0xff]  ;;  %v2210_v8 = vpop.permute.xlu2 %2209 }
 0x203   : > { %2712 = vst.msk [vmem:[#allocation3 + $0x20] sm:$0xf] %vm2703_vm0, %v2672_v1  ;;  %3238 = vmatmul.msk.bf16.vlgmr.msra.gmra.mxu1 %vm2796_vm1, %v3254_v3 }
 0x206   : > { %2137 = vrot.lane.b32.xlu1 %v2106_v4, %s3453_s29 }
 0x208   : > { %v2112_v56 = vpop.permute.xlu1 %2111  ;;  %2135 = vrot.lane.b32.xlu0 %v2103_v9, %s3453_s29  ;;  %1968 = vrot.lane.b32.xlu2 %v1937_v11, %s3454_s7  ;;  %s3026_s29 = sadd.s32 %s3430_s15, %s3245_s28 }
 0x209   : > { %2158 = vst.msk [vmem:[#allocation3 + $0x8] sm:$0xf] %vm2155_vm13, %v2112_v56  ;;  %s3246_s7 = sshll.u32 %s3026_s29, 1 }
 0x20a   : > { %2256 = vst.msk [vmem:[#allocation3 + $0x8] sm:$0xf] %vm2253_vm14, %v2210_v8  ;;  %v1945_v15 = vpop.permute.xlu0 %1944  ;;  %v3256_v16 = vld [vmem:[#allocation3 + $0x20] sm:$0xff]  ;;  %v2134_v6 = vpop.permute.xlu2 %2133 }
 0x20b   : > { %1990 = vst.msk [vmem:[#allocation3 + $0xc] sm:$0xf] %vm1986_vm11, %v1945_v15  ;;  %3240 = vmatmul.msk.bf16.vlgmr.msra.gmra.mxu2 %vm2796_vm1, %v3256_v16 }
 0x20c   : > { %2159 = vst.msk [vmem:[#allocation3 + $0xc] sm:$0xf] %vm2155_vm13, %v2114_v42 }
 0x20e   : > { %2514 = vrot.lane.b32.xlu1 %v2475_v17, %s3457_s11 }
 0x210   : > { %v1965_v30 = vpop.permute.xlu1 %1964  ;;  %2235 = vrot.lane.b32.xlu0 %v2188_v21, %s3455_s5  ;;  %2233 = vrot.lane.b32.xlu2 %v2187_v22, %s3455_s5 }
 0x211   : > { %2000 = vst.msk [vmem:[#allocation3 + $0x34] sm:$0xf] %vm1986_vm11, %v1965_v30 }
 0x212   : > { %2169 = vst.msk [vmem:[#allocation3 + $0x34] sm:$0xf] %vm2155_vm13, %v2134_v6  ;;  %v1963_v34 = vpop.permute.xlu0 %1962  ;;  %v2230_v36 = vpop.permute.xlu2 %2229 }
 0x213   : > { %1999 = vst.msk [vmem:[#allocation3 + $0x30] sm:$0xf] %vm1986_vm11, %v1963_v34 }
 0x216   : > { %2685 = vrot.lane.b32.xlu1 %v2654_v35, %s3456_s10 }
 0x218   : > { %v2132_v38 = vpop.permute.xlu1 %2131  ;;  %2683 = vrot.lane.b32.xlu0 %v2651_v60, %s3456_s10  ;;  %2516 = vrot.lane.b32.xlu2 %v2485_v37, %s3457_s11  ;;  %s3030_s10 = sshll.u32 %s3624_s8, 4  ;;  %s3012_s11 = scalar_lea.sflag [#allocation5], %s190_s4  ;;  %s3031_s10 = int_to_ptr.vmem [resolvable:$true] %s3030_s10 }
 0x219   : > { %2168 = vst.msk [vmem:[#allocation3 + $0x30] sm:$0xf] %vm2155_vm13, %v2132_v38 }
 0x21a   : > { %2266 = vst.msk [vmem:[#allocation3 + $0x30] sm:$0xf] %vm2253_vm14, %v2230_v36  ;;  %v2212_v39 = vpop.permute.xlu0 %2211  ;;  %v2662_v2 = vpop.permute.xlu2 %2661 }
 0x21b   : > { %2257 = vst.msk [vmem:[#allocation3 + $0xc] sm:$0xf] %vm2253_vm14, %v2212_v39 }
 0x220   : > { %v2493_v40 = vpop.permute.xlu1 %2492 }
 0x221   : > { %2538 = vst.msk [vmem:[#allocation3 + $0xc] sm:$0xf] %vm2534_vm15, %v2493_v40 }
 0x222   : > { %2707 = vst.msk [vmem:[#allocation3 + $0xc] sm:$0xf] %vm2703_vm0, %v2662_v2  ;;  %v2491_v48 = vpop.permute.xlu0 %2490  ;;  %v2680_v54 = vpop.permute.xlu2 %2679 }
 0x223   : > { %2537 = vst.msk [vmem:[#allocation3 + $0x8] sm:$0xf] %vm2534_vm15, %v2491_v48 }
 0x228   : > { %v2660_v41 = vpop.permute.xlu1 %2659 }
 0x229   : > { %2706 = vst.msk [vmem:[#allocation3 + $0x8] sm:$0xf] %vm2703_vm0, %v2660_v41 }
 0x22a   : > { %v2232_v0 = vpop.permute.xlu0 %2231  ;;  %v1953_v42 = vpop.permute.xlu2 %1952 }
 0x22b   : > { %2267 = vst.msk [vmem:[#allocation3 + $0x34] sm:$0xf] %vm2253_vm14, %v2232_v0 }
 0x22c   : > { %1994 = vst.msk [vmem:[#allocation3 + $0x1c] sm:$0xf] %vm1986_vm11, %v1953_v42 }
 0x230   : > { %v2513_v43 = vpop.permute.xlu1 %2512  ;;  %v3253_v44 = vld [vmem:[#allocation3 + $0x8] sm:$0xff] }
 0x231   : > { %2548 = vst.msk [vmem:[#allocation3 + $0x34] sm:$0xf] %vm2534_vm15, %v2513_v43  ;;  %3237 = vmatmul.msk.bf16.gmra.mxu0 %vm2796_vm1, %v3253_v44 }
 0x232   : > { %v2511_v24 = vpop.permute.xlu0 %2510  ;;  %v1959_v28 = vpop.permute.xlu2 %1958 }
 0x233   : > { %2547 = vst.msk [vmem:[#allocation3 + $0x30] sm:$0xf] %vm2534_vm15, %v2511_v24 }
 0x234   : > { %2716 = vst.msk [vmem:[#allocation3 + $0x30] sm:$0xf] %vm2703_vm0, %v2680_v54 }
 0x235   : > { %1997 = vst.msk [vmem:[#allocation3 + $0x28] sm:$0xf] %vm1986_vm11, %v1959_v28 }
 0x238   : > { %v1951_v45 = vpop.permute.xlu1 %1950 }
 0x239   : > { %1993 = vst.msk [vmem:[#allocation3 + $0x18] sm:$0xf] %vm1986_vm11, %v1951_v45 }
 0x23a   : > { %v2682_v46 = vpop.permute.xlu0 %2681  ;;  %v2220_v47 = vpop.permute.xlu2 %2219 }
 0x23b   : > { %2717 = vst.msk [vmem:[#allocation3 + $0x34] sm:$0xf] %vm2703_vm0, %v2682_v46 }
 0x240   : > { %v2122_v49 = vpop.permute.xlu1 %2121 }
 0x241   : > { %2163 = vst.msk [vmem:[#allocation3 + $0x1c] sm:$0xf] %vm2155_vm13, %v2122_v49 }
 0x242   : > { %2261 = vst.msk [vmem:[#allocation3 + $0x1c] sm:$0xf] %vm2253_vm14, %v2220_v47  ;;  %v2120_v50 = vpop.permute.xlu0 %2119  ;;  %v3258_v52 = vld [vmem:[#allocation3 + $0x30] sm:$0xff]  ;;  %v2499_v53 = vpop.permute.xlu2 %2498 }
 0x243   : > { %2162 = vst.msk [vmem:[#allocation3 + $0x18] sm:$0xf] %vm2155_vm13, %v2120_v50  ;;  %3242 = vmatmul.msk.bf16.vlgmr.msra.gmra.mxu3 %vm2796_vm1, %v3258_v52 }
 0x248   : > { %v2218_v55 = vpop.permute.xlu1 %2217 }
 0x249   : > { %2260 = vst.msk [vmem:[#allocation3 + $0x18] sm:$0xf] %vm2253_vm14, %v2218_v55 }
 0x24a   : > { %2541 = vst.msk [vmem:[#allocation3 + $0x18] sm:$0xf] %vm2534_vm15, %v2499_v53  ;;  %v1961_v57 = vpop.permute.xlu0 %1960  ;;  %v2228_v58 = vpop.permute.xlu2 %2227 }
 0x24b   : > { %1998 = vst.msk [vmem:[#allocation3 + $0x2c] sm:$0xf] %vm1986_vm11, %v1961_v57 }
 0x250   : > { %v2130_v59 = vpop.permute.xlu1 %2129 }
 0x251   : > { %2167 = vst.msk [vmem:[#allocation3 + $0x2c] sm:$0xf] %vm2155_vm13, %v2130_v59  ;;  %v4433_v62 = vpop.f32.mrf.mxu0 }
 0x252   : > { %2265 = vst.msk [vmem:[#allocation3 + $0x2c] sm:$0xf] %vm2253_vm14, %v2228_v58  ;;  %v2128_v61 = vpop.permute.xlu0 %2127  ;;  %v2874_v63 = vpack.c.bf16 %v4433_v62, %v4433_v62  ;;  %v2507_v3 = vpop.permute.xlu2 %2506  ;;  %v2945_v35 = vmul.f32 %v4433_v62, %v4433_v62  ;;  %v2908_v60 = vsel %vm2907_vm2, %v4433_v62, 0.0 }
 0x253   : > { %2166 = vst.msk [vmem:[#allocation3 + $0x28] sm:$0xf] %vm2155_vm13, %v2128_v61 }
 0x254   : > { %2891 = vst.msk [vmem:[%s3589_s9] sm:$0xf] %vm2890_vm3, %v2874_v63  ;;  %v2961_v2 = vsel %vm2907_vm2, %v2945_v35, 0.0 }
 0x258   : > { %v2226_v1 = vpop.permute.xlu1 %2225 }
 0x259   : > { %2264 = vst.msk [vmem:[#allocation3 + $0x28] sm:$0xf] %vm2253_vm14, %v2226_v1  ;;  %v2836_v5 = vpop.f32.mrf.mxu0 }
 0x25a   : > { %2545 = vst.msk [vmem:[#allocation3 + $0x28] sm:$0xf] %vm2534_vm15, %v2507_v3  ;;  %v2501_v4 = vpop.permute.xlu0 %2500  ;;  %v2875_v7 = vpack.c.bf16 %v2836_v5, %v2836_v5  ;;  %v2678_v10 = vpop.permute.xlu2 %2677  ;;  %v2946_v34 = vmul.f32 %v2836_v5, %v2836_v5  ;;  %v2909_v36 = vsel %vm2907_vm2, %v2836_v5, 0.0 }
 0x25b   : > { %2542 = vst.msk [vmem:[#allocation3 + $0x1c] sm:$0xf] %vm2534_vm15, %v2501_v4  ;;  %v2910_v38 = vadd.f32 %v2909_v36, %v2908_v60 }
 0x25c   : > { %2892 = vst.msk [vmem:[%s3589_s9 + $0x4] sm:$0xf] %vm2890_vm3, %v2875_v7  ;;  %v2962_v37 = vsel %vm2907_vm2, %v2946_v34, 0.0 }
 0x25d   : > { %v2963_v41 = vadd.f32 %v2962_v37, %v2961_v2 }
 0x260   : > { %v2670_v8 = vpop.permute.xlu1 %2669 }
 0x261   : > { %2711 = vst.msk [vmem:[#allocation3 + $0x1c] sm:$0xf] %vm2703_vm0, %v2670_v8 }
 0x262   : > { %v2668_v9 = vpop.permute.xlu0 %2667  ;;  %v1969_v56 = vpop.permute.xlu2 %1968 }
 0x263   : > { %2710 = vst.msk [vmem:[#allocation3 + $0x18] sm:$0xf] %vm2703_vm0, %v2668_v9 }
 0x268   : > { %v2676_v11 = vpop.permute.xlu1 %2675 }
 0x269   : > { %2714 = vst.msk [vmem:[#allocation3 + $0x28] sm:$0xf] %vm2703_vm0, %v2676_v11 }
 0x26a   : > { %v2509_v12 = vpop.permute.xlu0 %2508  ;;  %v3255_v51 = vld [vmem:[#allocation3 + $0x18] sm:$0xff]  ;;  %v2234_v17 = vpop.permute.xlu2 %2233 }
 0x26b   : > { %2546 = vst.msk [vmem:[#allocation3 + $0x2c] sm:$0xf] %vm2534_vm15, %v2509_v12  ;;  %3239 = vmatmul.msk.bf16.gmra.mxu1 %vm2796_vm1, %v3255_v51 }
 0x26c   : > { %2715 = vst.msk [vmem:[#allocation3 + $0x2c] sm:$0xf] %vm2703_vm0, %v2678_v10 }
 0x270   : > { %v1967_v13 = vpop.permute.xlu1 %1966 }
 0x271   : > { %2001 = vst.msk [vmem:[#allocation3 + $0x38] sm:$0xf] %vm1986_vm11, %v1967_v13 }
 0x272   : > { %v1688_v14 = vpop.permute.xlu0 %1687  ;;  %v2517_v22 = vpop.permute.xlu2 %2516 }
 0x273   : > { %1721 = vst.msk [vmem:[#allocation3 + $0x3c] sm:$0xf] %vm1705_vm10, %v1688_v14  ;;  %v3257_v15 = vld [vmem:[#allocation3 + $0x28] sm:$0xff] }
 0x274   : > { %2002 = vst.msk [vmem:[#allocation3 + $0x3c] sm:$0xf] %vm1986_vm11, %v1969_v56  ;;  %3241 = vmatmul.msk.bf16.gmra.mxu2 %vm2796_vm1, %v3257_v15 }
 0x278   : > { %v2138_v16 = vpop.permute.xlu1 %2137 }
 0x279   : > { %2171 = vst.msk [vmem:[#allocation3 + $0x3c] sm:$0xf] %vm2155_vm13, %v2138_v16 }
 0x27a   : > { %v2136_v18 = vpop.permute.xlu0 %2135 }
 0x27b   : > { %2170 = vst.msk [vmem:[#allocation3 + $0x38] sm:$0xf] %vm2155_vm13, %v2136_v18 }
 0x27c   : > { %2268 = vst.msk [vmem:[#allocation3 + $0x38] sm:$0xf] %vm2253_vm14, %v2234_v17 }
 0x280   : > { %v2515_v6 = vpop.permute.xlu1 %2514  ;;  %v2844_v19 = vpop.f32.mrf.mxu1 }
 0x281   : > { %2549 = vst.msk [vmem:[#allocation3 + $0x38] sm:$0xf] %vm2534_vm15, %v2515_v6  ;;  %v2878_v21 = vpack.c.bf16 %v2844_v19, %v2844_v19  ;;  %v2949_v24 = vmul.f32 %v2844_v19, %v2844_v19  ;;  %v2915_v49 = vsel %vm2907_vm2, %v2844_v19, 0.0 }
 0x282   : > { %v2236_v20 = vpop.permute.xlu0 %2235 }
 0x283   : > { %2269 = vst.msk [vmem:[#allocation3 + $0x3c] sm:$0xf] %vm2253_vm14, %v2236_v20  ;;  %v2968_v55 = vsel %vm2907_vm2, %v2949_v24, 0.0 }
 0x284   : > { %2895 = vst.msk [vmem:[%s3589_s9 + $0x10] sm:$0xf] %vm2890_vm3, %v2878_v21 }
 0x285   : > { %2550 = vst.msk [vmem:[#allocation3 + $0x3c] sm:$0xf] %vm2534_vm15, %v2517_v22 }
 0x288   : > { %v2686_v23 = vpop.permute.xlu1 %2685  ;;  %v2846_v25 = vpop.f32.mrf.mxu1 }
 0x289   : > { %2719 = vst.msk [vmem:[#allocation3 + $0x3c] sm:$0xf] %vm2703_vm0, %v2686_v23  ;;  %v2879_v27 = vpack.c.bf16 %v2846_v25, %v2846_v25  ;;  %v2950_v3 = vmul.f32 %v2846_v25, %v2846_v25  ;;  %v2917_v5 = vsel %vm2907_vm2, %v2846_v25, 0.0 }
 0x28a   : > { %v2684_v26 = vpop.permute.xlu0 %2683 }
 0x28b   : > { %2718 = vst.msk [vmem:[#allocation3 + $0x38] sm:$0xf] %vm2703_vm0, %v2684_v26  ;;  %v2970_v9 = vsel %vm2907_vm2, %v2950_v3, 0.0 }
 0x28c   : > { %2896 = vst.msk [vmem:[%s3589_s9 + $0x14] sm:$0xf] %vm2890_vm3, %v2879_v27 }
 0x28e   : > { %v4467_v29 = vpop.f32.mrf.mxu2 }
 0x28f   : > { %v2882_v30 = vpack.c.bf16 %v4467_v29, %v4467_v29  ;;  %v2953_v56 = vmul.f32 %v4467_v29, %v4467_v29  ;;  %v2923_v18 = vsel %vm2907_vm2, %v4467_v29, 0.0 }
 0x291   : > { %2899 = vst.msk [vmem:[%s3589_s9 + $0x20] sm:$0xf] %vm2890_vm3, %v2882_v30  ;;  %v2976_v21 = vsel %vm2907_vm2, %v2953_v56, 0.0 }
 0x292   : > { %v3259_v31 = vld [vmem:[#allocation3 + $0x38] sm:$0xff] }
 0x293   : > { %3243 = vmatmul.msk.bf16.gmra.mxu3 %vm2796_vm1, %v3259_v31 }
 0x296   : > { %v4474_v32 = vpop.f32.mrf.mxu2 }
 0x297   : > { %v2883_v33 = vpack.c.bf16 %v4474_v32, %v4474_v32  ;;  %v2954_v25 = vmul.f32 %v4474_v32, %v4474_v32  ;;  %v2925_v27 = vsel %vm2907_vm2, %v4474_v32, 0.0 }
 0x299   : > { %2900 = vst.msk [vmem:[%s3589_s9 + $0x24] sm:$0xf] %vm2890_vm3, %v2883_v33  ;;  %v2978_v31 = vsel %vm2907_vm2, %v2954_v25, 0.0 }
 0x2ae   : > { %v2839_v39 = vpop.f32.mrf.mxu0 }
 0x2af   : > { %v2876_v40 = vpack.c.bf16 %v2839_v39, %v2839_v39  ;;  %v2911_v48 = vsel %vm2907_vm2, %v2839_v39, 0.0  ;;  %v2947_v54 = vmul.f32 %v2839_v39, %v2839_v39 }
 0x2b0   : > { %v2912_v0 = vadd.f32 %v2911_v48, %v2910_v38 }
 0x2b1   : > { %2893 = vst.msk [vmem:[%s3589_s9 + $0x8] sm:$0xf] %vm2890_vm3, %v2876_v40  ;;  %v2964_v42 = vsel %vm2907_vm2, %v2947_v54, 0.0 }
 0x2b2   : > { %v2965_v43 = vadd.f32 %v2964_v42, %v2963_v41 }
 0x2b6   : > { %v2841_v44 = vpop.f32.mrf.mxu0 }
 0x2b7   : > { %v2877_v28 = vpack.c.bf16 %v2841_v44, %v2841_v44  ;;  %v2913_v45 = vsel %vm2907_vm2, %v2841_v44, 0.0  ;;  %v2948_v46 = vmul.f32 %v2841_v44, %v2841_v44 }
 0x2b8   : > { %v2914_v47 = vadd.f32 %v2913_v45, %v2912_v0 }
 0x2b9   : > { %2894 = vst.msk [vmem:[%s3589_s9 + $0xc] sm:$0xf] %vm2890_vm3, %v2877_v28  ;;  %v2966_v50 = vsel %vm2907_vm2, %v2948_v46, 0.0 }
 0x2ba   : > { %v2916_v52 = vadd.f32 %v2915_v49, %v2914_v47  ;;  %v2967_v53 = vadd.f32 %v2966_v50, %v2965_v43 }
 0x2bc   : > { %v2969_v57 = vadd.f32 %v2968_v55, %v2967_v53  ;;  %v2918_v8 = vadd.f32 %v2917_v5, %v2916_v52 }
 0x2be   : > { %v2971_v12 = vadd.f32 %v2970_v9, %v2969_v57 }
 0x2c6   : > { %v2864_v58 = vpop.f32.mrf.mxu3 }
 0x2c7   : > { %v2886_v59 = vpack.c.bf16 %v2864_v58, %v2864_v58  ;;  %v2957_v37 = vmul.f32 %v2864_v58, %v2864_v58  ;;  %v2931_v48 = vsel %vm2907_vm2, %v2864_v58, 0.0 }
 0x2c9   : > { %2903 = vst.msk [vmem:[%s3589_s9 + $0x30] sm:$0xf] %vm2890_vm3, %v2886_v59  ;;  %v2984_v42 = vsel %vm2907_vm2, %v2957_v37, 0.0 }
 0x2ce   : > { %v2866_v61 = vpop.f32.mrf.mxu3 }
 0x2cf   : > { %v2887_v62 = vpack.c.bf16 %v2866_v61, %v2866_v61  ;;  %v2958_v28 = vmul.f32 %v2866_v61, %v2866_v61  ;;  %v2933_v46 = vsel %vm2907_vm2, %v2866_v61, 0.0 }
 0x2d1   : > { %2904 = vst.msk [vmem:[%s3589_s9 + $0x34] sm:$0xf] %vm2890_vm3, %v2887_v62  ;;  %v2986_v50 = vsel %vm2907_vm2, %v2958_v28, 0.0 }
 0x2e8   : > { %v2849_v63 = vpop.f32.mrf.mxu1 }
 0x2e9   : > { %v2880_v1 = vpack.c.bf16 %v2849_v63, %v2849_v63  ;;  %v2951_v4 = vmul.f32 %v2849_v63, %v2849_v63  ;;  %v2919_v7 = vsel %vm2907_vm2, %v2849_v63, 0.0 }
 0x2ea   : > { %v2920_v11 = vadd.f32 %v2919_v7, %v2918_v8 }
 0x2eb   : > { %2897 = vst.msk [vmem:[%s3589_s9 + $0x18] sm:$0xf] %vm2890_vm3, %v2880_v1  ;;  %v2972_v10 = vsel %vm2907_vm2, %v2951_v4, 0.0 }
 0x2ec   : > { %v2973_v16 = vadd.f32 %v2972_v10, %v2971_v12 }
 0x2f0   : > { %v2851_v51 = vpop.f32.mrf.mxu1 }
 0x2f1   : > { %v2881_v13 = vpack.c.bf16 %v2851_v51, %v2851_v51  ;;  %v2921_v14 = vsel %vm2907_vm2, %v2851_v51, 0.0  ;;  %v2952_v15 = vmul.f32 %v2851_v51, %v2851_v51 }
 0x2f2   : > { %v2922_v17 = vadd.f32 %v2921_v14, %v2920_v11 }
 0x2f3   : > { %2898 = vst.msk [vmem:[%s3589_s9 + $0x1c] sm:$0xf] %vm2890_vm3, %v2881_v13  ;;  %v2974_v6 = vsel %vm2907_vm2, %v2952_v15, 0.0 }
 0x2f4   : > { %v2924_v19 = vadd.f32 %v2923_v18, %v2922_v17  ;;  %v2975_v20 = vadd.f32 %v2974_v6, %v2973_v16 }
 0x2f6   : > { %v2977_v22 = vadd.f32 %v2976_v21, %v2975_v20  ;;  %v2926_v30 = vadd.f32 %v2925_v27, %v2924_v19 }
 0x2f7   : > { %v2859_v23 = vpop.f32.mrf.mxu2 }
 0x2f8   : > { %v2884_v26 = vpack.c.bf16 %v2859_v23, %v2859_v23  ;;  %v2955_v29 = vmul.f32 %v2859_v23, %v2859_v23  ;;  %v2927_v33 = vsel %vm2907_vm2, %v2859_v23, 0.0  ;;  %v2979_v34 = vadd.f32 %v2978_v31, %v2977_v22 }
 0x2f9   : > { %v2928_v36 = vadd.f32 %v2927_v33, %v2926_v30 }
 0x2fa   : > { %2901 = vst.msk [vmem:[%s3589_s9 + $0x28] sm:$0xf] %vm2890_vm3, %v2884_v26  ;;  %v2980_v35 = vsel %vm2907_vm2, %v2955_v29, 0.0 }
 0x2fb   : > { %v2981_v2 = vadd.f32 %v2980_v35, %v2979_v34 }
 0x2ff   : > { %v2861_v60 = vpop.f32.mrf.mxu2 }
 0x300   : > { %v2885_v38 = vpack.c.bf16 %v2861_v60, %v2861_v60  ;;  %v2929_v39 = vsel %vm2907_vm2, %v2861_v60, 0.0  ;;  %v2956_v32 = vmul.f32 %v2861_v60, %v2861_v60 }
 0x301   : > { %v2930_v40 = vadd.f32 %v2929_v39, %v2928_v36 }
 0x302   : > { %2902 = vst.msk [vmem:[%s3589_s9 + $0x2c] sm:$0xf] %vm2890_vm3, %v2885_v38  ;;  %v2982_v54 = vsel %vm2907_vm2, %v2956_v32, 0.0 }
 0x303   : > { %v2932_v41 = vadd.f32 %v2931_v48, %v2930_v40  ;;  %v2983_v0 = vadd.f32 %v2982_v54, %v2981_v2 }
 0x305   : > { %v2985_v43 = vadd.f32 %v2984_v42, %v2983_v0  ;;  %v2934_v49 = vadd.f32 %v2933_v46, %v2932_v41 }
 0x307   : > { %v2987_v55 = vadd.f32 %v2986_v50, %v2985_v43 }
 0x316   : > { %v2869_v44 = vpop.f32.mrf.mxu3 }
 0x317   : > { %v2888_v24 = vpack.c.bf16 %v2869_v44, %v2869_v44  ;;  %v2959_v45 = vmul.f32 %v2869_v44, %v2869_v44  ;;  %v2935_v47 = vsel %vm2907_vm2, %v2869_v44, 0.0 }
 0x318   : > { %v2936_v53 = vadd.f32 %v2935_v47, %v2934_v49 }
 0x319   : > { %2905 = vst.msk [vmem:[%s3589_s9 + $0x38] sm:$0xf] %vm2890_vm3, %v2888_v24  ;;  %v2988_v52 = vsel %vm2907_vm2, %v2959_v45, 0.0 }
 0x31a   : > { %v2989_v63 = vadd.f32 %v2988_v52, %v2987_v55 }
 0x31e   : > { %v2871_v57 = vpop.f32.mrf.mxu3 }
 0x31f   : > { %v2889_v58 = vpack.c.bf16 %v2871_v57, %v2871_v57  ;;  %v2937_v59 = vsel %vm2907_vm2, %v2871_v57, 0.0  ;;  %v2960_v62 = vmul.f32 %v2871_v57, %v2871_v57 }
 0x320   : > { %v2938_v1 = vadd.f32 %v2937_v59, %v2936_v53 }
 0x321   : > { %2906 = vst.msk [vmem:[%s3589_s9 + $0x3c] sm:$0xf] %vm2890_vm3, %v2889_v58  ;;  %v2990_v61 = vsel %vm2907_vm2, %v2960_v62, 0.0  ;;  %s3028_s9 = scalar_lea.hbm %s4592_s3, %s3246_s7 }
 0x322   : > { %v2939_v3 = vrot.slane %v2938_v1, 4  ;;  %v2991_v4 = vadd.f32 %v2990_v61, %v2989_v63  ;;  %s3032_s15 = sshll.u32 %s3028_s9, 4  ;;  %s3033_s15 = int_to_ptr.hbm [resolvable:$true] %s3032_s15 }
 0x323   : > { %s3366_s24 = sshra.s32 %s3033_s15, 4  ;;  %s3367_s24 = int_to_ptr.hbm [resolvable:$true] %s3366_s24 }
 0x324   : > { %v2940_v5 = vadd.f32 %v2939_v3, %v2938_v1  ;;  %v2992_v7 = vrot.slane %v2991_v4, 4  ;;  %s3368_s27 = scalar_lea.hbm %s3367_s24, 2  ;;  %p3373_p7 = scmp.lt.s32.totalorder %s3367_s24, %s4592_s3 }
 0x325   : > { %p3369_p4 = scmp.ne.s32.totalorder %s3367_s24, %s3368_s27  ;;  %p3374_p9 = scmp.lt.s32.totalorder %s3372_s20, %s3368_s27 }
 0x326   : > { %v2941_v8 = vrot.slane %v2940_v5, 2  ;;  %v2993_v9 = vadd.f32 %v2992_v7, %v2991_v4 }
 0x327   : > { %p3370_p5 = pnand %p3369_p4, %p3529_p3  ;;  %p3375_p10 = por %p3374_p9, %p3373_p7 }
 0x328   : > { %v2942_v10 = vadd.f32 %v2941_v8, %v2940_v5  ;;  %v2994_v11 = vrot.slane %v2993_v9, 2 }
 0x329   : > { %p3371_p6 = pneg %p3370_p5 }
 0x32a   : > { %v2943_v12 = vrot.slane %v2942_v10, 1  ;;  %v2995_v51 = vadd.f32 %v2994_v11, %v2993_v9 }
 0x32b   : > { %p3376_p11 = pnand %p3375_p10, %p3371_p6 }
 0x32c   : > { %v2944_v56 = vadd.f32 %v2943_v12, %v2942_v10  ;;  %v2996_v13 = vrot.slane %v2995_v51, 1 }
 0x32e   : > { %v2997_v14 = vadd.f32 %v2996_v13, %v2995_v51  ;;  %2999 = vst.msk [vmem:[%s3624_s8] sm:$0x1] %vm2998_vm4, %v2944_v56 }
 0x330   : > { %3000 = vst.msk [vmem:[%s3624_s8 + $0x1] sm:$0x1] %vm2998_vm4, %v2997_v14 }
 0x331   : > { %3379 = shalt.err (!%p3376_p11)
}
 0x332   : > { %3271 = dma.vmem_to_hbm [thread:$0]  (%p3529_p3), %s3031_s10, 32, %s3033_s15, %s3012_s11  }
 0x333 PF: > { %p3277_p12 = scmp.ge.s32.totalorder %s3446_s19, 2  ;;  %s3057_s4 = sand.u32 1, %s3418_s12  }
 0x334   : > { %s3058_s8 = scalar_lea.sflag [#allocation5], %s3057_s4 }
 0x335   : > { %p3274_p13 = pnand %p3277_p12, %p3538_p8 }
 0x337   : > { %p3275_p0 = pneg %p3274_p13 }
 0x339   : > { %3413 = dma.done.wait (%p3275_p0), %s3058_s8, 32  }
 0x33a   : > { %3415 = vsyncadd (%p3275_p0), %s3058_s8, 4294967264  ;;  %s17_s19 = sadd.s32 1, %s3446_s19   ;;  %s4615_s12 = smov %s3422_s13 }
 0x33b   : > { %p14_p1 = scmp.ge.s32.totalorder %s17_s19, 6   ;;  %s4616_s13 = smov %s3426_s14 }
 0x33c   : > { %s4617_s14 = smov %s3547_s30  ;;  %s4618_s15 = smov %s3438_s17 }
 0x33d   : > { %s4619_s16 = smov %s3442_s18  ;;  %s4620_s17 = smov %s4623_s22 }
 0x33e   : > { %s4621_s18 = smov %s4627_s23  ;;  %16 = sbr.rel (!%p14_p1) target bundleno = 5 (0x5), region = 93 }
 0x343   :  { %3064 = vsyncpa [#allocation5], 1 }
 0x344   :  { %3066 = vsyncpa [#allocation5 + $0x1], 1 }

</bundles_post_ra>
